<compile_context>
chip_gen: v5e
topology: v5e:2x2
jax: 0.10.0
libtpu: 0.0.40
codegen_flags: <defaults>
</compile_context>

<pallas_src>
import jax
import jax.numpy as jnp
from jax.experimental import pallas as pl
from jax.experimental.pallas import tpu as pltpu

IN_FEATURES = 50 * 50      # 2500
HIDDEN = 400
OUT_FEATURES = 100

# Lane / MXU aligned shapes used inside the kernel.
K_PAD = 2560               # 2500 -> next multiple of 128
H_PAD = 512                # 400  -> next multiple of 128
O_PAD = 128                # 100  -> next multiple of 128

MAX_TILE_B = 256           # MXU-row friendly batch tile on v5e/v6e/v7x


def _round_up(x, m):
    return (x + m - 1) // m * m


def _object_encoder_kernel(x_ref, w1_ref, b1_ref, w2_ref, b2_ref, o_ref):
    # x_ref : (TB, K_PAD)   bf16     w1_ref: (K_PAD, H_PAD) bf16
    # b1_ref: (1, H_PAD)    f32      w2_ref: (H_PAD, O_PAD) bf16
    # b2_ref: (1, O_PAD)    f32      o_ref : (TB, O_PAD)    f32
    h = jnp.dot(x_ref[...], w1_ref[...], preferred_element_type=jnp.float32)
    h = jnp.maximum(h + b1_ref[...], 0.0)                    # bias + ReLU in f32
    out = jnp.dot(h.astype(jnp.bfloat16), w2_ref[...],
                  preferred_element_type=jnp.float32) + b2_ref[...]
    o_ref[...] = out.astype(o_ref.dtype)


def object_encoder_forward(data, w1, b1, w2, b2):
    """Pallas equivalent of ObjectEncoder.forward.

    data: (B, 50, 50) or (B, 2500) float32.
    w1: (2500, 400), b1: (400,), w2: (400, 100), b2: (100,)  (f32, transposed
    relative to PyTorch's nn.Linear weight layout).
    Returns: (B, 100) float32.  bf16 matmul inputs => ~1e-3 relative diff vs
    strict f32.
    """
    batch = data.shape[0]
    x = data.reshape(batch, IN_FEATURES).astype(jnp.float32)

    # Batch tile: MXU-row aligned, at least 8 (f32/bf16 sublane), at most 256.
    tile_b = min(MAX_TILE_B, _round_up(batch, 8))
    padded_b = _round_up(batch, tile_b)

    # --- host-side layout prep: zero-pad to aligned shapes, cast to bf16 ---
    x_p = jnp.zeros((padded_b, K_PAD), jnp.bfloat16)
    x_p = x_p.at[:batch, :IN_FEATURES].set(x.astype(jnp.bfloat16))

    w1_p = jnp.zeros((K_PAD, H_PAD), jnp.bfloat16)
    w1_p = w1_p.at[:IN_FEATURES, :HIDDEN].set(w1.astype(jnp.bfloat16))
    b1_p = jnp.zeros((1, H_PAD), jnp.float32)
    b1_p = b1_p.at[0, :HIDDEN].set(b1.astype(jnp.float32))

    w2_p = jnp.zeros((H_PAD, O_PAD), jnp.bfloat16)
    w2_p = w2_p.at[:HIDDEN, :OUT_FEATURES].set(w2.astype(jnp.bfloat16))
    b2_p = jnp.zeros((1, O_PAD), jnp.float32)
    b2_p = b2_p.at[0, :OUT_FEATURES].set(b2.astype(jnp.float32))

    grid = (padded_b // tile_b,)

    cost = pl.CostEstimate(
        flops=2 * batch * (IN_FEATURES * HIDDEN + HIDDEN * OUT_FEATURES),
        transcendentals=0,
        bytes_accessed=(x_p.size * 2 + w1_p.size * 2 + w2_p.size * 2
                        + b1_p.size * 4 + b2_p.size * 4
                        + padded_b * O_PAD * 4),
    )

    out_padded = pl.pallas_call(
        _object_encoder_kernel,
        out_shape=jax.ShapeDtypeStruct((padded_b, O_PAD), jnp.float32),
        grid=grid,
        in_specs=[
            pl.BlockSpec((tile_b, K_PAD), lambda i: (i, 0)),   # x: tiled over batch
            pl.BlockSpec((K_PAD, H_PAD), lambda i: (0, 0)),    # w1: VMEM-resident
            pl.BlockSpec((1, H_PAD), lambda i: (0, 0)),        # b1
            pl.BlockSpec((H_PAD, O_PAD), lambda i: (0, 0)),    # w2
            pl.BlockSpec((1, O_PAD), lambda i: (0, 0)),        # b2
        ],
        out_specs=pl.BlockSpec((tile_b, O_PAD), lambda i: (i, 0)),
        compiler_params=pltpu.CompilerParams(
            dimension_semantics=("parallel",),      # shards batch across v7x's 2 TCs
            vmem_limit_bytes=16 << 20,              # ~9 MiB live; headroom on v7x 64 MiB
        ),
        cost_estimate=cost,
    )(x_p, w1_p, b1_p, w2_p, b2_p)

    # Strip the batch / output-lane padding.
    return out_padded[:batch, :OUT_FEATURES]


def init_params(key):
    """Deterministic init mirroring nn.Linear's default U(-1/sqrt(fan_in), +1/sqrt(fan_in)).

    Weights are returned already transposed to (in_features, out_features), f32.
    """
    k1, k2, k3, k4 = jax.random.split(key, 4)
    bound1 = 1.0 / jnp.sqrt(IN_FEATURES)
    bound2 = 1.0 / jnp.sqrt(HIDDEN)
    w1 = jax.random.uniform(k1, (IN_FEATURES, HIDDEN), jnp.float32, -bound1, bound1)
    b1 = jax.random.uniform(k2, (HIDDEN,), jnp.float32, -bound1, bound1)
    w2 = jax.random.uniform(k3, (HIDDEN, OUT_FEATURES), jnp.float32, -bound2, bound2)
    b2 = jax.random.uniform(k4, (OUT_FEATURES,), jnp.float32, -bound2, bound2)
    return w1, b1, w2, b2


if __name__ == "__main__":
    key = jax.random.PRNGKey(0)
    pkey, dkey = jax.random.split(key)

    w1, b1, w2, b2 = init_params(pkey)

    batch = 4
    data = jax.random.normal(dkey, (batch, 50, 50), jnp.float32)

    out = object_encoder_forward(data, w1, b1, w2, b2)
    out = jax.block_until_ready(out)

    # Sanity check against a pure-JAX f32 reference (bf16 matmul inputs in the
    # kernel => allow ~1e-2-level differences).
    x32 = data.reshape(batch, -1)
    ref = jnp.maximum(x32 @ w1 + b1, 0.0) @ w2 + b2
    assert out.shape == (batch, OUT_FEATURES)
    assert jnp.allclose(out, ref, atol=5e-2, rtol=5e-2), (
        float(jnp.max(jnp.abs(out - ref))))

    print("KERNEL_OK")
</pallas_src>

<mosaic_0001>
module attributes {stable_mosaic.version = 11 : i64} {
  func.func @_object_encoder_kernel(%arg0: i32, %arg1: memref<8x2560xbf16, #tpu.memory_space<vmem>>, %arg2: memref<2560x512xbf16, #tpu.memory_space<vmem>>, %arg3: memref<1x512xf32, #tpu.memory_space<vmem>>, %arg4: memref<512x128xbf16, #tpu.memory_space<vmem>>, %arg5: memref<1x128xf32, #tpu.memory_space<vmem>>, %arg6: memref<8x128xf32, #tpu.memory_space<vmem>>) attributes {dimension_semantics = [#tpu.dimension_semantics<parallel>], iteration_bounds = array<i64: 1>, scalar_prefetch = 0 : i64, scratch_operands = 0 : i64, tpu.core_type = #tpu.core_type<tc>, window_params = [{transform_indices = @transform_0, window_bounds = array<i64: 8, 2560>}, {pipeline_mode = #tpu.pipeline_mode<synchronous>, transform_indices = @transform_1, window_bounds = array<i64: 2560, 512>}, {pipeline_mode = #tpu.pipeline_mode<synchronous>, transform_indices = @transform_2, window_bounds = array<i64: 1, 512>}, {pipeline_mode = #tpu.pipeline_mode<synchronous>, transform_indices = @transform_3, window_bounds = array<i64: 512, 128>}, {pipeline_mode = #tpu.pipeline_mode<synchronous>, transform_indices = @transform_4, window_bounds = array<i64: 1, 128>}, {transform_indices = @transform_5, window_bounds = array<i64: 8, 128>}]} {
    %c0 = arith.constant 0 : index
    %c0_0 = arith.constant 0 : index
    %0 = vector.load %arg1[%c0, %c0_0] : memref<8x2560xbf16, #tpu.memory_space<vmem>>, vector<8x2560xbf16>
    %c0_1 = arith.constant 0 : index
    %c0_2 = arith.constant 0 : index
    %1 = vector.load %arg2[%c0_1, %c0_2] : memref<2560x512xbf16, #tpu.memory_space<vmem>>, vector<2560x512xbf16>
    %cst = arith.constant dense<0.000000e+00> : vector<8x512xf32>
    %2 = tpu.matmul %0, %1, %cst {dimension_numbers = #tpu.dot_dimension_numbers<[1], [0], [0], [1], [0, 0, 1, 1], [], []>} : vector<8x2560xbf16>, vector<2560x512xbf16>, vector<8x512xf32> -> vector<8x512xf32>
    %c0_3 = arith.constant 0 : index
    %c0_4 = arith.constant 0 : index
    %3 = vector.load %arg3[%c0_3, %c0_4] : memref<1x512xf32, #tpu.memory_space<vmem>>, vector<1x512xf32>
    %4 = vector.broadcast %3 : vector<1x512xf32> to vector<8x512xf32>
    %5 = arith.addf %2, %4 : vector<8x512xf32>
    %cst_5 = arith.constant 0.000000e+00 : f32
    %6 = vector.broadcast %cst_5 : f32 to vector<8x512xf32>
    %7 = arith.maximumf %5, %6 : vector<8x512xf32>
    %8 = arith.truncf %7 : vector<8x512xf32> to vector<8x512xbf16>
    %c0_6 = arith.constant 0 : index
    %c0_7 = arith.constant 0 : index
    %9 = vector.load %arg4[%c0_6, %c0_7] : memref<512x128xbf16, #tpu.memory_space<vmem>>, vector<512x128xbf16>
    %cst_8 = arith.constant dense<0.000000e+00> : vector<8x128xf32>
    %10 = tpu.matmul %8, %9, %cst_8 {dimension_numbers = #tpu.dot_dimension_numbers<[1], [0], [0], [1], [0, 0, 1, 1], [], []>} : vector<8x512xbf16>, vector<512x128xbf16>, vector<8x128xf32> -> vector<8x128xf32>
    %c0_9 = arith.constant 0 : index
    %c0_10 = arith.constant 0 : index
    %11 = vector.load %arg5[%c0_9, %c0_10] : memref<1x128xf32, #tpu.memory_space<vmem>>, vector<1x128xf32>
    %12 = vector.broadcast %11 : vector<1x128xf32> to vector<8x128xf32>
    %13 = arith.addf %10, %12 : vector<8x128xf32>
    %c0_11 = arith.constant 0 : index
    %c0_12 = arith.constant 0 : index
    %14 = vector.load %arg6[%c0_11, %c0_12] : memref<8x128xf32, #tpu.memory_space<vmem>>, vector<8x128xf32>
    tpu.vector_store %arg6[%c0_11, %c0_12], %13 {strides = array<i32>} : memref<8x128xf32, #tpu.memory_space<vmem>>, vector<8x128xf32>,
    return
  }
  func.func @transform_0(%arg0: i32) -> (i32, i32) {
    %c0_i32 = arith.constant 0 : i32
    %c0_i32_0 = arith.constant 0 : i32
    return %arg0, %c0_i32 : i32, i32
  }
  func.func @transform_1(%arg0: i32) -> (i32, i32) {
    %c0_i32 = arith.constant 0 : i32
    %c0_i32_0 = arith.constant 0 : i32
    %c0_i32_1 = arith.constant 0 : i32
    return %c0_i32, %c0_i32_0 : i32, i32
  }
  func.func @transform_2(%arg0: i32) -> (i32, i32) {
    %c0_i32 = arith.constant 0 : i32
    %c0_i32_0 = arith.constant 0 : i32
    %c0_i32_1 = arith.constant 0 : i32
    return %c0_i32, %c0_i32_0 : i32, i32
  }
  func.func @transform_3(%arg0: i32) -> (i32, i32) {
    %c0_i32 = arith.constant 0 : i32
    %c0_i32_0 = arith.constant 0 : i32
    %c0_i32_1 = arith.constant 0 : i32
    return %c0_i32, %c0_i32_0 : i32, i32
  }
  func.func @transform_4(%arg0: i32) -> (i32, i32) {
    %c0_i32 = arith.constant 0 : i32
    %c0_i32_0 = arith.constant 0 : i32
    %c0_i32_1 = arith.constant 0 : i32
    return %c0_i32, %c0_i32_0 : i32, i32
  }
  func.func @transform_5(%arg0: i32) -> (i32, i32) {
    %c0_i32 = arith.constant 0 : i32
    %c0_i32_0 = arith.constant 0 : i32
    return %arg0, %c0_i32 : i32, i32
  }
}

</mosaic_0001>

<bundles_post_ra>
// kernel: tpu_custom_call.1
= control target key start
LH: loop header
LB: loop body
LE: loop exit
PB: predicated region body
PF: predicated region fallthrough
CT: control target
= control target key end

     0   :  { %10 = vsyncpa [#allocation3], 0  ;;  %s9167_s0 = inlined_call_operand.hbm [shape: bf16[8,2560], index: 0, kind: input, shape index: {}]   ;;  %s9168_s1 = inlined_call_operand.hbm [shape: bf16[2560,512], index: 1, kind: input, shape index: {}]   ;;  %s9169_s2 = inlined_call_operand.hbm [shape: f32[1,512], index: 2, kind: input, shape index: {}]   ;;  %s9170_s3 = inlined_call_operand.hbm [shape: bf16[512,128], index: 3, kind: input, shape index: {}]   ;;  %s9171_s4 = inlined_call_operand.hbm [shape: f32[1,128], index: 4, kind: input, shape index: {}]   ;;  %s9172_s5 = inlined_call_operand.hbm [shape: f32[8,128], index: 5, kind: output, shape index: {}]  }
   0x1   :  { %11 = vsyncpa [#allocation6], 0 }
   0x2   :  { %12 = vsyncpa [#allocation9], 0  ;;  %s29_s20 = sshll.u32 %s9168_s1, 4  ;;  %s30_s20 = int_to_ptr.hbm [resolvable:$true] %s29_s20 }
   0x3   :  { %13 = vsyncpa [#allocation4], 0  ;;  %s8929_s21 = smov [#allocation5]   ;;  %s53_s25 = sshll.u32 %s9170_s3, 4  ;;  %s54_s25 = int_to_ptr.hbm [resolvable:$true] %s53_s25 }
   0x4   :  { %s31_s22 = sshll.u32 %s8929_s21, 4  ;;  %s8930_s26 = smov 256   ;;  %s32_s22 = int_to_ptr.vmem [resolvable:$true] %s31_s22 }
   0x5   :  { %s8931_s27 = smov 16   ;;  %s8932_s28 = smov [#allocation8]  }
   0x6   :  { %37 = dma.hbm_to_vmem [thread:$0]  %s30_s20, 81920, %s32_s22, [#allocation6], %s8930_s26, %s8930_s26, %s8931_s27  }
   0x7   :  { %s55_s29 = sshll.u32 %s8932_s28, 4  ;;  %s8933_s30 = smov 64   ;;  %s56_s29 = int_to_ptr.vmem [resolvable:$true] %s55_s29 }
   0x8   :  { %s8934_s6 = smov 4   ;;  %s19_s8 = sshll.u32 %s9167_s0, 4  ;;  %s20_s8 = int_to_ptr.hbm [resolvable:$true] %s19_s8 }
   0x9   :  { %61 = dma.hbm_to_vmem [thread:$0]  %s54_s25, 4096, %s56_s29, [#allocation9], %s8933_s30, %s8933_s30, %s8934_s6  }
   0xa   :  { %s8935_s9 = smov [#allocation2]   ;;  %s43_s12 = sshll.u32 %s9169_s2, 4  ;;  %s44_s12 = int_to_ptr.hbm [resolvable:$true] %s43_s12 }
   0xb   :  { %s21_s10 = sshll.u32 %s8935_s9, 4  ;;  %s8936_s13 = smov [#allocation7]   ;;  %s22_s10 = int_to_ptr.vmem [resolvable:$true] %s21_s10 }
   0xc   :  { %24 = dma.hbm_to_vmem [thread:$0]  %s20_s8, 1280, %s22_s10, [#allocation3]  }
   0xd   :  { %s45_s14 = sshll.u32 %s8936_s13, 4  ;;  %s67_s17 = sshll.u32 %s9171_s4, 4  ;;  %s46_s14 = int_to_ptr.vmem [resolvable:$true] %s45_s14  ;;  %s68_s17 = int_to_ptr.hbm [resolvable:$true] %s67_s17 }
   0xe   :  { %48 = dma.hbm_to_vmem [thread:$0]  %s44_s12, 64, %s46_s14, [#allocation6]  }
   0xf   :  { %s8937_s0 = smov [#allocation10]  }
  0x10   :  { %s69_s18 = sshll.u32 %s8937_s0, 4  ;;  %s70_s18 = int_to_ptr.vmem [resolvable:$true] %s69_s18 }
  0x11   :  { %72 = dma.hbm_to_vmem [thread:$0]  %s68_s17, 16, %s70_s18, [#allocation9]  }
  0x12   :  { %8921 = dma.done.wait [#allocation3], 1280  }
  0x13   :  { %8922 = vsyncadd [#allocation3], 4294966016 }
  0x14   :  { %8923 = dma.done.wait [#allocation6], 81984  }
  0x15   :  { %8924 = vsyncadd [#allocation6], 4294885312 }
  0x16   :  { %8925 = dma.done.wait [#allocation9], 4112  }
  0x17   :  { %8926 = vsyncadd [#allocation9], 4294963184  ;;  %v5517_v0 = vld [vmem:[#allocation5 + $0xe0] sm:$0xf]  ;;  %v8121_v1 = vld [vmem:[#allocation5 + $0xec] sm:$0xf0] }
  0x18   :  { %v5645_v2 = vld [vmem:[#allocation5 + $0x1e0] sm:$0xf]  ;;  %v5518_v3 = vor.u32 %v8121_v1, %v5517_v0  ;;  %v8153_v4 = vld [vmem:[#allocation5 + $0x1ec] sm:$0xf0]  ;;  %s8938_s2 = smov [#allocation11]   ;;  %s5391_s21 = sshll.u32 %s9172_s5, 4  ;;  %s5392_s21 = int_to_ptr.hbm [resolvable:$true] %s5391_s21 }
  0x19   :  { %v5773_v5 = vld [vmem:[#allocation5 + $0x2e0] sm:$0xf]  ;;  %v8185_v6 = vld [vmem:[#allocation5 + $0x2ec] sm:$0xf0]  ;;  %v5646_v7 = vor.u32 %v8153_v4, %v5645_v2  ;;  %s5389_s4 = sshll.u32 %s8938_s2, 4  ;;  %s5390_s4 = int_to_ptr.vmem [resolvable:$true] %s5389_s4 }
  0x1a   :  { %v5774_v8 = vor.u32 %v8185_v6, %v5773_v5  ;;  %v5901_v9 = vld [vmem:[#allocation5 + $0x3e0] sm:$0xf]  ;;  %v8217_v10 = vld [vmem:[#allocation5 + $0x3ec] sm:$0xf0]  ;;  %4023 = vmatpush.bf16.msra.mxu0 %v5518_v3 }
  0x1b   :  { %v5501_v11 = vld [vmem:[#allocation5 + $0xc0] sm:$0xf]  ;;  %v5902_v12 = vor.u32 %v8217_v10, %v5901_v9  ;;  %v8117_v13 = vld [vmem:[#allocation5 + $0xcc] sm:$0xf0]  ;;  %4036 = vmatpush.bf16.msra.mxu1 %v5646_v7 }
  0x1c   :  { %v5629_v14 = vld [vmem:[#allocation5 + $0x1c0] sm:$0xf]  ;;  %v8149_v15 = vld [vmem:[#allocation5 + $0x1cc] sm:$0xf0]  ;;  %4049 = vmatpush.bf16.msra.mxu2 %v5774_v8  ;;  %v5502_v16 = vor.u32 %v8117_v13, %v5501_v11 }
  0x1d   :  { %v5630_v17 = vor.u32 %v8149_v15, %v5629_v14  ;;  %v5757_v18 = vld [vmem:[#allocation5 + $0x2c0] sm:$0xf]  ;;  %v8181_v19 = vld [vmem:[#allocation5 + $0x2cc] sm:$0xf0]  ;;  %4062 = vmatpush.bf16.msra.mxu3 %v5902_v12 }
  0x1e   :  { %v5885_v20 = vld [vmem:[#allocation5 + $0x3c0] sm:$0xf]  ;;  %v5758_v21 = vor.u32 %v8181_v19, %v5757_v18  ;;  %v8213_v22 = vld [vmem:[#allocation5 + $0x3cc] sm:$0xf0]  ;;  %4024 = vmatpush.bf16.msra.mxu0 %v5502_v16 }
  0x1f   :  { %v5485_v23 = vld [vmem:[#allocation5 + $0xa0] sm:$0xf]  ;;  %v8113_v24 = vld [vmem:[#allocation5 + $0xac] sm:$0xf0]  ;;  %v5886_v25 = vor.u32 %v8213_v22, %v5885_v20  ;;  %4037 = vmatpush.bf16.msra.mxu1 %v5630_v17 }
  0x20   :  { %v5613_v26 = vld [vmem:[#allocation5 + $0x1a0] sm:$0xf]  ;;  %v8145_v27 = vld [vmem:[#allocation5 + $0x1ac] sm:$0xf0]  ;;  %v5486_v29 = vor.u32 %v8113_v24, %v5485_v23  ;;  %4050 = vmatpush.bf16.msra.mxu2 %v5758_v21 }
  0x21   :  { %v5741_v28 = vld [vmem:[#allocation5 + $0x2a0] sm:$0xf]  ;;  %v8177_v30 = vld [vmem:[#allocation5 + $0x2ac] sm:$0xf0]  ;;  %v5614_v33 = vor.u32 %v8145_v27, %v5613_v26  ;;  %4063 = vmatpush.bf16.msra.mxu3 %v5886_v25 }
  0x22   :  { %v5869_v31 = vld [vmem:[#allocation5 + $0x3a0] sm:$0xf]  ;;  %v8209_v32 = vld [vmem:[#allocation5 + $0x3ac] sm:$0xf0]  ;;  %v5742_v34 = vor.u32 %v8177_v30, %v5741_v28  ;;  %4025 = vmatpush.bf16.msra.mxu0 %v5486_v29 }
  0x23   :  { %v5469_v35 = vld [vmem:[#allocation5 + $0x80] sm:$0xf]  ;;  %v8109_v36 = vld [vmem:[#allocation5 + $0x8c] sm:$0xf0]  ;;  %v5870_v38 = vor.u32 %v8209_v32, %v5869_v31  ;;  %4038 = vmatpush.bf16.msra.mxu1 %v5614_v33 }
  0x24   :  { %v5597_v37 = vld [vmem:[#allocation5 + $0x180] sm:$0xf]  ;;  %v8141_v39 = vld [vmem:[#allocation5 + $0x18c] sm:$0xf0]  ;;  %v5470_v44 = vor.u32 %v8109_v36, %v5469_v35  ;;  %4051 = vmatpush.bf16.msra.mxu2 %v5742_v34 }
  0x25   :  { %v5725_v40 = vld [vmem:[#allocation5 + $0x280] sm:$0xf]  ;;  %v8173_v41 = vld [vmem:[#allocation5 + $0x28c] sm:$0xf0]  ;;  %v5598_v45 = vor.u32 %v8141_v39, %v5597_v37  ;;  %4064 = vmatpush.bf16.msra.mxu3 %v5870_v38 }
  0x26   :  { %v5853_v42 = vld [vmem:[#allocation5 + $0x380] sm:$0xf]  ;;  %v8205_v43 = vld [vmem:[#allocation5 + $0x38c] sm:$0xf0]  ;;  %v5726_v46 = vor.u32 %v8173_v41, %v5725_v40  ;;  %4026 = vmatpush.bf16.msra.mxu0 %v5470_v44 }
  0x27   :  { %v5453_v47 = vld [vmem:[#allocation5 + $0x60] sm:$0xf]  ;;  %v8105_v48 = vld [vmem:[#allocation5 + $0x6c] sm:$0xf0]  ;;  %v5854_v50 = vor.u32 %v8205_v43, %v5853_v42  ;;  %4039 = vmatpush.bf16.msra.mxu1 %v5598_v45 }
  0x28   :  { %v5581_v49 = vld [vmem:[#allocation5 + $0x160] sm:$0xf]  ;;  %v8137_v51 = vld [vmem:[#allocation5 + $0x16c] sm:$0xf0]  ;;  %v5454_v56 = vor.u32 %v8105_v48, %v5453_v47  ;;  %4052 = vmatpush.bf16.msra.mxu2 %v5726_v46 }
  0x29   :  { %v5709_v52 = vld [vmem:[#allocation5 + $0x260] sm:$0xf]  ;;  %v8169_v53 = vld [vmem:[#allocation5 + $0x26c] sm:$0xf0]  ;;  %v5582_v57 = vor.u32 %v8137_v51, %v5581_v49  ;;  %4065 = vmatpush.bf16.msra.mxu3 %v5854_v50 }
  0x2a   :  { %v5837_v54 = vld [vmem:[#allocation5 + $0x360] sm:$0xf]  ;;  %v8201_v55 = vld [vmem:[#allocation5 + $0x36c] sm:$0xf0]  ;;  %v5710_v58 = vor.u32 %v8169_v53, %v5709_v52  ;;  %4027 = vmatpush.bf16.msra.mxu0 %v5454_v56 }
  0x2b   :  { %v5437_v59 = vld [vmem:[#allocation5 + $0x40] sm:$0xf]  ;;  %v8101_v60 = vld [vmem:[#allocation5 + $0x4c] sm:$0xf0]  ;;  %v5838_v62 = vor.u32 %v8201_v55, %v5837_v54  ;;  %4040 = vmatpush.bf16.msra.mxu1 %v5582_v57 }
  0x2c   :  { %v5565_v61 = vld [vmem:[#allocation5 + $0x140] sm:$0xf]  ;;  %v8133_v63 = vld [vmem:[#allocation5 + $0x14c] sm:$0xf0]  ;;  %v5438_v4 = vor.u32 %v8101_v60, %v5437_v59  ;;  %4053 = vmatpush.bf16.msra.mxu2 %v5710_v58 }
  0x2d   :  { %v5693_v0 = vld [vmem:[#allocation5 + $0x240] sm:$0xf]  ;;  %v8165_v1 = vld [vmem:[#allocation5 + $0x24c] sm:$0xf0]  ;;  %v5566_v5 = vor.u32 %v8133_v63, %v5565_v61  ;;  %4066 = vmatpush.bf16.msra.mxu3 %v5838_v62 }
  0x2e   :  { %v5821_v2 = vld [vmem:[#allocation5 + $0x340] sm:$0xf]  ;;  %v8197_v3 = vld [vmem:[#allocation5 + $0x34c] sm:$0xf0]  ;;  %v5694_v6 = vor.u32 %v8165_v1, %v5693_v0  ;;  %4028 = vmatpush.bf16.msra.mxu0 %v5438_v4 }
  0x2f   :  { %v5421_v7 = vld [vmem:[#allocation5 + $0x20] sm:$0xf]  ;;  %v8097_v8 = vld [vmem:[#allocation5 + $0x2c] sm:$0xf0]  ;;  %v5822_v10 = vor.u32 %v8197_v3, %v5821_v2  ;;  %4041 = vmatpush.bf16.msra.mxu1 %v5566_v5  ;;  %v94_v2 = vld [vmem:[#allocation2 + $0x8] sm:$0xff] }
  0x30   :  { %v5549_v9 = vld [vmem:[#allocation5 + $0x120] sm:$0xf]  ;;  %v8129_v11 = vld [vmem:[#allocation5 + $0x12c] sm:$0xf0]  ;;  %v5422_v16 = vor.u32 %v8097_v8, %v5421_v7  ;;  %4054 = vmatpush.bf16.msra.mxu2 %v5694_v6  ;;  %v765_v8 = vunpack.c.l.b16 %v94_v2 }
  0x31   :  { %v5677_v12 = vld [vmem:[#allocation5 + $0x220] sm:$0xf]  ;;  %v8161_v13 = vld [vmem:[#allocation5 + $0x22c] sm:$0xf0]  ;;  %v5550_v19 = vor.u32 %v8129_v11, %v5549_v9  ;;  %4067 = vmatpush.bf16.msra.mxu3 %v5822_v10  ;;  %v766_v10 = vunpack.c.h.b16 %v94_v2 }
  0x32   :  { %v5805_v14 = vld [vmem:[#allocation5 + $0x320] sm:$0xf]  ;;  %v8193_v15 = vld [vmem:[#allocation5 + $0x32c] sm:$0xf0]  ;;  %v5678_v20 = vor.u32 %v8161_v13, %v5677_v12  ;;  %4029 = vmatpush.bf16.msra.mxu0 %v5422_v16 }
  0x33   :  { %v5405_v17 = vld [vmem:[#allocation5] sm:$0xf]  ;;  %v8093_v18 = vld [vmem:[#allocation5 + $0xc] sm:$0xf0]  ;;  %v5806_v24 = vor.u32 %v8193_v15, %v5805_v14  ;;  %4042 = vmatpush.bf16.msra.mxu1 %v5550_v19 }
  0x34   :  { %v5533_v21 = vld [vmem:[#allocation5 + $0x100] sm:$0xf]  ;;  %v8125_v22 = vld [vmem:[#allocation5 + $0x10c] sm:$0xf0]  ;;  %v5406_v31 = vor.u32 %v8093_v18, %v5405_v17  ;;  %4055 = vmatpush.bf16.msra.mxu2 %v5678_v20  ;;  %v8984_v18 = vpack.c.b16 %v765_v8, %v765_v8  ;;  %v8988_v20 = vpack.c.b16 %v766_v10, %v766_v10 }
  0x35   :  { %v5661_v23 = vld [vmem:[#allocation5 + $0x200] sm:$0xf]  ;;  %v8157_v25 = vld [vmem:[#allocation5 + $0x20c] sm:$0xf0]  ;;  %v5534_v35 = vor.u32 %v8125_v22, %v5533_v21  ;;  %4068 = vmatpush.bf16.msra.mxu3 %v5806_v24 }
  0x36   :  { %v5789_v26 = vld [vmem:[#allocation5 + $0x300] sm:$0xf]  ;;  %v8189_v27 = vld [vmem:[#allocation5 + $0x30c] sm:$0xf0]  ;;  %v5662_v36 = vor.u32 %v8157_v25, %v5661_v23  ;;  %4030 = vmatpush.bf16.msra.mxu0 %v5406_v31 }
  0x37   :  { %v6029_v28 = vld [vmem:[#allocation5 + $0x4e0] sm:$0xf]  ;;  %v8249_v29 = vld [vmem:[#allocation5 + $0x4ec] sm:$0xf0]  ;;  %v5790_v39 = vor.u32 %v8189_v27, %v5789_v26  ;;  %4043 = vmatpush.bf16.msra.mxu1 %v5534_v35 }
  0x38   :  { %v6157_v30 = vld [vmem:[#allocation5 + $0x5e0] sm:$0xf]  ;;  %v8281_v32 = vld [vmem:[#allocation5 + $0x5ec] sm:$0xf0]  ;;  %v6030_v40 = vor.u32 %v8249_v29, %v6029_v28  ;;  %4056 = vmatpush.bf16.msra.mxu2 %v5662_v36 }
  0x39   :  { %v6285_v33 = vld [vmem:[#allocation5 + $0x6e0] sm:$0xf]  ;;  %v8313_v34 = vld [vmem:[#allocation5 + $0x6ec] sm:$0xf0]  ;;  %v6158_v41 = vor.u32 %v8281_v32, %v6157_v30  ;;  %4069 = vmatpush.bf16.msra.mxu3 %v5790_v39 }
  0x3a   :  { %v6413_v37 = vld [vmem:[#allocation5 + $0x7e0] sm:$0xf]  ;;  %v8345_v38 = vld [vmem:[#allocation5 + $0x7ec] sm:$0xf0]  ;;  %v6286_v42 = vor.u32 %v8313_v34, %v6285_v33  ;;  %4075 = vmatpush.bf16.msrb.mxu0 %v6030_v40 }
  0x3b   :  { %v6013_v43 = vld [vmem:[#allocation5 + $0x4c0] sm:$0xf]  ;;  %v8245_v44 = vld [vmem:[#allocation5 + $0x4cc] sm:$0xf0]  ;;  %v6414_v46 = vor.u32 %v8345_v38, %v6413_v37  ;;  %4088 = vmatpush.bf16.msrb.mxu1 %v6158_v41  ;;  %4057 = vmatmul.bf16.vlgmr.msra.gmra.mxu2 %v8984_v18 }
  0x3c   :  { %v6141_v45 = vld [vmem:[#allocation5 + $0x5c0] sm:$0xf]  ;;  %v8277_v47 = vld [vmem:[#allocation5 + $0x5cc] sm:$0xf0]  ;;  %v6014_v52 = vor.u32 %v8245_v44, %v6013_v43  ;;  %4101 = vmatpush.bf16.msrb.mxu2 %v6286_v42  ;;  %4070 = vmatmul.bf16.vlgmr.msra.gmra.mxu3 %v8988_v20 }
  0x3d   :  { %v6269_v48 = vld [vmem:[#allocation5 + $0x6c0] sm:$0xf]  ;;  %v8309_v49 = vld [vmem:[#allocation5 + $0x6cc] sm:$0xf0]  ;;  %v6142_v54 = vor.u32 %v8277_v47, %v6141_v45  ;;  %4114 = vmatpush.bf16.msrb.mxu3 %v6414_v46 }
  0x3e   :  { %v6397_v50 = vld [vmem:[#allocation5 + $0x7c0] sm:$0xf]  ;;  %v8341_v51 = vld [vmem:[#allocation5 + $0x7cc] sm:$0xf0]  ;;  %v6270_v55 = vor.u32 %v8309_v49, %v6269_v48  ;;  %4076 = vmatpush.bf16.msrb.mxu0 %v6014_v52 }
  0x3f   :  { %v5997_v53 = vld [vmem:[#allocation5 + $0x4a0] sm:$0xf]  ;;  %v8241_v56 = vld [vmem:[#allocation5 + $0x4ac] sm:$0xf0]  ;;  %v6398_v59 = vor.u32 %v8341_v51, %v6397_v50  ;;  %4089 = vmatpush.bf16.msrb.mxu1 %v6142_v54 }
  0x40   :  { %v6125_v57 = vld [vmem:[#allocation5 + $0x5a0] sm:$0xf]  ;;  %v8273_v58 = vld [vmem:[#allocation5 + $0x5ac] sm:$0xf0]  ;;  %v5998_v0 = vor.u32 %v8241_v56, %v5997_v53  ;;  %4102 = vmatpush.bf16.msrb.mxu2 %v6270_v55 }
  0x41   :  { %v6253_v60 = vld [vmem:[#allocation5 + $0x6a0] sm:$0xf]  ;;  %v8305_v61 = vld [vmem:[#allocation5 + $0x6ac] sm:$0xf0]  ;;  %v6126_v1 = vor.u32 %v8273_v58, %v6125_v57  ;;  %4115 = vmatpush.bf16.msrb.mxu3 %v6398_v59 }
  0x42   :  { %v6381_v62 = vld [vmem:[#allocation5 + $0x7a0] sm:$0xf]  ;;  %v8337_v63 = vld [vmem:[#allocation5 + $0x7ac] sm:$0xf0]  ;;  %v6254_v4 = vor.u32 %v8305_v61, %v6253_v60  ;;  %4077 = vmatpush.bf16.msrb.mxu0 %v5998_v0 }
  0x43   :  { %v93_v3 = vld [vmem:[#allocation2] sm:$0xff]  ;;  %v5981_v5 = vld [vmem:[#allocation5 + $0x480] sm:$0xf]  ;;  %v6382_v11 = vor.u32 %v8337_v63, %v6381_v62  ;;  %4090 = vmatpush.bf16.msrb.mxu1 %v6126_v1 }
  0x44   :  { %v8237_v6 = vld [vmem:[#allocation5 + $0x48c] sm:$0xf0]  ;;  %v6109_v7 = vld [vmem:[#allocation5 + $0x580] sm:$0xf]  ;;  %v763_v9 = vunpack.c.l.b16 %v93_v3  ;;  %v764_v15 = vunpack.c.h.b16 %v93_v3  ;;  %4103 = vmatpush.bf16.msrb.mxu2 %v6254_v4  ;;  %v96_v3 = vld [vmem:[#allocation2 + $0x18] sm:$0xff] }
  0x45   :  { %v8269_v12 = vld [vmem:[#allocation5 + $0x58c] sm:$0xf0]  ;;  %v6237_v13 = vld [vmem:[#allocation5 + $0x680] sm:$0xf]  ;;  %v5982_v21 = vor.u32 %v8237_v6, %v5981_v5  ;;  %4116 = vmatpush.bf16.msrb.mxu3 %v6382_v11 }
  0x46   :  { %v8301_v14 = vld [vmem:[#allocation5 + $0x68c] sm:$0xf0]  ;;  %v6365_v16 = vld [vmem:[#allocation5 + $0x780] sm:$0xf]  ;;  %v8986_v19 = vpack.c.b16 %v763_v9, %v763_v9  ;;  %v8990_v22 = vpack.c.b16 %v764_v15, %v764_v15  ;;  %v6110_v23 = vor.u32 %v8269_v12, %v6109_v7  ;;  %v769_v15 = vunpack.c.l.b16 %v96_v3 }
  0x47   :  { %v8333_v17 = vld [vmem:[#allocation5 + $0x78c] sm:$0xf0]  ;;  %v6238_v24 = vor.u32 %v8301_v14, %v6237_v13  ;;  %v5965_v25 = vld [vmem:[#allocation5 + $0x460] sm:$0xf]  ;;  %4078 = vmatpush.bf16.msrb.mxu0 %v5982_v21 }
  0x48   :  { %v8233_v26 = vld [vmem:[#allocation5 + $0x46c] sm:$0xf0]  ;;  %v6093_v27 = vld [vmem:[#allocation5 + $0x560] sm:$0xf]  ;;  %v6366_v28 = vor.u32 %v8333_v17, %v6365_v16  ;;  %4031 = vmatmul.bf16.vlgmr.msra.gmra.mxu0 %v8986_v19  ;;  %4044 = vmatmul.bf16.vlgmr.msra.gmra.mxu1 %v8990_v22 }
  0x49   :  { %v8265_v29 = vld [vmem:[#allocation5 + $0x56c] sm:$0xf0]  ;;  %v6221_v30 = vld [vmem:[#allocation5 + $0x660] sm:$0xf]  ;;  %v5966_v34 = vor.u32 %v8233_v26, %v5965_v25  ;;  %4091 = vmatpush.bf16.msrb.mxu1 %v6110_v23  ;;  %4104 = vmatpush.bf16.msrb.mxu2 %v6238_v24  ;;  %v770_v25 = vunpack.c.h.b16 %v96_v3 }
  0x4a   :  { %v8297_v31 = vld [vmem:[#allocation5 + $0x66c] sm:$0xf0]  ;;  %v6349_v32 = vld [vmem:[#allocation5 + $0x760] sm:$0xf]  ;;  %v6094_v35 = vor.u32 %v8265_v29, %v6093_v27  ;;  %4117 = vmatpush.bf16.msrb.mxu3 %v6366_v28 }
  0x4b   :  { %v8329_v33 = vld [vmem:[#allocation5 + $0x76c] sm:$0xf0]  ;;  %v6222_v36 = vor.u32 %v8297_v31, %v6221_v30  ;;  %v5949_v37 = vld [vmem:[#allocation5 + $0x440] sm:$0xf]  ;;  %4079 = vmatpush.bf16.msrb.mxu0 %v5966_v34 }
  0x4c   :  { %v8229_v38 = vld [vmem:[#allocation5 + $0x44c] sm:$0xf0]  ;;  %v6077_v39 = vld [vmem:[#allocation5 + $0x540] sm:$0xf]  ;;  %v6350_v40 = vor.u32 %v8329_v33, %v6349_v32 }
  0x4d   :  { %v8261_v41 = vld [vmem:[#allocation5 + $0x54c] sm:$0xf0]  ;;  %v6205_v42 = vld [vmem:[#allocation5 + $0x640] sm:$0xf]  ;;  %v5950_v46 = vor.u32 %v8229_v38, %v5949_v37  ;;  %4092 = vmatpush.bf16.msrb.mxu1 %v6094_v35  ;;  %4105 = vmatpush.bf16.msrb.mxu2 %v6222_v36  ;;  %v8996_v38 = vpack.c.b16 %v769_v15, %v769_v15 }
  0x4e   :  { %v8293_v43 = vld [vmem:[#allocation5 + $0x64c] sm:$0xf0]  ;;  %v6333_v44 = vld [vmem:[#allocation5 + $0x740] sm:$0xf]  ;;  %v6078_v47 = vor.u32 %v8261_v41, %v6077_v39  ;;  %4118 = vmatpush.bf16.msrb.mxu3 %v6350_v40 }
  0x4f   :  { %v8325_v45 = vld [vmem:[#allocation5 + $0x74c] sm:$0xf0]  ;;  %v6206_v48 = vor.u32 %v8293_v43, %v6205_v42  ;;  %v5933_v49 = vld [vmem:[#allocation5 + $0x420] sm:$0xf]  ;;  %4080 = vmatpush.bf16.msrb.mxu0 %v5950_v46  ;;  %v9000_v42 = vpack.c.b16 %v770_v25, %v770_v25 }
  0x50   :  { %v8225_v50 = vld [vmem:[#allocation5 + $0x42c] sm:$0xf0]  ;;  %v6061_v51 = vld [vmem:[#allocation5 + $0x520] sm:$0xf]  ;;  %v6334_v52 = vor.u32 %v8325_v45, %v6333_v44 }
  0x51   :  { %v8257_v53 = vld [vmem:[#allocation5 + $0x52c] sm:$0xf0]  ;;  %v6189_v54 = vld [vmem:[#allocation5 + $0x620] sm:$0xf]  ;;  %v5934_v59 = vor.u32 %v8225_v50, %v5933_v49  ;;  %4093 = vmatpush.bf16.msrb.mxu1 %v6078_v47  ;;  %4106 = vmatpush.bf16.msrb.mxu2 %v6206_v48 }
  0x52   :  { %v8289_v55 = vld [vmem:[#allocation5 + $0x62c] sm:$0xf0]  ;;  %v6317_v56 = vld [vmem:[#allocation5 + $0x720] sm:$0xf]  ;;  %v6062_v63 = vor.u32 %v8257_v53, %v6061_v51  ;;  %4119 = vmatpush.bf16.msrb.mxu3 %v6334_v52 }
  0x53   :  { %v8321_v57 = vld [vmem:[#allocation5 + $0x72c] sm:$0xf0]  ;;  %v5917_v58 = vld [vmem:[#allocation5 + $0x400] sm:$0xf]  ;;  %v6190_v0 = vor.u32 %v8289_v55, %v6189_v54  ;;  %4081 = vmatpush.bf16.msrb.mxu0 %v5934_v59 }
  0x54   :  { %v8221_v60 = vld [vmem:[#allocation5 + $0x40c] sm:$0xf0]  ;;  %v6045_v61 = vld [vmem:[#allocation5 + $0x500] sm:$0xf]  ;;  %v6318_v4 = vor.u32 %v8321_v57, %v6317_v56 }
  0x55   :  { %v8253_v62 = vld [vmem:[#allocation5 + $0x50c] sm:$0xf0]  ;;  %v6173_v1 = vld [vmem:[#allocation5 + $0x600] sm:$0xf]  ;;  %v5918_v11 = vor.u32 %v8221_v60, %v5917_v58  ;;  %4094 = vmatpush.bf16.msrb.mxu1 %v6062_v63  ;;  %4107 = vmatpush.bf16.msrb.mxu2 %v6190_v0 }
  0x56   :  { %v8285_v2 = vld [vmem:[#allocation5 + $0x60c] sm:$0xf0]  ;;  %v6301_v5 = vld [vmem:[#allocation5 + $0x700] sm:$0xf]  ;;  %v6046_v16 = vor.u32 %v8253_v62, %v6045_v61  ;;  %4120 = vmatpush.bf16.msrb.mxu3 %v6318_v4 }
  0x57   :  { %v8317_v6 = vld [vmem:[#allocation5 + $0x70c] sm:$0xf0]  ;;  %v95_v7 = vld [vmem:[#allocation2 + $0x10] sm:$0xff]  ;;  %v6174_v17 = vor.u32 %v8285_v2, %v6173_v1  ;;  %4082 = vmatpush.bf16.msrb.mxu0 %v5918_v11 }
  0x58   :  { %v6541_v8 = vld [vmem:[#allocation5 + $0x8e0] sm:$0xf]  ;;  %v8377_v9 = vld [vmem:[#allocation5 + $0x8ec] sm:$0xf0]  ;;  %v767_v24 = vunpack.c.l.b16 %v95_v7  ;;  %v6302_v26 = vor.u32 %v8317_v6, %v6301_v5  ;;  %v768_v28 = vunpack.c.h.b16 %v95_v7 }
  0x59   :  { %v6669_v10 = vld [vmem:[#allocation5 + $0x9e0] sm:$0xf]  ;;  %v8409_v12 = vld [vmem:[#allocation5 + $0x9ec] sm:$0xf0]  ;;  %v6542_v27 = vor.u32 %v8377_v9, %v6541_v8  ;;  %4095 = vmatpush.bf16.msrb.mxu1 %v6046_v16  ;;  %4108 = vmatpush.bf16.msrb.mxu2 %v6174_v17 }
  0x5a   :  { %v6797_v13 = vld [vmem:[#allocation5 + $0xae0] sm:$0xf]  ;;  %v8441_v14 = vld [vmem:[#allocation5 + $0xaec] sm:$0xf0]  ;;  %v6670_v29 = vor.u32 %v8409_v12, %v6669_v10  ;;  %v8998_v41 = vpack.c.b16 %v767_v24, %v767_v24  ;;  %4121 = vmatpush.bf16.msrb.mxu3 %v6302_v26  ;;  %v9002_v44 = vpack.c.b16 %v768_v28, %v768_v28 }
  0x5b   :  { %v6925_v21 = vld [vmem:[#allocation5 + $0xbe0] sm:$0xf]  ;;  %v8473_v23 = vld [vmem:[#allocation5 + $0xbec] sm:$0xf0]  ;;  %v6798_v30 = vor.u32 %v8441_v14, %v6797_v13  ;;  %4127 = vmatpush.bf16.msra.mxu0 %v6542_v27 }
  0x5c   :  { %v6525_v31 = vld [vmem:[#allocation5 + $0x8c0] sm:$0xf]  ;;  %v8373_v32 = vld [vmem:[#allocation5 + $0x8cc] sm:$0xf0]  ;;  %v6926_v34 = vor.u32 %v8473_v23, %v6925_v21  ;;  %4109 = vmatmul.bf16.vlgmr.msrb.gmra.mxu2 %v8996_v38  ;;  %4083 = vmatmul.bf16.vlgmr.msrb.gmra.mxu0 %v8998_v41 }
  0x5d   :  { %v6653_v33 = vld [vmem:[#allocation5 + $0x9c0] sm:$0xf]  ;;  %v8405_v35 = vld [vmem:[#allocation5 + $0x9cc] sm:$0xf0]  ;;  %v6526_v43 = vor.u32 %v8373_v32, %v6525_v31  ;;  %4140 = vmatpush.bf16.msra.mxu1 %v6670_v29  ;;  %4153 = vmatpush.bf16.msra.mxu2 %v6798_v30 }
  0x5e   :  { %v6781_v36 = vld [vmem:[#allocation5 + $0xac0] sm:$0xf]  ;;  %v8437_v37 = vld [vmem:[#allocation5 + $0xacc] sm:$0xf0]  ;;  %v6654_v45 = vor.u32 %v8405_v35, %v6653_v33  ;;  %4166 = vmatpush.bf16.msra.mxu3 %v6926_v34  ;;  %4096 = vmatmul.bf16.vlgmr.msrb.gmra.mxu1 %v9002_v44 }
  0x5f   :  { %v6909_v39 = vld [vmem:[#allocation5 + $0xbc0] sm:$0xf]  ;;  %v8469_v40 = vld [vmem:[#allocation5 + $0xbcc] sm:$0xf0]  ;;  %v6782_v46 = vor.u32 %v8437_v37, %v6781_v36  ;;  %4122 = vmatmul.bf16.vlgmr.msrb.gmra.mxu3 %v9000_v42  ;;  %4128 = vmatpush.bf16.msra.mxu0 %v6526_v43 }
  0x60   :  { %v6509_v47 = vld [vmem:[#allocation5 + $0x8a0] sm:$0xf]  ;;  %v8369_v48 = vld [vmem:[#allocation5 + $0x8ac] sm:$0xf0]  ;;  %v6910_v50 = vor.u32 %v8469_v40, %v6909_v39 }
  0x61   :  { %v6637_v49 = vld [vmem:[#allocation5 + $0x9a0] sm:$0xf]  ;;  %v8401_v51 = vld [vmem:[#allocation5 + $0x9ac] sm:$0xf0]  ;;  %v6510_v56 = vor.u32 %v8369_v48, %v6509_v47  ;;  %4141 = vmatpush.bf16.msra.mxu1 %v6654_v45  ;;  %4154 = vmatpush.bf16.msra.mxu2 %v6782_v46 }
  0x62   :  { %v6765_v52 = vld [vmem:[#allocation5 + $0xaa0] sm:$0xf]  ;;  %v8433_v53 = vld [vmem:[#allocation5 + $0xaac] sm:$0xf0]  ;;  %v6638_v57 = vor.u32 %v8401_v51, %v6637_v49  ;;  %4167 = vmatpush.bf16.msra.mxu3 %v6910_v50 }
  0x63   :  { %v6893_v54 = vld [vmem:[#allocation5 + $0xba0] sm:$0xf]  ;;  %v8465_v55 = vld [vmem:[#allocation5 + $0xbac] sm:$0xf0]  ;;  %v6766_v58 = vor.u32 %v8433_v53, %v6765_v52  ;;  %4129 = vmatpush.bf16.msra.mxu0 %v6510_v56 }
  0x64   :  { %v6493_v59 = vld [vmem:[#allocation5 + $0x880] sm:$0xf]  ;;  %v8365_v60 = vld [vmem:[#allocation5 + $0x88c] sm:$0xf0]  ;;  %v6894_v62 = vor.u32 %v8465_v55, %v6893_v54 }
  0x65   :  { %v6621_v61 = vld [vmem:[#allocation5 + $0x980] sm:$0xf]  ;;  %v8397_v63 = vld [vmem:[#allocation5 + $0x98c] sm:$0xf0]  ;;  %v6494_v4 = vor.u32 %v8365_v60, %v6493_v59  ;;  %4142 = vmatpush.bf16.msra.mxu1 %v6638_v57  ;;  %4155 = vmatpush.bf16.msra.mxu2 %v6766_v58 }
  0x66   :  { %v6749_v0 = vld [vmem:[#allocation5 + $0xa80] sm:$0xf]  ;;  %v8429_v1 = vld [vmem:[#allocation5 + $0xa8c] sm:$0xf0]  ;;  %v6622_v5 = vor.u32 %v8397_v63, %v6621_v61  ;;  %4168 = vmatpush.bf16.msra.mxu3 %v6894_v62  ;;  %v98_v61 = vld [vmem:[#allocation2 + $0x28] sm:$0xff] }
  0x67   :  { %v6877_v2 = vld [vmem:[#allocation5 + $0xb80] sm:$0xf]  ;;  %v8461_v3 = vld [vmem:[#allocation5 + $0xb8c] sm:$0xf0]  ;;  %v6750_v6 = vor.u32 %v8429_v1, %v6749_v0  ;;  %4130 = vmatpush.bf16.msra.mxu0 %v6494_v4 }
  0x68   :  { %v6477_v7 = vld [vmem:[#allocation5 + $0x860] sm:$0xf]  ;;  %v8361_v8 = vld [vmem:[#allocation5 + $0x86c] sm:$0xf0]  ;;  %v6878_v10 = vor.u32 %v8461_v3, %v6877_v2 }
  0x69   :  { %v6605_v9 = vld [vmem:[#allocation5 + $0x960] sm:$0xf]  ;;  %v8393_v11 = vld [vmem:[#allocation5 + $0x96c] sm:$0xf0]  ;;  %v6478_v16 = vor.u32 %v8361_v8, %v6477_v7  ;;  %4143 = vmatpush.bf16.msra.mxu1 %v6622_v5  ;;  %4156 = vmatpush.bf16.msra.mxu2 %v6750_v6 }
  0x6a   :  { %v6733_v12 = vld [vmem:[#allocation5 + $0xa60] sm:$0xf]  ;;  %v8425_v13 = vld [vmem:[#allocation5 + $0xa6c] sm:$0xf0]  ;;  %v6606_v17 = vor.u32 %v8393_v11, %v6605_v9  ;;  %4169 = vmatpush.bf16.msra.mxu3 %v6878_v10  ;;  %v773_v10 = vunpack.c.l.b16 %v98_v61 }
  0x6b   :  { %v6861_v14 = vld [vmem:[#allocation5 + $0xb60] sm:$0xf]  ;;  %v8457_v15 = vld [vmem:[#allocation5 + $0xb6c] sm:$0xf0]  ;;  %v6734_v21 = vor.u32 %v8425_v13, %v6733_v12  ;;  %4131 = vmatpush.bf16.msra.mxu0 %v6478_v16 }
  0x6c   :  { %v6461_v23 = vld [vmem:[#allocation5 + $0x840] sm:$0xf]  ;;  %v8357_v24 = vld [vmem:[#allocation5 + $0x84c] sm:$0xf0]  ;;  %v6862_v26 = vor.u32 %v8457_v15, %v6861_v14  ;;  %v774_v14 = vunpack.c.h.b16 %v98_v61 }
  0x6d   :  { %v6589_v25 = vld [vmem:[#allocation5 + $0x940] sm:$0xf]  ;;  %v8389_v27 = vld [vmem:[#allocation5 + $0x94c] sm:$0xf0]  ;;  %v6462_v32 = vor.u32 %v8357_v24, %v6461_v23  ;;  %4144 = vmatpush.bf16.msra.mxu1 %v6606_v17  ;;  %4157 = vmatpush.bf16.msra.mxu2 %v6734_v21 }
  0x6e   :  { %v6717_v28 = vld [vmem:[#allocation5 + $0xa40] sm:$0xf]  ;;  %v8421_v29 = vld [vmem:[#allocation5 + $0xa4c] sm:$0xf0]  ;;  %v6590_v34 = vor.u32 %v8389_v27, %v6589_v25  ;;  %4170 = vmatpush.bf16.msra.mxu3 %v6862_v26 }
  0x6f   :  { %v6845_v30 = vld [vmem:[#allocation5 + $0xb40] sm:$0xf]  ;;  %v8453_v31 = vld [vmem:[#allocation5 + $0xb4c] sm:$0xf0]  ;;  %v6718_v35 = vor.u32 %v8421_v29, %v6717_v28  ;;  %4132 = vmatpush.bf16.msra.mxu0 %v6462_v32  ;;  %v9010_v29 = vpack.c.b16 %v773_v10, %v773_v10 }
  0x70   :  { %v6445_v33 = vld [vmem:[#allocation5 + $0x820] sm:$0xf]  ;;  %v8353_v36 = vld [vmem:[#allocation5 + $0x82c] sm:$0xf0]  ;;  %v6846_v40 = vor.u32 %v8453_v31, %v6845_v30 }
  0x71   :  { %v6573_v37 = vld [vmem:[#allocation5 + $0x920] sm:$0xf]  ;;  %v8385_v39 = vld [vmem:[#allocation5 + $0x92c] sm:$0xf0]  ;;  %v6446_v49 = vor.u32 %v8353_v36, %v6445_v33  ;;  %4145 = vmatpush.bf16.msra.mxu1 %v6590_v34  ;;  %4158 = vmatpush.bf16.msra.mxu2 %v6718_v35  ;;  %v9014_v33 = vpack.c.b16 %v774_v14, %v774_v14 }
  0x72   :  { %v6701_v43 = vld [vmem:[#allocation5 + $0xa20] sm:$0xf]  ;;  %v8417_v45 = vld [vmem:[#allocation5 + $0xa2c] sm:$0xf0]  ;;  %v6574_v53 = vor.u32 %v8385_v39, %v6573_v37  ;;  %4171 = vmatpush.bf16.msra.mxu3 %v6846_v40 }
  0x73   :  { %v6829_v46 = vld [vmem:[#allocation5 + $0xb20] sm:$0xf]  ;;  %v8449_v47 = vld [vmem:[#allocation5 + $0xb2c] sm:$0xf0]  ;;  %v6702_v54 = vor.u32 %v8417_v45, %v6701_v43  ;;  %4133 = vmatpush.bf16.msra.mxu0 %v6446_v49 }
  0x74   :  { %v6429_v48 = vld [vmem:[#allocation5 + $0x800] sm:$0xf]  ;;  %v8349_v50 = vld [vmem:[#allocation5 + $0x80c] sm:$0xf0]  ;;  %v6830_v58 = vor.u32 %v8449_v47, %v6829_v46 }
  0x75   :  { %v6557_v51 = vld [vmem:[#allocation5 + $0x900] sm:$0xf]  ;;  %v8381_v52 = vld [vmem:[#allocation5 + $0x90c] sm:$0xf0]  ;;  %v6430_v1 = vor.u32 %v8349_v50, %v6429_v48  ;;  %4146 = vmatpush.bf16.msra.mxu1 %v6574_v53  ;;  %4159 = vmatpush.bf16.msra.mxu2 %v6702_v54 }
  0x76   :  { %v6685_v55 = vld [vmem:[#allocation5 + $0xa00] sm:$0xf]  ;;  %v8413_v56 = vld [vmem:[#allocation5 + $0xa0c] sm:$0xf0]  ;;  %v6558_v6 = vor.u32 %v8381_v52, %v6557_v51  ;;  %4172 = vmatpush.bf16.msra.mxu3 %v6830_v58 }
  0x77   :  { %v97_v57 = vld [vmem:[#allocation2 + $0x20] sm:$0xff]  ;;  %v6813_v59 = vld [vmem:[#allocation5 + $0xb00] sm:$0xf]  ;;  %v6686_v7 = vor.u32 %v8413_v56, %v6685_v55  ;;  %4134 = vmatpush.bf16.msra.mxu0 %v6430_v1 }
  0x78   :  { %v8445_v60 = vld [vmem:[#allocation5 + $0xb0c] sm:$0xf0]  ;;  %v7053_v62 = vld [vmem:[#allocation5 + $0xce0] sm:$0xf]  ;;  %v771_v5 = vunpack.c.l.b16 %v97_v57  ;;  %v772_v11 = vunpack.c.h.b16 %v97_v57 }
  0x79   :  { %v8505_v63 = vld [vmem:[#allocation5 + $0xcec] sm:$0xf0]  ;;  %v7181_v0 = vld [vmem:[#allocation5 + $0xde0] sm:$0xf]  ;;  %v6814_v12 = vor.u32 %v8445_v60, %v6813_v59  ;;  %4147 = vmatpush.bf16.msra.mxu1 %v6558_v6  ;;  %4160 = vmatpush.bf16.msra.mxu2 %v6686_v7 }
  0x7a   :  { %v8537_v2 = vld [vmem:[#allocation5 + $0xdec] sm:$0xf0]  ;;  %v7309_v3 = vld [vmem:[#allocation5 + $0xee0] sm:$0xf]  ;;  %v7054_v13 = vor.u32 %v8505_v63, %v7053_v62  ;;  %v9008_v25 = vpack.c.b16 %v771_v5, %v771_v5  ;;  %v9012_v30 = vpack.c.b16 %v772_v11, %v772_v11 }
  0x7b   :  { %v8569_v4 = vld [vmem:[#allocation5 + $0xeec] sm:$0xf0]  ;;  %v7437_v8 = vld [vmem:[#allocation5 + $0xfe0] sm:$0xf]  ;;  %v7182_v15 = vor.u32 %v8537_v2, %v7181_v0  ;;  %4173 = vmatpush.bf16.msra.mxu3 %v6814_v12 }
  0x7c   :  { %v8601_v9 = vld [vmem:[#allocation5 + $0xfec] sm:$0xf0]  ;;  %v7310_v16 = vor.u32 %v8569_v4, %v7309_v3  ;;  %v7037_v17 = vld [vmem:[#allocation5 + $0xcc0] sm:$0xf]  ;;  %4179 = vmatpush.bf16.msrb.mxu0 %v7054_v13  ;;  %4161 = vmatmul.bf16.vlgmr.msra.gmra.mxu2 %v9010_v29 }
  0x7d   :  { %v8501_v21 = vld [vmem:[#allocation5 + $0xccc] sm:$0xf0]  ;;  %v7165_v23 = vld [vmem:[#allocation5 + $0xdc0] sm:$0xf]  ;;  %v7438_v24 = vor.u32 %v8601_v9, %v7437_v8  ;;  %4192 = vmatpush.bf16.msrb.mxu1 %v7182_v15  ;;  %4135 = vmatmul.bf16.vlgmr.msra.gmra.mxu0 %v9008_v25 }
  0x7e   :  { %v8533_v26 = vld [vmem:[#allocation5 + $0xdcc] sm:$0xf0]  ;;  %v7293_v27 = vld [vmem:[#allocation5 + $0xec0] sm:$0xf]  ;;  %v7038_v34 = vor.u32 %v8501_v21, %v7037_v17  ;;  %4205 = vmatpush.bf16.msrb.mxu2 %v7310_v16  ;;  %4148 = vmatmul.bf16.vlgmr.msra.gmra.mxu1 %v9012_v30 }
  0x7f   :  { %v8565_v28 = vld [vmem:[#allocation5 + $0xecc] sm:$0xf0]  ;;  %v7421_v31 = vld [vmem:[#allocation5 + $0xfc0] sm:$0xf]  ;;  %v7166_v35 = vor.u32 %v8533_v26, %v7165_v23  ;;  %4218 = vmatpush.bf16.msrb.mxu3 %v7438_v24 }
  0x80   :  { %v8597_v32 = vld [vmem:[#allocation5 + $0xfcc] sm:$0xf0]  ;;  %v7294_v36 = vor.u32 %v8565_v28, %v7293_v27  ;;  %v7021_v37 = vld [vmem:[#allocation5 + $0xca0] sm:$0xf]  ;;  %4174 = vmatmul.bf16.vlgmr.msra.gmra.mxu3 %v9014_v33  ;;  %4180 = vmatpush.bf16.msrb.mxu0 %v7038_v34 }
  0x81   :  { %v8497_v39 = vld [vmem:[#allocation5 + $0xcac] sm:$0xf0]  ;;  %v7149_v40 = vld [vmem:[#allocation5 + $0xda0] sm:$0xf]  ;;  %v7422_v43 = vor.u32 %v8597_v32, %v7421_v31  ;;  %4193 = vmatpush.bf16.msrb.mxu1 %v7166_v35 }
  0x82   :  { %v8529_v45 = vld [vmem:[#allocation5 + $0xdac] sm:$0xf0]  ;;  %v7277_v46 = vld [vmem:[#allocation5 + $0xea0] sm:$0xf]  ;;  %v7022_v50 = vor.u32 %v8497_v39, %v7021_v37  ;;  %4206 = vmatpush.bf16.msrb.mxu2 %v7294_v36 }
  0x83   :  { %v8561_v47 = vld [vmem:[#allocation5 + $0xeac] sm:$0xf0]  ;;  %v7405_v48 = vld [vmem:[#allocation5 + $0xfa0] sm:$0xf]  ;;  %v7150_v51 = vor.u32 %v8529_v45, %v7149_v40  ;;  %4219 = vmatpush.bf16.msrb.mxu3 %v7422_v43 }
  0x84   :  { %v8593_v49 = vld [vmem:[#allocation5 + $0xfac] sm:$0xf0]  ;;  %v7278_v52 = vor.u32 %v8561_v47, %v7277_v46  ;;  %v7005_v53 = vld [vmem:[#allocation5 + $0xc80] sm:$0xf]  ;;  %4181 = vmatpush.bf16.msrb.mxu0 %v7022_v50 }
  0x85   :  { %v8493_v54 = vld [vmem:[#allocation5 + $0xc8c] sm:$0xf0]  ;;  %v7133_v55 = vld [vmem:[#allocation5 + $0xd80] sm:$0xf]  ;;  %v7406_v56 = vor.u32 %v8593_v49, %v7405_v48  ;;  %4194 = vmatpush.bf16.msrb.mxu1 %v7150_v51 }
  0x86   :  { %v8525_v57 = vld [vmem:[#allocation5 + $0xd8c] sm:$0xf0]  ;;  %v7261_v58 = vld [vmem:[#allocation5 + $0xe80] sm:$0xf]  ;;  %v7006_v62 = vor.u32 %v8493_v54, %v7005_v53  ;;  %4207 = vmatpush.bf16.msrb.mxu2 %v7278_v52 }
  0x87   :  { %v8557_v59 = vld [vmem:[#allocation5 + $0xe8c] sm:$0xf0]  ;;  %v7389_v60 = vld [vmem:[#allocation5 + $0xf80] sm:$0xf]  ;;  %v7134_v63 = vor.u32 %v8525_v57, %v7133_v55  ;;  %4220 = vmatpush.bf16.msrb.mxu3 %v7406_v56 }
  0x88   :  { %v8589_v61 = vld [vmem:[#allocation5 + $0xf8c] sm:$0xf0]  ;;  %v7262_v0 = vor.u32 %v8557_v59, %v7261_v58  ;;  %v6989_v1 = vld [vmem:[#allocation5 + $0xc60] sm:$0xf]  ;;  %4182 = vmatpush.bf16.msrb.mxu0 %v7006_v62  ;;  %v100_v59 = vld [vmem:[#allocation2 + $0x38] sm:$0xff] }
  0x89   :  { %v8489_v2 = vld [vmem:[#allocation5 + $0xc6c] sm:$0xf0]  ;;  %v7117_v3 = vld [vmem:[#allocation5 + $0xd60] sm:$0xf]  ;;  %v7390_v4 = vor.u32 %v8589_v61, %v7389_v60  ;;  %4195 = vmatpush.bf16.msrb.mxu1 %v7134_v63 }
  0x8a   :  { %v8521_v5 = vld [vmem:[#allocation5 + $0xd6c] sm:$0xf0]  ;;  %v7245_v6 = vld [vmem:[#allocation5 + $0xe60] sm:$0xf]  ;;  %v6990_v10 = vor.u32 %v8489_v2, %v6989_v1  ;;  %4208 = vmatpush.bf16.msrb.mxu2 %v7262_v0 }
  0x8b   :  { %v8553_v7 = vld [vmem:[#allocation5 + $0xe6c] sm:$0xf0]  ;;  %v7373_v8 = vld [vmem:[#allocation5 + $0xf60] sm:$0xf]  ;;  %v7118_v11 = vor.u32 %v8521_v5, %v7117_v3  ;;  %4221 = vmatpush.bf16.msrb.mxu3 %v7390_v4 }
  0x8c   :  { %v8585_v9 = vld [vmem:[#allocation5 + $0xf6c] sm:$0xf0]  ;;  %v7246_v12 = vor.u32 %v8553_v7, %v7245_v6  ;;  %v6973_v13 = vld [vmem:[#allocation5 + $0xc40] sm:$0xf]  ;;  %4183 = vmatpush.bf16.msrb.mxu0 %v6990_v10 }
  0x8d   :  { %v8485_v14 = vld [vmem:[#allocation5 + $0xc4c] sm:$0xf0]  ;;  %v7101_v15 = vld [vmem:[#allocation5 + $0xd40] sm:$0xf]  ;;  %v7374_v16 = vor.u32 %v8585_v9, %v7373_v8  ;;  %4196 = vmatpush.bf16.msrb.mxu1 %v7118_v11  ;;  %v777_v8 = vunpack.c.l.b16 %v100_v59 }
  0x8e   :  { %v8517_v17 = vld [vmem:[#allocation5 + $0xd4c] sm:$0xf0]  ;;  %v7229_v21 = vld [vmem:[#allocation5 + $0xe40] sm:$0xf]  ;;  %v6974_v27 = vor.u32 %v8485_v14, %v6973_v13  ;;  %4209 = vmatpush.bf16.msrb.mxu2 %v7246_v12  ;;  %v778_v12 = vunpack.c.h.b16 %v100_v59 }
  0x8f   :  { %v8549_v23 = vld [vmem:[#allocation5 + $0xe4c] sm:$0xf0]  ;;  %v7357_v24 = vld [vmem:[#allocation5 + $0xf40] sm:$0xf]  ;;  %v7102_v28 = vor.u32 %v8517_v17, %v7101_v15  ;;  %4222 = vmatpush.bf16.msrb.mxu3 %v7374_v16 }
  0x90   :  { %v8581_v26 = vld [vmem:[#allocation5 + $0xf4c] sm:$0xf0]  ;;  %v7230_v31 = vor.u32 %v8549_v23, %v7229_v21  ;;  %v6957_v32 = vld [vmem:[#allocation5 + $0xc20] sm:$0xf]  ;;  %4184 = vmatpush.bf16.msrb.mxu0 %v6974_v27 }
  0x91   :  { %v8481_v34 = vld [vmem:[#allocation5 + $0xc2c] sm:$0xf0]  ;;  %v7085_v35 = vld [vmem:[#allocation5 + $0xd20] sm:$0xf]  ;;  %v7358_v36 = vor.u32 %v8581_v26, %v7357_v24  ;;  %4197 = vmatpush.bf16.msrb.mxu1 %v7102_v28  ;;  %v9022_v28 = vpack.c.b16 %v777_v8, %v777_v8 }
  0x92   :  { %v8513_v37 = vld [vmem:[#allocation5 + $0xd2c] sm:$0xf0]  ;;  %v7213_v39 = vld [vmem:[#allocation5 + $0xe20] sm:$0xf]  ;;  %v6958_v47 = vor.u32 %v8481_v34, %v6957_v32  ;;  %4210 = vmatpush.bf16.msrb.mxu2 %v7230_v31 }
  0x93   :  { %v8545_v40 = vld [vmem:[#allocation5 + $0xe2c] sm:$0xf0]  ;;  %v7341_v43 = vld [vmem:[#allocation5 + $0xf20] sm:$0xf]  ;;  %v7086_v51 = vor.u32 %v8513_v37, %v7085_v35  ;;  %4223 = vmatpush.bf16.msrb.mxu3 %v7358_v36  ;;  %v9026_v35 = vpack.c.b16 %v778_v12, %v778_v12 }
  0x94   :  { %v8577_v45 = vld [vmem:[#allocation5 + $0xf2c] sm:$0xf0]  ;;  %v6941_v46 = vld [vmem:[#allocation5 + $0xc00] sm:$0xf]  ;;  %v7214_v52 = vor.u32 %v8545_v40, %v7213_v39  ;;  %4185 = vmatpush.bf16.msrb.mxu0 %v6958_v47 }
  0x95   :  { %v8477_v48 = vld [vmem:[#allocation5 + $0xc0c] sm:$0xf0]  ;;  %v7069_v49 = vld [vmem:[#allocation5 + $0xd00] sm:$0xf]  ;;  %v7342_v56 = vor.u32 %v8577_v45, %v7341_v43  ;;  %4198 = vmatpush.bf16.msrb.mxu1 %v7086_v51 }
  0x96   :  { %v8509_v50 = vld [vmem:[#allocation5 + $0xd0c] sm:$0xf0]  ;;  %v7197_v53 = vld [vmem:[#allocation5 + $0xe00] sm:$0xf]  ;;  %v6942_v63 = vor.u32 %v8477_v48, %v6941_v46  ;;  %4211 = vmatpush.bf16.msrb.mxu2 %v7214_v52 }
  0x97   :  { %v8541_v54 = vld [vmem:[#allocation5 + $0xe0c] sm:$0xf0]  ;;  %v99_v55 = vld [vmem:[#allocation2 + $0x30] sm:$0xff]  ;;  %v7070_v4 = vor.u32 %v8509_v50, %v7069_v49  ;;  %4224 = vmatpush.bf16.msrb.mxu3 %v7342_v56 }
  0x98   :  { %v7325_v57 = vld [vmem:[#allocation5 + $0xf00] sm:$0xf]  ;;  %v8573_v58 = vld [vmem:[#allocation5 + $0xf0c] sm:$0xf0]  ;;  %v775_v3 = vunpack.c.l.b16 %v99_v55  ;;  %v7198_v5 = vor.u32 %v8541_v54, %v7197_v53  ;;  %v776_v9 = vunpack.c.h.b16 %v99_v55  ;;  %4186 = vmatpush.bf16.msrb.mxu0 %v6942_v63 }
  0x99   :  { %v7565_v60 = vld [vmem:[#allocation5 + $0x10e0] sm:$0xf]  ;;  %v8633_v61 = vld [vmem:[#allocation5 + $0x10ec] sm:$0xf0]  ;;  %v7326_v10 = vor.u32 %v8573_v58, %v7325_v57  ;;  %4199 = vmatpush.bf16.msrb.mxu1 %v7070_v4 }
  0x9a   :  { %v7693_v62 = vld [vmem:[#allocation5 + $0x11e0] sm:$0xf]  ;;  %v8665_v0 = vld [vmem:[#allocation5 + $0x11ec] sm:$0xf0]  ;;  %v7566_v11 = vor.u32 %v8633_v61, %v7565_v60  ;;  %v9020_v23 = vpack.c.b16 %v775_v3, %v775_v3  ;;  %4212 = vmatpush.bf16.msrb.mxu2 %v7198_v5  ;;  %v9024_v31 = vpack.c.b16 %v776_v9, %v776_v9 }
  0x9b   :  { %v7821_v1 = vld [vmem:[#allocation5 + $0x12e0] sm:$0xf]  ;;  %v8697_v2 = vld [vmem:[#allocation5 + $0x12ec] sm:$0xf0]  ;;  %v7694_v13 = vor.u32 %v8665_v0, %v7693_v62  ;;  %4225 = vmatpush.bf16.msrb.mxu3 %v7326_v10 }
  0x9c   :  { %v7949_v6 = vld [vmem:[#allocation5 + $0x13e0] sm:$0xf]  ;;  %v8729_v7 = vld [vmem:[#allocation5 + $0x13ec] sm:$0xf0]  ;;  %v7822_v14 = vor.u32 %v8697_v2, %v7821_v1  ;;  %4231 = vmatpush.bf16.msra.mxu0 %v7566_v11  ;;  %4200 = vmatmul.bf16.vlgmr.msrb.gmra.mxu1 %v9024_v31 }
  0x9d   :  { %v7549_v15 = vld [vmem:[#allocation5 + $0x10c0] sm:$0xf]  ;;  %v8629_v16 = vld [vmem:[#allocation5 + $0x10cc] sm:$0xf0]  ;;  %v7950_v21 = vor.u32 %v8729_v7, %v7949_v6  ;;  %4244 = vmatpush.bf16.msra.mxu1 %v7694_v13  ;;  %4187 = vmatmul.bf16.vlgmr.msrb.gmra.mxu0 %v9020_v23 }
  0x9e   :  { %v7677_v17 = vld [vmem:[#allocation5 + $0x11c0] sm:$0xf]  ;;  %v8661_v24 = vld [vmem:[#allocation5 + $0x11cc] sm:$0xf0]  ;;  %v7550_v36 = vor.u32 %v8629_v16, %v7549_v15  ;;  %4257 = vmatpush.bf16.msra.mxu2 %v7822_v14  ;;  %4226 = vmatmul.bf16.vlgmr.msrb.gmra.mxu3 %v9026_v35 }
  0x9f   :  { %v7805_v26 = vld [vmem:[#allocation5 + $0x12c0] sm:$0xf]  ;;  %v8693_v27 = vld [vmem:[#allocation5 + $0x12cc] sm:$0xf0]  ;;  %v7678_v37 = vor.u32 %v8661_v24, %v7677_v17  ;;  %4270 = vmatpush.bf16.msra.mxu3 %v7950_v21  ;;  %4213 = vmatmul.bf16.vlgmr.msrb.gmra.mxu2 %v9022_v28 }
  0xa0   :  { %v7933_v32 = vld [vmem:[#allocation5 + $0x13c0] sm:$0xf]  ;;  %v8725_v34 = vld [vmem:[#allocation5 + $0x13cc] sm:$0xf0]  ;;  %v7806_v39 = vor.u32 %v8693_v27, %v7805_v26  ;;  %4232 = vmatpush.bf16.msra.mxu0 %v7550_v36 }
  0xa1   :  { %v7533_v40 = vld [vmem:[#allocation5 + $0x10a0] sm:$0xf]  ;;  %v8625_v43 = vld [vmem:[#allocation5 + $0x10ac] sm:$0xf0]  ;;  %v7934_v46 = vor.u32 %v8725_v34, %v7933_v32  ;;  %4245 = vmatpush.bf16.msra.mxu1 %v7678_v37 }
  0xa2   :  { %v7661_v45 = vld [vmem:[#allocation5 + $0x11a0] sm:$0xf]  ;;  %v8657_v47 = vld [vmem:[#allocation5 + $0x11ac] sm:$0xf0]  ;;  %v7534_v52 = vor.u32 %v8625_v43, %v7533_v40  ;;  %4258 = vmatpush.bf16.msra.mxu2 %v7806_v39 }
  0xa3   :  { %v7789_v48 = vld [vmem:[#allocation5 + $0x12a0] sm:$0xf]  ;;  %v8689_v49 = vld [vmem:[#allocation5 + $0x12ac] sm:$0xf0]  ;;  %v7662_v53 = vor.u32 %v8657_v47, %v7661_v45  ;;  %4271 = vmatpush.bf16.msra.mxu3 %v7934_v46 }
  0xa4   :  { %v7917_v50 = vld [vmem:[#allocation5 + $0x13a0] sm:$0xf]  ;;  %v8721_v51 = vld [vmem:[#allocation5 + $0x13ac] sm:$0xf0]  ;;  %v7790_v54 = vor.u32 %v8689_v49, %v7789_v48  ;;  %4233 = vmatpush.bf16.msra.mxu0 %v7534_v52 }
  0xa5   :  { %v7517_v55 = vld [vmem:[#allocation5 + $0x1080] sm:$0xf]  ;;  %v8621_v56 = vld [vmem:[#allocation5 + $0x108c] sm:$0xf0]  ;;  %v7918_v58 = vor.u32 %v8721_v51, %v7917_v50  ;;  %4246 = vmatpush.bf16.msra.mxu1 %v7662_v53 }
  0xa6   :  { %v7645_v57 = vld [vmem:[#allocation5 + $0x1180] sm:$0xf]  ;;  %v8653_v59 = vld [vmem:[#allocation5 + $0x118c] sm:$0xf0]  ;;  %v7518_v0 = vor.u32 %v8621_v56, %v7517_v55  ;;  %4259 = vmatpush.bf16.msra.mxu2 %v7790_v54 }
  0xa7   :  { %v7773_v60 = vld [vmem:[#allocation5 + $0x1280] sm:$0xf]  ;;  %v8685_v61 = vld [vmem:[#allocation5 + $0x128c] sm:$0xf0]  ;;  %v7646_v1 = vor.u32 %v8653_v59, %v7645_v57  ;;  %4272 = vmatpush.bf16.msra.mxu3 %v7918_v58 }
  0xa8   :  { %v7901_v62 = vld [vmem:[#allocation5 + $0x1380] sm:$0xf]  ;;  %v8717_v63 = vld [vmem:[#allocation5 + $0x138c] sm:$0xf0]  ;;  %v7774_v2 = vor.u32 %v8685_v61, %v7773_v60  ;;  %4234 = vmatpush.bf16.msra.mxu0 %v7518_v0 }
  0xa9   :  { %v7501_v3 = vld [vmem:[#allocation5 + $0x1060] sm:$0xf]  ;;  %v8617_v4 = vld [vmem:[#allocation5 + $0x106c] sm:$0xf0]  ;;  %v7902_v6 = vor.u32 %v8717_v63, %v7901_v62  ;;  %4247 = vmatpush.bf16.msra.mxu1 %v7646_v1  ;;  %v102_v1 = vld [vmem:[#allocation2 + $0x48] sm:$0xff] }
  0xaa   :  { %v7629_v5 = vld [vmem:[#allocation5 + $0x1160] sm:$0xf]  ;;  %v8649_v7 = vld [vmem:[#allocation5 + $0x116c] sm:$0xf0]  ;;  %v7502_v12 = vor.u32 %v8617_v4, %v7501_v3  ;;  %4260 = vmatpush.bf16.msra.mxu2 %v7774_v2  ;;  %v8119_v2 = vld [vmem:[#allocation5 + $0xe4] sm:$0xf] }
  0xab   :  { %v7757_v8 = vld [vmem:[#allocation5 + $0x1260] sm:$0xf]  ;;  %v8681_v9 = vld [vmem:[#allocation5 + $0x126c] sm:$0xf0]  ;;  %v7630_v13 = vor.u32 %v8649_v7, %v7629_v5  ;;  %4273 = vmatpush.bf16.msra.mxu3 %v7902_v6  ;;  %v5519_v3 = vld [vmem:[#allocation5 + $0xf0] sm:$0xf0] }
  0xac   :  { %v7885_v10 = vld [vmem:[#allocation5 + $0x1360] sm:$0xf]  ;;  %v8713_v11 = vld [vmem:[#allocation5 + $0x136c] sm:$0xf0]  ;;  %v7758_v14 = vor.u32 %v8681_v9, %v7757_v8  ;;  %4235 = vmatpush.bf16.msra.mxu0 %v7502_v12  ;;  %v8151_v4 = vld [vmem:[#allocation5 + $0x1e4] sm:$0xf] }
  0xad   :  { %v7485_v15 = vld [vmem:[#allocation5 + $0x1040] sm:$0xf]  ;;  %v8613_v16 = vld [vmem:[#allocation5 + $0x104c] sm:$0xf0]  ;;  %v7886_v21 = vor.u32 %v8713_v11, %v7885_v10  ;;  %4248 = vmatpush.bf16.msra.mxu1 %v7630_v13  ;;  %v5647_v6 = vld [vmem:[#allocation5 + $0x1f0] sm:$0xf0] }
  0xae   :  { %v7613_v17 = vld [vmem:[#allocation5 + $0x1140] sm:$0xf]  ;;  %v8645_v24 = vld [vmem:[#allocation5 + $0x114c] sm:$0xf0]  ;;  %v7486_v36 = vor.u32 %v8613_v16, %v7485_v15  ;;  %4261 = vmatpush.bf16.msra.mxu2 %v7758_v14  ;;  %v8183_v7 = vld [vmem:[#allocation5 + $0x2e4] sm:$0xf]  ;;  %v781_v14 = vunpack.c.l.b16 %v102_v1 }
  0xaf   :  { %v7741_v26 = vld [vmem:[#allocation5 + $0x1240] sm:$0xf]  ;;  %v8677_v27 = vld [vmem:[#allocation5 + $0x124c] sm:$0xf0]  ;;  %v7614_v37 = vor.u32 %v8645_v24, %v7613_v17  ;;  %4274 = vmatpush.bf16.msra.mxu3 %v7886_v21  ;;  %v5775_v8 = vld [vmem:[#allocation5 + $0x2f0] sm:$0xf0]  ;;  %v5522_v17 = vor.u32 %v8119_v2, %v5519_v3  ;;  %v782_v21 = vunpack.c.h.b16 %v102_v1  ;;  %v5650_v24 = vor.u32 %v8151_v4, %v5647_v6 }
  0xb0   :  { %v7869_v32 = vld [vmem:[#allocation5 + $0x1340] sm:$0xf]  ;;  %v8709_v34 = vld [vmem:[#allocation5 + $0x134c] sm:$0xf0]  ;;  %v7742_v39 = vor.u32 %v8677_v27, %v7741_v26  ;;  %4236 = vmatpush.bf16.msra.mxu0 %v7486_v36  ;;  %v8215_v12 = vld [vmem:[#allocation5 + $0x3e4] sm:$0xf]  ;;  %v5778_v26 = vor.u32 %v8183_v7, %v5775_v8 }
  0xb1   :  { %v7469_v40 = vld [vmem:[#allocation5 + $0x1020] sm:$0xf]  ;;  %v8609_v43 = vld [vmem:[#allocation5 + $0x102c] sm:$0xf0]  ;;  %v7870_v46 = vor.u32 %v8709_v34, %v7869_v32  ;;  %4249 = vmatpush.bf16.msra.mxu1 %v7614_v37  ;;  %v5903_v13 = vld [vmem:[#allocation5 + $0x3f0] sm:$0xf0] }
  0xb2   :  { %v7597_v45 = vld [vmem:[#allocation5 + $0x1120] sm:$0xf]  ;;  %v8641_v47 = vld [vmem:[#allocation5 + $0x112c] sm:$0xf0]  ;;  %v7470_v53 = vor.u32 %v8609_v43, %v7469_v40  ;;  %4262 = vmatpush.bf16.msra.mxu2 %v7742_v39  ;;  %v8115_v27 = vld [vmem:[#allocation5 + $0xc4] sm:$0xf]  ;;  %v5906_v36 = vor.u32 %v8215_v12, %v5903_v13 }
  0xb3   :  { %v7725_v48 = vld [vmem:[#allocation5 + $0x1220] sm:$0xf]  ;;  %v8673_v49 = vld [vmem:[#allocation5 + $0x122c] sm:$0xf0]  ;;  %v7598_v57 = vor.u32 %v8641_v47, %v7597_v45  ;;  %4275 = vmatpush.bf16.msra.mxu3 %v7870_v46  ;;  %v5503_v32 = vld [vmem:[#allocation5 + $0xd0] sm:$0xf0]  ;;  %v9034_v45 = vpack.c.b16 %v781_v14, %v781_v14 }
  0xb4   :  { %v7853_v50 = vld [vmem:[#allocation5 + $0x1320] sm:$0xf]  ;;  %v8705_v51 = vld [vmem:[#allocation5 + $0x132c] sm:$0xf0]  ;;  %v7726_v58 = vor.u32 %v8673_v49, %v7725_v48  ;;  %4237 = vmatpush.bf16.msra.mxu0 %v7470_v53  ;;  %v8147_v34 = vld [vmem:[#allocation5 + $0x1c4] sm:$0xf]  ;;  %v9038_v49 = vpack.c.b16 %v782_v21, %v782_v21 }
  0xb5   :  { %v7453_v52 = vld [vmem:[#allocation5 + $0x1000] sm:$0xf]  ;;  %v8605_v54 = vld [vmem:[#allocation5 + $0x100c] sm:$0xf0]  ;;  %v7854_v62 = vor.u32 %v8705_v51, %v7853_v50  ;;  %4250 = vmatpush.bf16.msra.mxu1 %v7598_v57  ;;  %v5631_v39 = vld [vmem:[#allocation5 + $0x1d0] sm:$0xf0]  ;;  %v5506_v50 = vor.u32 %v8115_v27, %v5503_v32 }
  0xb6   :  { %v7581_v55 = vld [vmem:[#allocation5 + $0x1100] sm:$0xf]  ;;  %v8637_v56 = vld [vmem:[#allocation5 + $0x110c] sm:$0xf0]  ;;  %v7454_v5 = vor.u32 %v8605_v54, %v7453_v52  ;;  %4263 = vmatpush.bf16.msra.mxu2 %v7726_v58  ;;  %v8179_v40 = vld [vmem:[#allocation5 + $0x2c4] sm:$0xf]  ;;  %v5634_v51 = vor.u32 %v8147_v34, %v5631_v39 }
  0xb7   :  { %v7709_v59 = vld [vmem:[#allocation5 + $0x1200] sm:$0xf]  ;;  %v8669_v60 = vld [vmem:[#allocation5 + $0x120c] sm:$0xf0]  ;;  %v7582_v10 = vor.u32 %v8637_v56, %v7581_v55  ;;  %4276 = vmatpush.bf16.msra.mxu3 %v7854_v62  ;;  %v5759_v43 = vld [vmem:[#allocation5 + $0x2d0] sm:$0xf0] }
  0xb8   :  { %v101_v61 = vld [vmem:[#allocation2 + $0x40] sm:$0xff]  ;;  %v7837_v63 = vld [vmem:[#allocation5 + $0x1300] sm:$0xf]  ;;  %v7710_v11 = vor.u32 %v8669_v60, %v7709_v59  ;;  %4238 = vmatpush.bf16.msra.mxu0 %v7454_v5  ;;  %v8211_v47 = vld [vmem:[#allocation5 + $0x3c4] sm:$0xf]  ;;  %v5762_v52 = vor.u32 %v8179_v40, %v5759_v43 }
  0xb9   :  { %v8701_v0 = vld [vmem:[#allocation5 + $0x130c] sm:$0xf0]  ;;  %v779_v9 = vunpack.c.l.b16 %v101_v61  ;;  %v780_v15 = vunpack.c.h.b16 %v101_v61  ;;  %4251 = vmatpush.bf16.msra.mxu1 %v7582_v10  ;;  %v5887_v48 = vld [vmem:[#allocation5 + $0x3d0] sm:$0xf0]  ;;  %v8111_v53 = vld [vmem:[#allocation5 + $0xa4] sm:$0xf] }
  0xba   :  { %v7838_v16 = vor.u32 %v8701_v0, %v7837_v63  ;;  %4264 = vmatpush.bf16.msra.mxu2 %v7710_v11  ;;  %v5487_v54 = vld [vmem:[#allocation5 + $0xb0] sm:$0xf0]  ;;  %v8143_v55 = vld [vmem:[#allocation5 + $0x1a4] sm:$0xf]  ;;  %v5890_v56 = vor.u32 %v8211_v47, %v5887_v48 }
  0xbb   :  { %v9032_v37 = vpack.c.b16 %v779_v9, %v779_v9  ;;  %v9036_v46 = vpack.c.b16 %v780_v15, %v780_v15  ;;  %v5615_v57 = vld [vmem:[#allocation5 + $0x1b0] sm:$0xf0]  ;;  %v8175_v58 = vld [vmem:[#allocation5 + $0x2a4] sm:$0xf]  ;;  %v5490_v62 = vor.u32 %v8111_v53, %v5487_v54 }
  0xbc   :  { %4277 = vmatpush.bf16.msra.mxu3 %v7838_v16  ;;  %4283 = vmatpush.bf16.msrb.mxu0 %v5522_v17  ;;  %v5743_v59 = vld [vmem:[#allocation5 + $0x2b0] sm:$0xf0]  ;;  %v8207_v60 = vld [vmem:[#allocation5 + $0x3a4] sm:$0xf]  ;;  %v5618_v63 = vor.u32 %v8143_v55, %v5615_v57 }
  0xbd   :  { %4296 = vmatpush.bf16.msrb.mxu1 %v5650_v24  ;;  %4239 = vmatmul.bf16.vlgmr.msra.gmra.mxu0 %v9032_v37  ;;  %v5871_v61 = vld [vmem:[#allocation5 + $0x3b0] sm:$0xf0]  ;;  %v5746_v0 = vor.u32 %v8175_v58, %v5743_v59  ;;  %v8107_v1 = vld [vmem:[#allocation5 + $0x84] sm:$0xf] }
  0xbe   :  { %4309 = vmatpush.bf16.msrb.mxu2 %v5778_v26  ;;  %4252 = vmatmul.bf16.vlgmr.msra.gmra.mxu1 %v9036_v46  ;;  %v5471_v2 = vld [vmem:[#allocation5 + $0x90] sm:$0xf0]  ;;  %v8139_v3 = vld [vmem:[#allocation5 + $0x184] sm:$0xf]  ;;  %v5874_v4 = vor.u32 %v8207_v60, %v5871_v61  ;;  %v743_v26 = vld [vmem:[#allocation7] sm:$0xf] }
  0xbf   :  { %4265 = vmatmul.bf16.vlgmr.msra.gmra.mxu2 %v9034_v45  ;;  %4278 = vmatmul.bf16.vlgmr.msra.gmra.mxu3 %v9038_v49  ;;  %v5599_v5 = vld [vmem:[#allocation5 + $0x190] sm:$0xf0]  ;;  %v8171_v6 = vld [vmem:[#allocation5 + $0x284] sm:$0xf]  ;;  %v5474_v10 = vor.u32 %v8107_v1, %v5471_v2  ;;  %v745_v48 = vperm.slane %v743_v26, 0 }
  0xc0   :  { %4322 = vmatpush.bf16.msrb.mxu3 %v5906_v36  ;;  %4284 = vmatpush.bf16.msrb.mxu0 %v5506_v50  ;;  %v5727_v7 = vld [vmem:[#allocation5 + $0x290] sm:$0xf0]  ;;  %v8203_v8 = vld [vmem:[#allocation5 + $0x384] sm:$0xf]  ;;  %v5602_v12 = vor.u32 %v8139_v3, %v5599_v5 }
  0xc1   :  { %4297 = vmatpush.bf16.msrb.mxu1 %v5634_v51  ;;  %v5855_v9 = vld [vmem:[#allocation5 + $0x390] sm:$0xf0]  ;;  %v8103_v11 = vld [vmem:[#allocation5 + $0x64] sm:$0xf]  ;;  %v5730_v13 = vor.u32 %v8171_v6, %v5727_v7 }
  0xc2   :  { %4310 = vmatpush.bf16.msrb.mxu2 %v5762_v52  ;;  %v5455_v14 = vld [vmem:[#allocation5 + $0x70] sm:$0xf0]  ;;  %v8135_v15 = vld [vmem:[#allocation5 + $0x164] sm:$0xf]  ;;  %v5858_v17 = vor.u32 %v8203_v8, %v5855_v9 }
  0xc3   :  { %v5583_v16 = vld [vmem:[#allocation5 + $0x170] sm:$0xf0]  ;;  %v8167_v21 = vld [vmem:[#allocation5 + $0x264] sm:$0xf]  ;;  %v5458_v34 = vor.u32 %v8103_v11, %v5455_v14 }
  0xc4   :  { %4323 = vmatpush.bf16.msrb.mxu3 %v5890_v56  ;;  %4285 = vmatpush.bf16.msrb.mxu0 %v5490_v62  ;;  %v5711_v24 = vld [vmem:[#allocation5 + $0x270] sm:$0xf0]  ;;  %v8199_v27 = vld [vmem:[#allocation5 + $0x364] sm:$0xf]  ;;  %v5586_v39 = vor.u32 %v8135_v15, %v5583_v16  ;;  %v4058_v16 = vpop.f32.mrf.mxu2 }
  0xc5   :  { %4298 = vmatpush.bf16.msrb.mxu1 %v5618_v63  ;;  %v5839_v32 = vld [vmem:[#allocation5 + $0x370] sm:$0xf0]  ;;  %v8099_v36 = vld [vmem:[#allocation5 + $0x44] sm:$0xf]  ;;  %v5714_v40 = vor.u32 %v8167_v21, %v5711_v24  ;;  %v4032_v57 = vpop.f32.mrf.mxu0 }
  0xc6   :  { %4311 = vmatpush.bf16.msrb.mxu2 %v5746_v0  ;;  %v5439_v43 = vld [vmem:[#allocation5 + $0x50] sm:$0xf0]  ;;  %v8131_v47 = vld [vmem:[#allocation5 + $0x144] sm:$0xf]  ;;  %v5842_v50 = vor.u32 %v8199_v27, %v5839_v32  ;;  %v4033_v63 = vadd.f32 %v4032_v57, %v745_v48  ;;  %v4045_v0 = vpop.f32.mrf.mxu1  ;;  %v4071_v32 = vpop.f32.mrf.mxu3 }
  0xc7   :  { %v5567_v51 = vld [vmem:[#allocation5 + $0x150] sm:$0xf0]  ;;  %v8163_v52 = vld [vmem:[#allocation5 + $0x244] sm:$0xf]  ;;  %v5442_v56 = vor.u32 %v8099_v36, %v5439_v43 }
  0xc8   :  { %4324 = vmatpush.bf16.msrb.mxu3 %v5874_v4  ;;  %4286 = vmatpush.bf16.msrb.mxu0 %v5474_v10  ;;  %v5695_v53 = vld [vmem:[#allocation5 + $0x250] sm:$0xf0]  ;;  %v8195_v54 = vld [vmem:[#allocation5 + $0x344] sm:$0xf]  ;;  %v5570_v58 = vor.u32 %v8131_v47, %v5567_v51  ;;  %v4046_v7 = vadd.f32 %v4045_v0, %v4033_v63 }
  0xc9   :  { %4299 = vmatpush.bf16.msrb.mxu1 %v5602_v12  ;;  %v5823_v55 = vld [vmem:[#allocation5 + $0x350] sm:$0xf0]  ;;  %v5698_v59 = vor.u32 %v8163_v52, %v5695_v53  ;;  %v8095_v60 = vld [vmem:[#allocation5 + $0x24] sm:$0xf] }
  0xca   :  { %4312 = vmatpush.bf16.msrb.mxu2 %v5730_v13  ;;  %v5423_v61 = vld [vmem:[#allocation5 + $0x30] sm:$0xf0]  ;;  %v8127_v62 = vld [vmem:[#allocation5 + $0x124] sm:$0xf]  ;;  %v5826_v1 = vor.u32 %v8195_v54, %v5823_v55  ;;  %v4059_v27 = vadd.f32 %v4058_v16, %v4046_v7 }
  0xcb   :  { %v5551_v2 = vld [vmem:[#allocation5 + $0x130] sm:$0xf0]  ;;  %v8159_v3 = vld [vmem:[#allocation5 + $0x224] sm:$0xf]  ;;  %v5426_v8 = vor.u32 %v8095_v60, %v5423_v61 }
  0xcc   :  { %4325 = vmatpush.bf16.msrb.mxu3 %v5858_v17  ;;  %4287 = vmatpush.bf16.msrb.mxu0 %v5458_v34  ;;  %v5679_v4 = vld [vmem:[#allocation5 + $0x230] sm:$0xf0]  ;;  %v8191_v5 = vld [vmem:[#allocation5 + $0x324] sm:$0xf]  ;;  %v5554_v11 = vor.u32 %v8127_v62, %v5551_v2 }
  0xcd   :  { %4300 = vmatpush.bf16.msrb.mxu1 %v5586_v39  ;;  %v5807_v6 = vld [vmem:[#allocation5 + $0x330] sm:$0xf0]  ;;  %v8091_v9 = vld [vmem:[#allocation5 + $0x4] sm:$0xf]  ;;  %v5682_v12 = vor.u32 %v8159_v3, %v5679_v4  ;;  %v4034_v51 = vpop.f32.mrf.mxu0 }
  0xce   :  { %4313 = vmatpush.bf16.msrb.mxu2 %v5714_v40  ;;  %v5407_v10 = vld [vmem:[#allocation5 + $0x10] sm:$0xf0]  ;;  %v8123_v13 = vld [vmem:[#allocation5 + $0x104] sm:$0xf]  ;;  %v5810_v17 = vor.u32 %v8191_v5, %v5807_v6  ;;  %v4060_v6 = vpop.f32.mrf.mxu2 }
  0xcf   :  { %v5535_v14 = vld [vmem:[#allocation5 + $0x110] sm:$0xf0]  ;;  %v8155_v15 = vld [vmem:[#allocation5 + $0x204] sm:$0xf]  ;;  %v5410_v40 = vor.u32 %v8091_v9, %v5407_v10 }
  0xd0   :  { %4326 = vmatpush.bf16.msrb.mxu3 %v5842_v50  ;;  %4288 = vmatpush.bf16.msrb.mxu0 %v5442_v56  ;;  %v5663_v21 = vld [vmem:[#allocation5 + $0x210] sm:$0xf0]  ;;  %v8187_v24 = vld [vmem:[#allocation5 + $0x304] sm:$0xf]  ;;  %v9044_v50 = vadd.f32 %v4071_v32, %v4059_v27  ;;  %v5538_v52 = vor.u32 %v8123_v13, %v5535_v14  ;;  %v4047_v56 = vpop.f32.mrf.mxu1 }
  0xd1   :  { %4301 = vmatpush.bf16.msrb.mxu1 %v5570_v58  ;;  %v5791_v26 = vld [vmem:[#allocation5 + $0x310] sm:$0xf0]  ;;  %v8247_v34 = vld [vmem:[#allocation5 + $0x4e4] sm:$0xf]  ;;  %v5666_v53 = vor.u32 %v8155_v15, %v5663_v21 }
  0xd2   :  { %4314 = vmatpush.bf16.msrb.mxu2 %v5698_v59  ;;  %v6031_v36 = vld [vmem:[#allocation5 + $0x4f0] sm:$0xf0]  ;;  %v8279_v39 = vld [vmem:[#allocation5 + $0x5e4] sm:$0xf]  ;;  %v5794_v57 = vor.u32 %v8187_v24, %v5791_v26 }
  0xd3   :  { %v6159_v43 = vld [vmem:[#allocation5 + $0x5f0] sm:$0xf0]  ;;  %v8311_v47 = vld [vmem:[#allocation5 + $0x6e4] sm:$0xf]  ;;  %v6034_v58 = vor.u32 %v8247_v34, %v6031_v36 }
  0xd4   :  { %4327 = vmatpush.bf16.msrb.mxu3 %v5826_v1  ;;  %4289 = vmatpush.bf16.msrb.mxu0 %v5426_v8  ;;  %v6287_v48 = vld [vmem:[#allocation5 + $0x6f0] sm:$0xf0]  ;;  %v8343_v54 = vld [vmem:[#allocation5 + $0x7e4] sm:$0xf]  ;;  %v6162_v59 = vor.u32 %v8279_v39, %v6159_v43  ;;  %v4073_v8 = vpop.f32.mrf.mxu3 }
  0xd5   :  { %4302 = vmatpush.bf16.msrb.mxu1 %v5554_v11  ;;  %v6415_v55 = vld [vmem:[#allocation5 + $0x7f0] sm:$0xf0]  ;;  %v6290_v60 = vor.u32 %v8311_v47, %v6287_v48  ;;  %v8243_v61 = vld [vmem:[#allocation5 + $0x4c4] sm:$0xf] }
  0xd6   :  { %4315 = vmatpush.bf16.msrb.mxu2 %v5682_v12  ;;  %v6015_v62 = vld [vmem:[#allocation5 + $0x4d0] sm:$0xf0]  ;;  %v8275_v63 = vld [vmem:[#allocation5 + $0x5c4] sm:$0xf]  ;;  %v6418_v0 = vor.u32 %v8343_v54, %v6415_v55 }
  0xd7   :  { %v6143_v1 = vld [vmem:[#allocation5 + $0x5d0] sm:$0xf0]  ;;  %v8307_v2 = vld [vmem:[#allocation5 + $0x6c4] sm:$0xf]  ;;  %v6018_v7 = vor.u32 %v8243_v61, %v6015_v62 }
  0xd8   :  { %4328 = vmatpush.bf16.msrb.mxu3 %v5810_v17  ;;  %4290 = vmatpush.bf16.msrb.mxu0 %v5410_v40  ;;  %v6271_v3 = vld [vmem:[#allocation5 + $0x6d0] sm:$0xf0]  ;;  %v8339_v4 = vld [vmem:[#allocation5 + $0x7c4] sm:$0xf]  ;;  %v6146_v9 = vor.u32 %v8275_v63, %v6143_v1 }
  0xd9   :  { %4303 = vmatpush.bf16.msrb.mxu1 %v5538_v52  ;;  %v6399_v5 = vld [vmem:[#allocation5 + $0x7d0] sm:$0xf0]  ;;  %v6274_v10 = vor.u32 %v8307_v2, %v6271_v3  ;;  %v8239_v11 = vld [vmem:[#allocation5 + $0x4a4] sm:$0xf]  ;;  %v4084_v54 = vpop.f32.mrf.mxu0 }
  0xda   :  { %4316 = vmatpush.bf16.msrb.mxu2 %v5666_v53  ;;  %v5999_v12 = vld [vmem:[#allocation5 + $0x4b0] sm:$0xf0]  ;;  %v8271_v13 = vld [vmem:[#allocation5 + $0x5a4] sm:$0xf]  ;;  %v6402_v14 = vor.u32 %v8339_v4, %v6399_v5 }
  0xdb   :  { %v6127_v15 = vld [vmem:[#allocation5 + $0x5b0] sm:$0xf0]  ;;  %v8303_v16 = vld [vmem:[#allocation5 + $0x6a4] sm:$0xf]  ;;  %4291 = vmatmul.bf16.vlgmr.msrb.gmra.mxu0 %v8986_v19  ;;  %v6002_v26 = vor.u32 %v8239_v11, %v5999_v12  ;;  %v4097_v61 = vpop.f32.mrf.mxu1 }
  0xdc   :  { %4329 = vmatpush.bf16.msrb.mxu3 %v5794_v57  ;;  %4335 = vmatpush.bf16.msra.mxu0 %v6034_v58  ;;  %v6255_v17 = vld [vmem:[#allocation5 + $0x6b0] sm:$0xf0]  ;;  %v8335_v21 = vld [vmem:[#allocation5 + $0x7a4] sm:$0xf]  ;;  %v6130_v27 = vor.u32 %v8271_v13, %v6127_v15 }
  0xdd   :  { %4348 = vmatpush.bf16.msra.mxu1 %v6162_v59  ;;  %4317 = vmatmul.bf16.vlgmr.msrb.gmra.mxu2 %v8984_v18  ;;  %v6383_v24 = vld [vmem:[#allocation5 + $0x7b0] sm:$0xf0]  ;;  %v6258_v32 = vor.u32 %v8303_v16, %v6255_v17  ;;  %v8235_v34 = vld [vmem:[#allocation5 + $0x484] sm:$0xf] }
  0xde   :  { %4361 = vmatpush.bf16.msra.mxu2 %v6290_v60  ;;  %4304 = vmatmul.bf16.vlgmr.msrb.gmra.mxu1 %v8990_v22  ;;  %v5983_v36 = vld [vmem:[#allocation5 + $0x490] sm:$0xf0]  ;;  %v8267_v39 = vld [vmem:[#allocation5 + $0x584] sm:$0xf]  ;;  %v6386_v40 = vor.u32 %v8335_v21, %v6383_v24  ;;  %v4085_v60 = vadd.f32 %v4084_v54, %v9044_v50 }
  0xdf   :  { %4330 = vmatmul.bf16.vlgmr.msrb.gmra.mxu3 %v8988_v20  ;;  %v6111_v43 = vld [vmem:[#allocation5 + $0x590] sm:$0xf0]  ;;  %v8299_v47 = vld [vmem:[#allocation5 + $0x684] sm:$0xf]  ;;  %v5986_v53 = vor.u32 %v8235_v34, %v5983_v36  ;;  %v4110_v11 = vpop.f32.mrf.mxu2 }
  0xe0   :  { %4374 = vmatpush.bf16.msra.mxu3 %v6418_v0  ;;  %4336 = vmatpush.bf16.msra.mxu0 %v6018_v7  ;;  %v6239_v48 = vld [vmem:[#allocation5 + $0x690] sm:$0xf0]  ;;  %v8331_v51 = vld [vmem:[#allocation5 + $0x784] sm:$0xf]  ;;  %v6114_v55 = vor.u32 %v8267_v39, %v6111_v43  ;;  %v4098_v4 = vadd.f32 %v4097_v61, %v4085_v60 }
  0xe1   :  { %4349 = vmatpush.bf16.msra.mxu1 %v6146_v9  ;;  %v6367_v52 = vld [vmem:[#allocation5 + $0x790] sm:$0xf0]  ;;  %v6242_v56 = vor.u32 %v8299_v47, %v6239_v48  ;;  %v8231_v57 = vld [vmem:[#allocation5 + $0x464] sm:$0xf] }
  0xe2   :  { %4362 = vmatpush.bf16.msra.mxu2 %v6274_v10  ;;  %v5967_v58 = vld [vmem:[#allocation5 + $0x470] sm:$0xf0]  ;;  %v8263_v59 = vld [vmem:[#allocation5 + $0x564] sm:$0xf]  ;;  %v6370_v62 = vor.u32 %v8331_v51, %v6367_v52  ;;  %v4111_v15 = vadd.f32 %v4110_v11, %v4098_v4  ;;  %v4123_v16 = vpop.f32.mrf.mxu3 }
  0xe3   :  { %v6095_v63 = vld [vmem:[#allocation5 + $0x570] sm:$0xf0]  ;;  %v8295_v0 = vld [vmem:[#allocation5 + $0x664] sm:$0xf]  ;;  %v5970_v5 = vor.u32 %v8231_v57, %v5967_v58  ;;  %v4099_v43 = vpop.f32.mrf.mxu1 }
  0xe4   :  { %4375 = vmatpush.bf16.msra.mxu3 %v6402_v14  ;;  %4337 = vmatpush.bf16.msra.mxu0 %v6002_v26  ;;  %v6223_v1 = vld [vmem:[#allocation5 + $0x670] sm:$0xf0]  ;;  %v8327_v2 = vld [vmem:[#allocation5 + $0x764] sm:$0xf]  ;;  %v6098_v6 = vor.u32 %v8263_v59, %v6095_v63  ;;  %v9051_v26 = vadd.f32 %v4123_v16, %v4111_v15 }
  0xe5   :  { %4350 = vmatpush.bf16.msra.mxu1 %v6130_v27  ;;  %v6351_v3 = vld [vmem:[#allocation5 + $0x770] sm:$0xf0]  ;;  %v6226_v7 = vor.u32 %v8295_v0, %v6223_v1  ;;  %v8227_v8 = vld [vmem:[#allocation5 + $0x444] sm:$0xf]  ;;  %v4086_v27 = vpop.f32.mrf.mxu0 }
  0xe6   :  { %4363 = vmatpush.bf16.msra.mxu2 %v6258_v32  ;;  %v5951_v9 = vld [vmem:[#allocation5 + $0x450] sm:$0xf0]  ;;  %v8259_v10 = vld [vmem:[#allocation5 + $0x544] sm:$0xf]  ;;  %v6354_v50 = vor.u32 %v8327_v2, %v6351_v3 }
  0xe7   :  { %v6079_v12 = vld [vmem:[#allocation5 + $0x550] sm:$0xf0]  ;;  %v8291_v13 = vld [vmem:[#allocation5 + $0x644] sm:$0xf]  ;;  %v5954_v24 = vor.u32 %v8227_v8, %v5951_v9  ;;  %v4112_v63 = vpop.f32.mrf.mxu2 }
  0xe8   :  { %4376 = vmatpush.bf16.msra.mxu3 %v6386_v40  ;;  %4338 = vmatpush.bf16.msra.mxu0 %v5986_v53  ;;  %v6207_v14 = vld [vmem:[#allocation5 + $0x650] sm:$0xf0]  ;;  %v8323_v17 = vld [vmem:[#allocation5 + $0x744] sm:$0xf]  ;;  %v6082_v32 = vor.u32 %v8259_v10, %v6079_v12 }
  0xe9   :  { %4351 = vmatpush.bf16.msra.mxu1 %v6114_v55  ;;  %v6335_v21 = vld [vmem:[#allocation5 + $0x750] sm:$0xf0]  ;;  %v6210_v34 = vor.u32 %v8291_v13, %v6207_v14  ;;  %v8223_v36 = vld [vmem:[#allocation5 + $0x424] sm:$0xf] }
  0xea   :  { %4364 = vmatpush.bf16.msra.mxu2 %v6242_v56  ;;  %v5935_v39 = vld [vmem:[#allocation5 + $0x430] sm:$0xf0]  ;;  %v8255_v40 = vld [vmem:[#allocation5 + $0x524] sm:$0xf]  ;;  %v6338_v47 = vor.u32 %v8323_v17, %v6335_v21  ;;  %v4125_v4 = vpop.f32.mrf.mxu3 }
  0xeb   :  { %v6063_v48 = vld [vmem:[#allocation5 + $0x530] sm:$0xf0]  ;;  %v8287_v51 = vld [vmem:[#allocation5 + $0x624] sm:$0xf]  ;;  %v5938_v55 = vor.u32 %v8223_v36, %v5935_v39 }
  0xec   :  { %4377 = vmatpush.bf16.msra.mxu3 %v6370_v62  ;;  %4339 = vmatpush.bf16.msra.mxu0 %v5970_v5  ;;  %v6191_v52 = vld [vmem:[#allocation5 + $0x630] sm:$0xf0]  ;;  %v8319_v53 = vld [vmem:[#allocation5 + $0x724] sm:$0xf]  ;;  %v6066_v58 = vor.u32 %v8255_v40, %v6063_v48 }
  0xed   :  { %4352 = vmatpush.bf16.msra.mxu1 %v6098_v6  ;;  %v6319_v54 = vld [vmem:[#allocation5 + $0x730] sm:$0xf0]  ;;  %v8219_v56 = vld [vmem:[#allocation5 + $0x404] sm:$0xf]  ;;  %v6194_v59 = vor.u32 %v8287_v51, %v6191_v52 }
  0xee   :  { %4365 = vmatpush.bf16.msra.mxu2 %v6226_v7  ;;  %v5919_v57 = vld [vmem:[#allocation5 + $0x410] sm:$0xf0]  ;;  %v8251_v60 = vld [vmem:[#allocation5 + $0x504] sm:$0xf]  ;;  %v6322_v0 = vor.u32 %v8319_v53, %v6319_v54 }
  0xef   :  { %v6047_v61 = vld [vmem:[#allocation5 + $0x510] sm:$0xf0]  ;;  %v8283_v62 = vld [vmem:[#allocation5 + $0x604] sm:$0xf]  ;;  %v5922_v8 = vor.u32 %v8219_v56, %v5919_v57 }
  0xf0   :  { %4378 = vmatpush.bf16.msra.mxu3 %v6354_v50  ;;  %4340 = vmatpush.bf16.msra.mxu0 %v5954_v24  ;;  %v6175_v1 = vld [vmem:[#allocation5 + $0x610] sm:$0xf0]  ;;  %v8315_v2 = vld [vmem:[#allocation5 + $0x704] sm:$0xf]  ;;  %v6050_v50 = vor.u32 %v8251_v60, %v6047_v61 }
  0xf1   :  { %4353 = vmatpush.bf16.msra.mxu1 %v6082_v32  ;;  %v6303_v3 = vld [vmem:[#allocation5 + $0x710] sm:$0xf0]  ;;  %v8375_v5 = vld [vmem:[#allocation5 + $0x8e4] sm:$0xf]  ;;  %v6178_v12 = vor.u32 %v8283_v62, %v6175_v1 }
  0xf2   :  { %4366 = vmatpush.bf16.msra.mxu2 %v6210_v34  ;;  %v6543_v6 = vld [vmem:[#allocation5 + $0x8f0] sm:$0xf0]  ;;  %v8407_v7 = vld [vmem:[#allocation5 + $0x9e4] sm:$0xf]  ;;  %v6306_v15 = vor.u32 %v8315_v2, %v6303_v3 }
  0xf3   :  { %v6671_v9 = vld [vmem:[#allocation5 + $0x9f0] sm:$0xf0]  ;;  %v8439_v10 = vld [vmem:[#allocation5 + $0xae4] sm:$0xf]  ;;  %v6546_v16 = vor.u32 %v8375_v5, %v6543_v6 }
  0xf4   :  { %4379 = vmatpush.bf16.msra.mxu3 %v6338_v47  ;;  %4341 = vmatpush.bf16.msra.mxu0 %v5938_v55  ;;  %v6799_v11 = vld [vmem:[#allocation5 + $0xaf0] sm:$0xf0]  ;;  %v8471_v13 = vld [vmem:[#allocation5 + $0xbe4] sm:$0xf]  ;;  %v6674_v17 = vor.u32 %v8407_v7, %v6671_v9 }
  0xf5   :  { %4354 = vmatpush.bf16.msra.mxu1 %v6066_v58  ;;  %v6927_v14 = vld [vmem:[#allocation5 + $0xbf0] sm:$0xf0]  ;;  %v6802_v21 = vor.u32 %v8439_v10, %v6799_v11  ;;  %v8371_v24 = vld [vmem:[#allocation5 + $0x8c4] sm:$0xf] }
  0xf6   :  { %4367 = vmatpush.bf16.msra.mxu2 %v6194_v59  ;;  %v6527_v27 = vld [vmem:[#allocation5 + $0x8d0] sm:$0xf0]  ;;  %v8403_v32 = vld [vmem:[#allocation5 + $0x9c4] sm:$0xf]  ;;  %v6930_v34 = vor.u32 %v8471_v13, %v6927_v14 }
  0xf7   :  { %v6655_v36 = vld [vmem:[#allocation5 + $0x9d0] sm:$0xf0]  ;;  %v8435_v39 = vld [vmem:[#allocation5 + $0xac4] sm:$0xf]  ;;  %v6530_v48 = vor.u32 %v8371_v24, %v6527_v27 }
  0xf8   :  { %4380 = vmatpush.bf16.msra.mxu3 %v6322_v0  ;;  %4342 = vmatpush.bf16.msra.mxu0 %v5922_v8  ;;  %v6783_v40 = vld [vmem:[#allocation5 + $0xad0] sm:$0xf0]  ;;  %v8467_v43 = vld [vmem:[#allocation5 + $0xbc4] sm:$0xf]  ;;  %v6658_v51 = vor.u32 %v8403_v32, %v6655_v36 }
  0xf9   :  { %4355 = vmatpush.bf16.msra.mxu1 %v6050_v50  ;;  %v6911_v47 = vld [vmem:[#allocation5 + $0xbd0] sm:$0xf0]  ;;  %v6786_v52 = vor.u32 %v8435_v39, %v6783_v40  ;;  %v8367_v53 = vld [vmem:[#allocation5 + $0x8a4] sm:$0xf] }
  0xfa   :  { %4368 = vmatpush.bf16.msra.mxu2 %v6178_v12  ;;  %v6511_v54 = vld [vmem:[#allocation5 + $0x8b0] sm:$0xf0]  ;;  %v8399_v55 = vld [vmem:[#allocation5 + $0x9a4] sm:$0xf]  ;;  %v6914_v56 = vor.u32 %v8467_v43, %v6911_v47  ;;  %v4136_v8 = vpop.f32.mrf.mxu0 }
  0xfb   :  { %v6639_v57 = vld [vmem:[#allocation5 + $0x9b0] sm:$0xf0]  ;;  %v8431_v58 = vld [vmem:[#allocation5 + $0xaa4] sm:$0xf]  ;;  %4343 = vmatmul.bf16.vlgmr.msra.gmra.mxu0 %v8998_v41  ;;  %v6514_v62 = vor.u32 %v8367_v53, %v6511_v54  ;;  %v4137_v11 = vadd.f32 %v4136_v8, %v9051_v26  ;;  %v4149_v12 = vpop.f32.mrf.mxu1 }
  0xfc   :  { %4381 = vmatpush.bf16.msra.mxu3 %v6306_v15  ;;  %4387 = vmatpush.bf16.msrb.mxu0 %v6546_v16  ;;  %v6767_v59 = vld [vmem:[#allocation5 + $0xab0] sm:$0xf0]  ;;  %v8463_v60 = vld [vmem:[#allocation5 + $0xba4] sm:$0xf]  ;;  %v6642_v63 = vor.u32 %v8399_v55, %v6639_v57 }
  0xfd   :  { %4400 = vmatpush.bf16.msrb.mxu1 %v6674_v17  ;;  %4369 = vmatmul.bf16.vlgmr.msra.gmra.mxu2 %v8996_v38  ;;  %v6895_v61 = vld [vmem:[#allocation5 + $0xbb0] sm:$0xf0]  ;;  %v6770_v0 = vor.u32 %v8431_v58, %v6767_v59  ;;  %v8363_v1 = vld [vmem:[#allocation5 + $0x884] sm:$0xf]  ;;  %v4150_v24 = vadd.f32 %v4149_v12, %v4137_v11 }
  0xfe   :  { %4413 = vmatpush.bf16.msrb.mxu2 %v6802_v21  ;;  %4356 = vmatmul.bf16.vlgmr.msra.gmra.mxu1 %v9002_v44  ;;  %v6495_v2 = vld [vmem:[#allocation5 + $0x890] sm:$0xf0]  ;;  %v8395_v3 = vld [vmem:[#allocation5 + $0x984] sm:$0xf]  ;;  %v6898_v4 = vor.u32 %v8463_v60, %v6895_v61 }
  0xff   :  { %4382 = vmatmul.bf16.vlgmr.msra.gmra.mxu3 %v9000_v42  ;;  %v6623_v5 = vld [vmem:[#allocation5 + $0x990] sm:$0xf0]  ;;  %v8427_v6 = vld [vmem:[#allocation5 + $0xa84] sm:$0xf]  ;;  %v6498_v50 = vor.u32 %v8363_v1, %v6495_v2  ;;  %v4162_v53 = vpop.f32.mrf.mxu2 }
 0x100   :  { %4426 = vmatpush.bf16.msrb.mxu3 %v6930_v34  ;;  %4388 = vmatpush.bf16.msrb.mxu0 %v6530_v48  ;;  %v6751_v7 = vld [vmem:[#allocation5 + $0xa90] sm:$0xf0]  ;;  %v8459_v9 = vld [vmem:[#allocation5 + $0xb84] sm:$0xf]  ;;  %v6626_v13 = vor.u32 %v8395_v3, %v6623_v5  ;;  %v4163_v57 = vadd.f32 %v4162_v53, %v4150_v24 }
 0x101   :  { %4401 = vmatpush.bf16.msrb.mxu1 %v6658_v51  ;;  %v6879_v10 = vld [vmem:[#allocation5 + $0xb90] sm:$0xf0]  ;;  %v6754_v14 = vor.u32 %v8427_v6, %v6751_v7  ;;  %v8359_v15 = vld [vmem:[#allocation5 + $0x864] sm:$0xf] }
 0x102   :  { %4414 = vmatpush.bf16.msrb.mxu2 %v6786_v52  ;;  %v6479_v16 = vld [vmem:[#allocation5 + $0x870] sm:$0xf0]  ;;  %v8391_v17 = vld [vmem:[#allocation5 + $0x964] sm:$0xf]  ;;  %v6882_v21 = vor.u32 %v8459_v9, %v6879_v10  ;;  %v4138_v61 = vpop.f32.mrf.mxu0 }
 0x103   :  { %v6607_v27 = vld [vmem:[#allocation5 + $0x970] sm:$0xf0]  ;;  %v8423_v32 = vld [vmem:[#allocation5 + $0xa64] sm:$0xf]  ;;  %v6482_v40 = vor.u32 %v8359_v15, %v6479_v16  ;;  %v4175_v58 = vpop.f32.mrf.mxu3 }
 0x104   :  { %4427 = vmatpush.bf16.msrb.mxu3 %v6914_v56  ;;  %4389 = vmatpush.bf16.msrb.mxu0 %v6514_v62  ;;  %v6735_v34 = vld [vmem:[#allocation5 + $0xa70] sm:$0xf0]  ;;  %v8455_v36 = vld [vmem:[#allocation5 + $0xb64] sm:$0xf]  ;;  %v6610_v26 = vor.u32 %v8391_v17, %v6607_v27 }
 0x105   :  { %4402 = vmatpush.bf16.msrb.mxu1 %v6642_v63  ;;  %v6863_v39 = vld [vmem:[#allocation5 + $0xb70] sm:$0xf0]  ;;  %v6738_v43 = vor.u32 %v8423_v32, %v6735_v34  ;;  %v8355_v47 = vld [vmem:[#allocation5 + $0x844] sm:$0xf]  ;;  %v4151_v63 = vpop.f32.mrf.mxu1 }
 0x106   :  { %4415 = vmatpush.bf16.msrb.mxu2 %v6770_v0  ;;  %v6463_v48 = vld [vmem:[#allocation5 + $0x850] sm:$0xf0]  ;;  %v8387_v51 = vld [vmem:[#allocation5 + $0x944] sm:$0xf]  ;;  %v6866_v52 = vor.u32 %v8455_v36, %v6863_v39  ;;  %v9058_v0 = vadd.f32 %v4175_v58, %v4163_v57 }
 0x107   :  { %v6591_v54 = vld [vmem:[#allocation5 + $0x950] sm:$0xf0]  ;;  %v8419_v55 = vld [vmem:[#allocation5 + $0xa44] sm:$0xf]  ;;  %v6466_v62 = vor.u32 %v8355_v47, %v6463_v48  ;;  %v4164_v36 = vpop.f32.mrf.mxu2 }
 0x108   :  { %4428 = vmatpush.bf16.msrb.mxu3 %v6898_v4  ;;  %4390 = vmatpush.bf16.msrb.mxu0 %v6498_v50  ;;  %v6719_v56 = vld [vmem:[#allocation5 + $0xa50] sm:$0xf0]  ;;  %v8451_v59 = vld [vmem:[#allocation5 + $0xb44] sm:$0xf]  ;;  %v6594_v1 = vor.u32 %v8387_v51, %v6591_v54 }
 0x109   :  { %4403 = vmatpush.bf16.msrb.mxu1 %v6626_v13  ;;  %v6847_v60 = vld [vmem:[#allocation5 + $0xb50] sm:$0xf0]  ;;  %v6722_v2 = vor.u32 %v8419_v55, %v6719_v56  ;;  %v8351_v3 = vld [vmem:[#allocation5 + $0x824] sm:$0xf] }
 0x10a   :  { %4416 = vmatpush.bf16.msrb.mxu2 %v6754_v14  ;;  %v6447_v4 = vld [vmem:[#allocation5 + $0x830] sm:$0xf0]  ;;  %v8383_v5 = vld [vmem:[#allocation5 + $0x924] sm:$0xf]  ;;  %v6850_v6 = vor.u32 %v8451_v59, %v6847_v60 }
 0x10b   :  { %v6575_v7 = vld [vmem:[#allocation5 + $0x930] sm:$0xf0]  ;;  %v8415_v8 = vld [vmem:[#allocation5 + $0xa24] sm:$0xf]  ;;  %v6450_v50 = vor.u32 %v8351_v3, %v6447_v4 }
 0x10c   :  { %4429 = vmatpush.bf16.msrb.mxu3 %v6882_v21  ;;  %4391 = vmatpush.bf16.msrb.mxu0 %v6482_v40  ;;  %v6703_v9 = vld [vmem:[#allocation5 + $0xa30] sm:$0xf0]  ;;  %v8447_v10 = vld [vmem:[#allocation5 + $0xb24] sm:$0xf]  ;;  %v6578_v14 = vor.u32 %v8383_v5, %v6575_v7 }
 0x10d   :  { %4404 = vmatpush.bf16.msrb.mxu1 %v6610_v26  ;;  %v6831_v11 = vld [vmem:[#allocation5 + $0xb30] sm:$0xf0]  ;;  %v8347_v12 = vld [vmem:[#allocation5 + $0x804] sm:$0xf]  ;;  %v6706_v15 = vor.u32 %v8415_v8, %v6703_v9 }
 0x10e   :  { %4417 = vmatpush.bf16.msrb.mxu2 %v6738_v43  ;;  %v6431_v13 = vld [vmem:[#allocation5 + $0x810] sm:$0xf0]  ;;  %v8379_v16 = vld [vmem:[#allocation5 + $0x904] sm:$0xf]  ;;  %v6834_v24 = vor.u32 %v8447_v10, %v6831_v11  ;;  %v4177_v43 = vpop.f32.mrf.mxu3 }
 0x10f   :  { %v6559_v17 = vld [vmem:[#allocation5 + $0x910] sm:$0xf0]  ;;  %v8411_v21 = vld [vmem:[#allocation5 + $0xa04] sm:$0xf]  ;;  %v6434_v47 = vor.u32 %v8347_v12, %v6431_v13 }
 0x110   :  { %4430 = vmatpush.bf16.msrb.mxu3 %v6866_v52  ;;  %4392 = vmatpush.bf16.msrb.mxu0 %v6466_v62  ;;  %v6687_v27 = vld [vmem:[#allocation5 + $0xa10] sm:$0xf0]  ;;  %v8443_v32 = vld [vmem:[#allocation5 + $0xb04] sm:$0xf]  ;;  %v6562_v53 = vor.u32 %v8379_v16, %v6559_v17 }
 0x111   :  { %4405 = vmatpush.bf16.msrb.mxu1 %v6594_v1  ;;  %v6815_v34 = vld [vmem:[#allocation5 + $0xb10] sm:$0xf0]  ;;  %v8503_v39 = vld [vmem:[#allocation5 + $0xce4] sm:$0xf]  ;;  %v6690_v54 = vor.u32 %v8411_v21, %v6687_v27 }
 0x112   :  { %4418 = vmatpush.bf16.msrb.mxu2 %v6722_v2  ;;  %v7055_v40 = vld [vmem:[#allocation5 + $0xcf0] sm:$0xf0]  ;;  %v8535_v26 = vld [vmem:[#allocation5 + $0xde4] sm:$0xf]  ;;  %v6818_v57 = vor.u32 %v8443_v32, %v6815_v34 }
 0x113   :  { %v7183_v48 = vld [vmem:[#allocation5 + $0xdf0] sm:$0xf0]  ;;  %v8567_v51 = vld [vmem:[#allocation5 + $0xee4] sm:$0xf]  ;;  %v7058_v58 = vor.u32 %v8503_v39, %v7055_v40 }
 0x114   :  { %4431 = vmatpush.bf16.msrb.mxu3 %v6850_v6  ;;  %4393 = vmatpush.bf16.msrb.mxu0 %v6450_v50  ;;  %v7311_v52 = vld [vmem:[#allocation5 + $0xef0] sm:$0xf0]  ;;  %v8599_v55 = vld [vmem:[#allocation5 + $0xfe4] sm:$0xf]  ;;  %v7186_v59 = vor.u32 %v8535_v26, %v7183_v48 }
 0x115   :  { %4406 = vmatpush.bf16.msrb.mxu1 %v6578_v14  ;;  %v7439_v56 = vld [vmem:[#allocation5 + $0xff0] sm:$0xf0]  ;;  %v7314_v60 = vor.u32 %v8567_v51, %v7311_v52  ;;  %v8499_v61 = vld [vmem:[#allocation5 + $0xcc4] sm:$0xf] }
 0x116   :  { %4419 = vmatpush.bf16.msrb.mxu2 %v6706_v15  ;;  %v7039_v62 = vld [vmem:[#allocation5 + $0xcd0] sm:$0xf0]  ;;  %v8531_v63 = vld [vmem:[#allocation5 + $0xdc4] sm:$0xf]  ;;  %v7442_v1 = vor.u32 %v8599_v55, %v7439_v56 }
 0x117   :  { %v7167_v2 = vld [vmem:[#allocation5 + $0xdd0] sm:$0xf0]  ;;  %v8563_v3 = vld [vmem:[#allocation5 + $0xec4] sm:$0xf]  ;;  %v7042_v7 = vor.u32 %v8499_v61, %v7039_v62 }
 0x118   :  { %4432 = vmatpush.bf16.msrb.mxu3 %v6834_v24  ;;  %4394 = vmatpush.bf16.msrb.mxu0 %v6434_v47  ;;  %v7295_v4 = vld [vmem:[#allocation5 + $0xed0] sm:$0xf0]  ;;  %v8595_v5 = vld [vmem:[#allocation5 + $0xfc4] sm:$0xf]  ;;  %v7170_v8 = vor.u32 %v8531_v63, %v7167_v2 }
 0x119   :  { %4407 = vmatpush.bf16.msrb.mxu1 %v6562_v53  ;;  %v7423_v6 = vld [vmem:[#allocation5 + $0xfd0] sm:$0xf0]  ;;  %v7298_v9 = vor.u32 %v8563_v3, %v7295_v4  ;;  %v8495_v10 = vld [vmem:[#allocation5 + $0xca4] sm:$0xf] }
 0x11a   :  { %4420 = vmatpush.bf16.msrb.mxu2 %v6690_v54  ;;  %v7023_v11 = vld [vmem:[#allocation5 + $0xcb0] sm:$0xf0]  ;;  %v8527_v50 = vld [vmem:[#allocation5 + $0xda4] sm:$0xf]  ;;  %v7426_v12 = vor.u32 %v8595_v5, %v7423_v6  ;;  %v4188_v47 = vpop.f32.mrf.mxu0  ;;  %v4201_v54 = vpop.f32.mrf.mxu1 }
 0x11b   :  { %4395 = vmatmul.bf16.vlgmr.msrb.gmra.mxu0 %v9008_v25  ;;  %v7151_v13 = vld [vmem:[#allocation5 + $0xdb0] sm:$0xf0]  ;;  %v8559_v14 = vld [vmem:[#allocation5 + $0xea4] sm:$0xf]  ;;  %v7026_v21 = vor.u32 %v8495_v10, %v7023_v11  ;;  %v4189_v52 = vadd.f32 %v4188_v47, %v9058_v0 }
 0x11c   :  { %4433 = vmatpush.bf16.msrb.mxu3 %v6818_v57  ;;  %4439 = vmatpush.bf16.msra.mxu0 %v7058_v58  ;;  %v7279_v15 = vld [vmem:[#allocation5 + $0xeb0] sm:$0xf0]  ;;  %v8591_v16 = vld [vmem:[#allocation5 + $0xfa4] sm:$0xf]  ;;  %v7154_v24 = vor.u32 %v8527_v50, %v7151_v13 }
 0x11d   :  { %4452 = vmatpush.bf16.msra.mxu1 %v7186_v59  ;;  %4421 = vmatmul.bf16.vlgmr.msrb.gmra.mxu2 %v9010_v29  ;;  %v7407_v17 = vld [vmem:[#allocation5 + $0xfb0] sm:$0xf0]  ;;  %v7282_v27 = vor.u32 %v8559_v14, %v7279_v15  ;;  %v8491_v32 = vld [vmem:[#allocation5 + $0xc84] sm:$0xf]  ;;  %v4202_v61 = vadd.f32 %v4201_v54, %v4189_v52 }
 0x11e   :  { %4465 = vmatpush.bf16.msra.mxu2 %v7314_v60  ;;  %4408 = vmatmul.bf16.vlgmr.msrb.gmra.mxu1 %v9012_v30  ;;  %v7007_v34 = vld [vmem:[#allocation5 + $0xc90] sm:$0xf0]  ;;  %v8523_v36 = vld [vmem:[#allocation5 + $0xd84] sm:$0xf]  ;;  %v7410_v39 = vor.u32 %v8591_v16, %v7407_v17 }
 0x11f   :  { %4434 = vmatmul.bf16.vlgmr.msrb.gmra.mxu3 %v9014_v33  ;;  %v7135_v40 = vld [vmem:[#allocation5 + $0xd90] sm:$0xf0]  ;;  %v8555_v26 = vld [vmem:[#allocation5 + $0xe84] sm:$0xf]  ;;  %v7010_v53 = vor.u32 %v8491_v32, %v7007_v34 }
 0x120   :  { %4478 = vmatpush.bf16.msra.mxu3 %v7442_v1  ;;  %4440 = vmatpush.bf16.msra.mxu0 %v7042_v7  ;;  %v7263_v43 = vld [vmem:[#allocation5 + $0xe90] sm:$0xf0]  ;;  %v8587_v48 = vld [vmem:[#allocation5 + $0xf84] sm:$0xf]  ;;  %v7138_v55 = vor.u32 %v8523_v36, %v7135_v40 }
 0x121   :  { %4453 = vmatpush.bf16.msra.mxu1 %v7170_v8  ;;  %v7391_v51 = vld [vmem:[#allocation5 + $0xf90] sm:$0xf0]  ;;  %v7266_v56 = vor.u32 %v8555_v26, %v7263_v43  ;;  %v8487_v57 = vld [vmem:[#allocation5 + $0xc64] sm:$0xf]  ;;  %v4227_v14 = vpop.f32.mrf.mxu3 }
 0x122   :  { %4466 = vmatpush.bf16.msra.mxu2 %v7298_v9  ;;  %v6991_v58 = vld [vmem:[#allocation5 + $0xc70] sm:$0xf0]  ;;  %v8519_v59 = vld [vmem:[#allocation5 + $0xd64] sm:$0xf]  ;;  %v7394_v60 = vor.u32 %v8587_v48, %v7391_v51  ;;  %v4214_v10 = vpop.f32.mrf.mxu2  ;;  %v4190_v17 = vpop.f32.mrf.mxu0 }
 0x123   :  { %v7119_v62 = vld [vmem:[#allocation5 + $0xd70] sm:$0xf0]  ;;  %v8551_v63 = vld [vmem:[#allocation5 + $0xe64] sm:$0xf]  ;;  %v6994_v4 = vor.u32 %v8487_v57, %v6991_v58  ;;  %v4215_v13 = vadd.f32 %v4214_v10, %v4202_v61 }
 0x124   :  { %4479 = vmatpush.bf16.msra.mxu3 %v7426_v12  ;;  %4441 = vmatpush.bf16.msra.mxu0 %v7026_v21  ;;  %v7247_v1 = vld [vmem:[#allocation5 + $0xe70] sm:$0xf0]  ;;  %v8583_v2 = vld [vmem:[#allocation5 + $0xf64] sm:$0xf]  ;;  %v7122_v0 = vor.u32 %v8519_v59, %v7119_v62 }
 0x125   :  { %4454 = vmatpush.bf16.msra.mxu1 %v7154_v24  ;;  %v7375_v3 = vld [vmem:[#allocation5 + $0xf70] sm:$0xf0]  ;;  %v7250_v5 = vor.u32 %v8551_v63, %v7247_v1  ;;  %v8483_v6 = vld [vmem:[#allocation5 + $0xc44] sm:$0xf]  ;;  %v4203_v24 = vpop.f32.mrf.mxu1 }
 0x126   :  { %4467 = vmatpush.bf16.msra.mxu2 %v7282_v27  ;;  %v6975_v7 = vld [vmem:[#allocation5 + $0xc50] sm:$0xf0]  ;;  %v8515_v8 = vld [vmem:[#allocation5 + $0xd44] sm:$0xf]  ;;  %v7378_v9 = vor.u32 %v8583_v2, %v7375_v3  ;;  %v9065_v27 = vadd.f32 %v4227_v14, %v4215_v13 }
 0x127   :  { %v7103_v11 = vld [vmem:[#allocation5 + $0xd50] sm:$0xf0]  ;;  %v8547_v50 = vld [vmem:[#allocation5 + $0xe44] sm:$0xf]  ;;  %v6978_v21 = vor.u32 %v8483_v6, %v6975_v7 }
 0x128   :  { %4480 = vmatpush.bf16.msra.mxu3 %v7410_v39  ;;  %4442 = vmatpush.bf16.msra.mxu0 %v7010_v53  ;;  %v7231_v12 = vld [vmem:[#allocation5 + $0xe50] sm:$0xf0]  ;;  %v8579_v15 = vld [vmem:[#allocation5 + $0xf44] sm:$0xf]  ;;  %v7106_v32 = vor.u32 %v8515_v8, %v7103_v11 }
 0x129   :  { %4455 = vmatpush.bf16.msra.mxu1 %v7138_v55  ;;  %v7359_v16 = vld [vmem:[#allocation5 + $0xf50] sm:$0xf0]  ;;  %v7234_v34 = vor.u32 %v8547_v50, %v7231_v12  ;;  %v8479_v36 = vld [vmem:[#allocation5 + $0xc24] sm:$0xf] }
 0x12a   :  { %4468 = vmatpush.bf16.msra.mxu2 %v7266_v56  ;;  %v6959_v39 = vld [vmem:[#allocation5 + $0xc30] sm:$0xf0]  ;;  %v8511_v40 = vld [vmem:[#allocation5 + $0xd24] sm:$0xf]  ;;  %v7362_v26 = vor.u32 %v8579_v15, %v7359_v16  ;;  %v4216_v2 = vpop.f32.mrf.mxu2 }
 0x12b   :  { %v7087_v43 = vld [vmem:[#allocation5 + $0xd30] sm:$0xf0]  ;;  %v8543_v47 = vld [vmem:[#allocation5 + $0xe24] sm:$0xf]  ;;  %v6962_v53 = vor.u32 %v8479_v36, %v6959_v39 }
 0x12c   :  { %4481 = vmatpush.bf16.msra.mxu3 %v7394_v60  ;;  %4443 = vmatpush.bf16.msra.mxu0 %v6994_v4  ;;  %v7215_v48 = vld [vmem:[#allocation5 + $0xe30] sm:$0xf0]  ;;  %v8575_v51 = vld [vmem:[#allocation5 + $0xf24] sm:$0xf]  ;;  %v7090_v56 = vor.u32 %v8511_v40, %v7087_v43 }
 0x12d   :  { %4456 = vmatpush.bf16.msra.mxu1 %v7122_v0  ;;  %v7343_v52 = vld [vmem:[#allocation5 + $0xf30] sm:$0xf0]  ;;  %v8475_v54 = vld [vmem:[#allocation5 + $0xc04] sm:$0xf]  ;;  %v7218_v57 = vor.u32 %v8543_v47, %v7215_v48 }
 0x12e   :  { %4469 = vmatpush.bf16.msra.mxu2 %v7250_v5  ;;  %v6943_v55 = vld [vmem:[#allocation5 + $0xc10] sm:$0xf0]  ;;  %v8507_v58 = vld [vmem:[#allocation5 + $0xd04] sm:$0xf]  ;;  %v7346_v61 = vor.u32 %v8575_v51, %v7343_v52  ;;  %v4229_v5 = vpop.f32.mrf.mxu3 }
 0x12f   :  { %v7071_v59 = vld [vmem:[#allocation5 + $0xd10] sm:$0xf0]  ;;  %v8539_v60 = vld [vmem:[#allocation5 + $0xe04] sm:$0xf]  ;;  %v6946_v6 = vor.u32 %v8475_v54, %v6943_v55 }
 0x130   :  { %4482 = vmatpush.bf16.msra.mxu3 %v7378_v9  ;;  %4444 = vmatpush.bf16.msra.mxu0 %v6978_v21  ;;  %v7199_v62 = vld [vmem:[#allocation5 + $0xe10] sm:$0xf0]  ;;  %v8571_v63 = vld [vmem:[#allocation5 + $0xf04] sm:$0xf]  ;;  %v7074_v10 = vor.u32 %v8507_v58, %v7071_v59 }
 0x131   :  { %4457 = vmatpush.bf16.msra.mxu1 %v7106_v32  ;;  %v7327_v1 = vld [vmem:[#allocation5 + $0xf10] sm:$0xf0]  ;;  %v8631_v3 = vld [vmem:[#allocation5 + $0x10e4] sm:$0xf]  ;;  %v7202_v11 = vor.u32 %v8539_v60, %v7199_v62 }
 0x132   :  { %4470 = vmatpush.bf16.msra.mxu2 %v7234_v34  ;;  %v7567_v4 = vld [vmem:[#allocation5 + $0x10f0] sm:$0xf0]  ;;  %v8663_v0 = vld [vmem:[#allocation5 + $0x11e4] sm:$0xf]  ;;  %v7330_v13 = vor.u32 %v8571_v63, %v7327_v1 }
 0x133   :  { %v7695_v7 = vld [vmem:[#allocation5 + $0x11f0] sm:$0xf0]  ;;  %v8695_v8 = vld [vmem:[#allocation5 + $0x12e4] sm:$0xf]  ;;  %v7570_v14 = vor.u32 %v8631_v3, %v7567_v4 }
 0x134   :  { %4483 = vmatpush.bf16.msra.mxu3 %v7362_v26  ;;  %4445 = vmatpush.bf16.msra.mxu0 %v6962_v53  ;;  %v7823_v9 = vld [vmem:[#allocation5 + $0x12f0] sm:$0xf0]  ;;  %v8727_v50 = vld [vmem:[#allocation5 + $0x13e4] sm:$0xf]  ;;  %v7698_v15 = vor.u32 %v8663_v0, %v7695_v7 }
 0x135   :  { %4458 = vmatpush.bf16.msra.mxu1 %v7090_v56  ;;  %v7951_v12 = vld [vmem:[#allocation5 + $0x13f0] sm:$0xf0]  ;;  %v7826_v16 = vor.u32 %v8695_v8, %v7823_v9  ;;  %v8627_v17 = vld [vmem:[#allocation5 + $0x10c4] sm:$0xf] }
 0x136   :  { %4471 = vmatpush.bf16.msra.mxu2 %v7218_v57  ;;  %v7551_v21 = vld [vmem:[#allocation5 + $0x10d0] sm:$0xf0]  ;;  %v8659_v24 = vld [vmem:[#allocation5 + $0x11c4] sm:$0xf]  ;;  %v7954_v32 = vor.u32 %v8727_v50, %v7951_v12 }
 0x137   :  { %v7679_v34 = vld [vmem:[#allocation5 + $0x11d0] sm:$0xf0]  ;;  %v8691_v36 = vld [vmem:[#allocation5 + $0x12c4] sm:$0xf]  ;;  %v7554_v43 = vor.u32 %v8627_v17, %v7551_v21 }
 0x138   :  { %4484 = vmatpush.bf16.msra.mxu3 %v7346_v61  ;;  %4446 = vmatpush.bf16.msra.mxu0 %v6946_v6  ;;  %v7807_v39 = vld [vmem:[#allocation5 + $0x12d0] sm:$0xf0]  ;;  %v8723_v40 = vld [vmem:[#allocation5 + $0x13c4] sm:$0xf]  ;;  %v7682_v47 = vor.u32 %v8659_v24, %v7679_v34 }
 0x139   :  { %4459 = vmatpush.bf16.msra.mxu1 %v7074_v10  ;;  %v7935_v26 = vld [vmem:[#allocation5 + $0x13d0] sm:$0xf0]  ;;  %v7810_v48 = vor.u32 %v8691_v36, %v7807_v39  ;;  %v8623_v51 = vld [vmem:[#allocation5 + $0x10a4] sm:$0xf] }
 0x13a   :  { %4472 = vmatpush.bf16.msra.mxu2 %v7202_v11  ;;  %v7535_v52 = vld [vmem:[#allocation5 + $0x10b0] sm:$0xf0]  ;;  %v8655_v53 = vld [vmem:[#allocation5 + $0x11a4] sm:$0xf]  ;;  %v7938_v54 = vor.u32 %v8723_v40, %v7935_v26  ;;  %v4240_v6 = vpop.f32.mrf.mxu0 }
 0x13b   :  { %4447 = vmatmul.bf16.vlgmr.msra.gmra.mxu0 %v9020_v23  ;;  %v7663_v55 = vld [vmem:[#allocation5 + $0x11b0] sm:$0xf0]  ;;  %v8687_v56 = vld [vmem:[#allocation5 + $0x12a4] sm:$0xf]  ;;  %v7538_v60 = vor.u32 %v8623_v51, %v7535_v52  ;;  %v4241_v9 = vadd.f32 %v4240_v6, %v9065_v27  ;;  %v4253_v11 = vpop.f32.mrf.mxu1 }
 0x13c   :  { %4485 = vmatpush.bf16.msra.mxu3 %v7330_v13  ;;  %4491 = vmatpush.bf16.msrb.mxu0 %v7570_v14  ;;  %v7791_v57 = vld [vmem:[#allocation5 + $0x12b0] sm:$0xf0]  ;;  %v8719_v58 = vld [vmem:[#allocation5 + $0x13a4] sm:$0xf]  ;;  %v7666_v61 = vor.u32 %v8655_v53, %v7663_v55 }
 0x13d   :  { %4504 = vmatpush.bf16.msrb.mxu1 %v7698_v15  ;;  %4473 = vmatmul.bf16.vlgmr.msra.gmra.mxu2 %v9022_v28  ;;  %v7919_v59 = vld [vmem:[#allocation5 + $0x13b0] sm:$0xf0]  ;;  %v7794_v62 = vor.u32 %v8687_v56, %v7791_v57  ;;  %v8619_v63 = vld [vmem:[#allocation5 + $0x1084] sm:$0xf]  ;;  %v4254_v17 = vadd.f32 %v4253_v11, %v4241_v9 }
 0x13e   :  { %4517 = vmatpush.bf16.msrb.mxu2 %v7826_v16  ;;  %4460 = vmatmul.bf16.vlgmr.msra.gmra.mxu1 %v9024_v31  ;;  %v7519_v1 = vld [vmem:[#allocation5 + $0x1090] sm:$0xf0]  ;;  %v8651_v2 = vld [vmem:[#allocation5 + $0x1184] sm:$0xf]  ;;  %v7922_v3 = vor.u32 %v8719_v58, %v7919_v59 }
 0x13f   :  { %4486 = vmatmul.bf16.vlgmr.msra.gmra.mxu3 %v9026_v35  ;;  %v7647_v4 = vld [vmem:[#allocation5 + $0x1190] sm:$0xf0]  ;;  %v8683_v0 = vld [vmem:[#allocation5 + $0x1284] sm:$0xf]  ;;  %v7522_v10 = vor.u32 %v8619_v63, %v7519_v1 }
 0x140   :  { %4530 = vmatpush.bf16.msrb.mxu3 %v7954_v32  ;;  %4492 = vmatpush.bf16.msrb.mxu0 %v7554_v43  ;;  %v7775_v5 = vld [vmem:[#allocation5 + $0x1290] sm:$0xf0]  ;;  %v8715_v7 = vld [vmem:[#allocation5 + $0x1384] sm:$0xf]  ;;  %v7650_v50 = vor.u32 %v8651_v2, %v7647_v4 }
 0x141   :  { %4505 = vmatpush.bf16.msrb.mxu1 %v7682_v47  ;;  %v7903_v8 = vld [vmem:[#allocation5 + $0x1390] sm:$0xf0]  ;;  %v7778_v12 = vor.u32 %v8683_v0, %v7775_v5  ;;  %v8615_v13 = vld [vmem:[#allocation5 + $0x1064] sm:$0xf] }
 0x142   :  { %4518 = vmatpush.bf16.msrb.mxu2 %v7810_v48  ;;  %v7503_v14 = vld [vmem:[#allocation5 + $0x1070] sm:$0xf0]  ;;  %v8647_v15 = vld [vmem:[#allocation5 + $0x1164] sm:$0xf]  ;;  %v7906_v16 = vor.u32 %v8715_v7, %v7903_v8  ;;  %v4266_v51 = vpop.f32.mrf.mxu2  ;;  %v4279_v56 = vpop.f32.mrf.mxu3 }
 0x143   :  { %v7631_v21 = vld [vmem:[#allocation5 + $0x1170] sm:$0xf0]  ;;  %v8679_v24 = vld [vmem:[#allocation5 + $0x1264] sm:$0xf]  ;;  %v7506_v39 = vor.u32 %v8615_v13, %v7503_v14  ;;  %v4267_v55 = vadd.f32 %v4266_v51, %v4254_v17  ;;  %v4242_v59 = vpop.f32.mrf.mxu0 }
 0x144   :  { %4531 = vmatpush.bf16.msrb.mxu3 %v7938_v54  ;;  %4493 = vmatpush.bf16.msrb.mxu0 %v7538_v60  ;;  %v7759_v32 = vld [vmem:[#allocation5 + $0x1270] sm:$0xf0]  ;;  %v8711_v34 = vld [vmem:[#allocation5 + $0x1364] sm:$0xf]  ;;  %v7634_v27 = vor.u32 %v8647_v15, %v7631_v21  ;;  %v5509_v59 = vld [vmem:[#allocation5 + $0xc8] sm:$0xf] }
 0x145   :  { %4506 = vmatpush.bf16.msrb.mxu1 %v7666_v61  ;;  %v7887_v36 = vld [vmem:[#allocation5 + $0x1370] sm:$0xf0]  ;;  %v7762_v40 = vor.u32 %v8679_v24, %v7759_v32  ;;  %v8611_v26 = vld [vmem:[#allocation5 + $0x1044] sm:$0xf]  ;;  %v4255_v61 = vpop.f32.mrf.mxu1 }
 0x146   :  { %4519 = vmatpush.bf16.msrb.mxu2 %v7794_v62  ;;  %v7487_v43 = vld [vmem:[#allocation5 + $0x1050] sm:$0xf0]  ;;  %v8643_v47 = vld [vmem:[#allocation5 + $0x1144] sm:$0xf]  ;;  %v7890_v48 = vor.u32 %v8711_v34, %v7887_v36  ;;  %v9072_v62 = vadd.f32 %v4279_v56, %v4267_v55  ;;  %v5525_v36 = vld [vmem:[#allocation5 + $0xe8] sm:$0xf] }
 0x147   :  { %v7615_v52 = vld [vmem:[#allocation5 + $0x1150] sm:$0xf0]  ;;  %v8675_v53 = vld [vmem:[#allocation5 + $0x1244] sm:$0xf]  ;;  %v7490_v60 = vor.u32 %v8611_v26, %v7487_v43  ;;  %v8154_v43 = vld [vmem:[#allocation5 + $0x1f4] sm:$0xf0] }
 0x148   :  { %4532 = vmatpush.bf16.msrb.mxu3 %v7922_v3  ;;  %4494 = vmatpush.bf16.msrb.mxu0 %v7522_v10  ;;  %v7743_v54 = vld [vmem:[#allocation5 + $0x1250] sm:$0xf0]  ;;  %v8707_v57 = vld [vmem:[#allocation5 + $0x1344] sm:$0xf]  ;;  %v7618_v63 = vor.u32 %v8643_v47, %v7615_v52  ;;  %v5781_v47 = vld [vmem:[#allocation5 + $0x2e8] sm:$0xf] }
 0x149   :  { %4507 = vmatpush.bf16.msrb.mxu1 %v7650_v50  ;;  %v7871_v58 = vld [vmem:[#allocation5 + $0x1350] sm:$0xf0]  ;;  %v7746_v1 = vor.u32 %v8675_v53, %v7743_v54  ;;  %v8607_v2 = vld [vmem:[#allocation5 + $0x1024] sm:$0xf]  ;;  %v5909_v53 = vld [vmem:[#allocation5 + $0x3e8] sm:$0xf] }
 0x14a   :  { %4520 = vmatpush.bf16.msrb.mxu2 %v7778_v12  ;;  %v7471_v3 = vld [vmem:[#allocation5 + $0x1030] sm:$0xf0]  ;;  %v8639_v4 = vld [vmem:[#allocation5 + $0x1124] sm:$0xf]  ;;  %v7874_v0 = vor.u32 %v8707_v57, %v7871_v58  ;;  %v4268_v34 = vpop.f32.mrf.mxu2  ;;  %v8218_v54 = vld [vmem:[#allocation5 + $0x3f4] sm:$0xf0] }
 0x14b   :  { %v7599_v5 = vld [vmem:[#allocation5 + $0x1130] sm:$0xf0]  ;;  %v8671_v6 = vld [vmem:[#allocation5 + $0x1224] sm:$0xf]  ;;  %v7474_v10 = vor.u32 %v8607_v2, %v7471_v3  ;;  %v5637_v61 = vld [vmem:[#allocation5 + $0x1c8] sm:$0xf] }
 0x14c   :  { %4533 = vmatpush.bf16.msrb.mxu3 %v7906_v16  ;;  %4495 = vmatpush.bf16.msrb.mxu0 %v7506_v39  ;;  %v7727_v7 = vld [vmem:[#allocation5 + $0x1230] sm:$0xf0]  ;;  %v8703_v8 = vld [vmem:[#allocation5 + $0x1324] sm:$0xf]  ;;  %v7602_v12 = vor.u32 %v8639_v4, %v7599_v5  ;;  %v8122_v39 = vld [vmem:[#allocation5 + $0xf4] sm:$0xf0] }
 0x14d   :  { %4508 = vmatpush.bf16.msrb.mxu1 %v7634_v27  ;;  %v7855_v9 = vld [vmem:[#allocation5 + $0x1330] sm:$0xf0]  ;;  %v8603_v11 = vld [vmem:[#allocation5 + $0x1004] sm:$0xf]  ;;  %v7730_v13 = vor.u32 %v8671_v6, %v7727_v7  ;;  %v5653_v27 = vld [vmem:[#allocation5 + $0x1e8] sm:$0xf]  ;;  %v5526_v56 = vor.u32 %v8122_v39, %v5525_v36 }
 0x14e   :  { %4521 = vmatpush.bf16.msrb.mxu2 %v7762_v40  ;;  %v7455_v50 = vld [vmem:[#allocation5 + $0x1010] sm:$0xf0]  ;;  %v8635_v14 = vld [vmem:[#allocation5 + $0x1104] sm:$0xf]  ;;  %v7858_v17 = vor.u32 %v8703_v8, %v7855_v9  ;;  %v4281_v40 = vpop.f32.mrf.mxu3  ;;  %v5654_v57 = vor.u32 %v8154_v43, %v5653_v27  ;;  %v5765_v2 = vld [vmem:[#allocation5 + $0x2c8] sm:$0xf] }
 0x14f   :  { %v7583_v15 = vld [vmem:[#allocation5 + $0x1110] sm:$0xf0]  ;;  %v8667_v16 = vld [vmem:[#allocation5 + $0x1204] sm:$0xf]  ;;  %v7458_v26 = vor.u32 %v8603_v11, %v7455_v50  ;;  %v8182_v3 = vld [vmem:[#allocation5 + $0x2d4] sm:$0xf0] }
 0x150   :  { %4534 = vmatpush.bf16.msrb.mxu3 %v7890_v48  ;;  %4496 = vmatpush.bf16.msrb.mxu0 %v7490_v60  ;;  %v7711_v21 = vld [vmem:[#allocation5 + $0x1210] sm:$0xf0]  ;;  %v8699_v24 = vld [vmem:[#allocation5 + $0x1304] sm:$0xf]  ;;  %v8186_v48 = vld [vmem:[#allocation5 + $0x2f4] sm:$0xf0]  ;;  %v7586_v51 = vor.u32 %v8635_v14, %v7583_v15  ;;  %v5766_v7 = vor.u32 %v8182_v3, %v5765_v2 }
 0x151   :  { %4509 = vmatpush.bf16.msrb.mxu1 %v7618_v63  ;;  %v7839_v32 = vld [vmem:[#allocation5 + $0x1310] sm:$0xf0]  ;;  %v7714_v52 = vor.u32 %v8667_v16, %v7711_v21  ;;  %v5782_v58 = vor.u32 %v8186_v48, %v5781_v47  ;;  %v8118_v60 = vld [vmem:[#allocation5 + $0xd4] sm:$0xf0]  ;;  %v5910_v63 = vor.u32 %v8218_v54, %v5909_v53  ;;  %v5893_v4 = vld [vmem:[#allocation5 + $0x3c8] sm:$0xf] }
 0x152   :  { %4522 = vmatpush.bf16.msrb.mxu2 %v7746_v1  ;;  %v7842_v55 = vor.u32 %v8699_v24, %v7839_v32  ;;  %v8150_v1 = vld [vmem:[#allocation5 + $0x1d4] sm:$0xf0]  ;;  %v5510_v5 = vor.u32 %v8118_v60, %v5509_v59  ;;  %v5493_v8 = vld [vmem:[#allocation5 + $0xa8] sm:$0xf]  ;;  %v8774_v36 = vld [vmem:[#allocation7] sm:$0xf] }
 0x153   :  { %v5638_v6 = vor.u32 %v8150_v1, %v5637_v61  ;;  %v8114_v9 = vld [vmem:[#allocation5 + $0xb4] sm:$0xf0]  ;;  %v5877_v14 = vld [vmem:[#allocation5 + $0x3a8] sm:$0xf]  ;;  %v746_v39 = vperm.slane %v8774_v36, 1 }
 0x154   :  { %4535 = vmatpush.bf16.msrb.mxu3 %v7874_v0  ;;  %4497 = vmatpush.bf16.msrb.mxu0 %v7474_v10  ;;  %v8214_v0 = vld [vmem:[#allocation5 + $0x3d4] sm:$0xf0]  ;;  %v5621_v10 = vld [vmem:[#allocation5 + $0x1a8] sm:$0xf]  ;;  %v5494_v16 = vor.u32 %v8114_v9, %v5493_v8 }
 0x155   :  { %4510 = vmatpush.bf16.msrb.mxu1 %v7602_v12  ;;  %v5894_v11 = vor.u32 %v8214_v0, %v5893_v4  ;;  %v8146_v50 = vld [vmem:[#allocation5 + $0x1b4] sm:$0xf0]  ;;  %v5749_v12 = vld [vmem:[#allocation5 + $0x2a8] sm:$0xf] }
 0x156   :  { %4523 = vmatpush.bf16.msrb.mxu2 %v7730_v13  ;;  %v8178_v13 = vld [vmem:[#allocation5 + $0x2b4] sm:$0xf0]  ;;  %v5622_v21 = vor.u32 %v8146_v50, %v5621_v10  ;;  %v5605_v34 = vld [vmem:[#allocation5 + $0x188] sm:$0xf] }
 0x157   :  { %v8210_v15 = vld [vmem:[#allocation5 + $0x3b4] sm:$0xf0]  ;;  %v5750_v24 = vor.u32 %v8178_v13, %v5749_v12  ;;  %v5861_v47 = vld [vmem:[#allocation5 + $0x388] sm:$0xf] }
 0x158   :  { %4536 = vmatpush.bf16.msrb.mxu3 %v7858_v17  ;;  %4498 = vmatpush.bf16.msrb.mxu0 %v7458_v26  ;;  %v5477_v17 = vld [vmem:[#allocation5 + $0x88] sm:$0xf]  ;;  %v8110_v32 = vld [vmem:[#allocation5 + $0x94] sm:$0xf0]  ;;  %v5878_v27 = vor.u32 %v8210_v15, %v5877_v14 }
 0x159   :  { %4511 = vmatpush.bf16.msrb.mxu1 %v7586_v51  ;;  %v8142_v40 = vld [vmem:[#allocation5 + $0x194] sm:$0xf0]  ;;  %v5733_v26 = vld [vmem:[#allocation5 + $0x288] sm:$0xf]  ;;  %v5478_v51 = vor.u32 %v8110_v32, %v5477_v17 }
 0x15a   :  { %4524 = vmatpush.bf16.msrb.mxu2 %v7714_v52  ;;  %v8174_v43 = vld [vmem:[#allocation5 + $0x294] sm:$0xf0]  ;;  %v4292_v52 = vpop.f32.mrf.mxu0  ;;  %v5606_v53 = vor.u32 %v8142_v40, %v5605_v34  ;;  %v5845_v2 = vld [vmem:[#allocation5 + $0x368] sm:$0xf] }
 0x15b   :  { %4499 = vmatmul.bf16.vlgmr.msrb.gmra.mxu0 %v9032_v37  ;;  %v8206_v48 = vld [vmem:[#allocation5 + $0x394] sm:$0xf0]  ;;  %v5734_v54 = vor.u32 %v8174_v43, %v5733_v26  ;;  %v4305_v59 = vpop.f32.mrf.mxu1  ;;  %v5573_v9 = vld [vmem:[#allocation5 + $0x148] sm:$0xf] }
 0x15c   :  { %4537 = vmatpush.bf16.msrb.mxu3 %v7842_v55  ;;  %4543 = vmatpush.bf16.msra.mxu0 %v5526_v56  ;;  %v5461_v55 = vld [vmem:[#allocation5 + $0x68] sm:$0xf]  ;;  %v8106_v56 = vld [vmem:[#allocation5 + $0x74] sm:$0xf0]  ;;  %v5862_v60 = vor.u32 %v8206_v48, %v5861_v47 }
 0x15d   :  { %4556 = vmatpush.bf16.msra.mxu1 %v5654_v57  ;;  %4525 = vmatmul.bf16.vlgmr.msrb.gmra.mxu2 %v9034_v45  ;;  %v5589_v57 = vld [vmem:[#allocation5 + $0x168] sm:$0xf]  ;;  %v8138_v61 = vld [vmem:[#allocation5 + $0x174] sm:$0xf0]  ;;  %v5462_v0 = vor.u32 %v8106_v56, %v5461_v55 }
 0x15e   :  { %4569 = vmatpush.bf16.msra.mxu2 %v5782_v58  ;;  %4512 = vmatmul.bf16.vlgmr.msrb.gmra.mxu1 %v9036_v46  ;;  %v4293_v58 = vadd.f32 %v4292_v52, %v746_v39  ;;  %v8170_v1 = vld [vmem:[#allocation5 + $0x274] sm:$0xf0]  ;;  %v5701_v12 = vld [vmem:[#allocation5 + $0x248] sm:$0xf] }
 0x15f   :  { %4538 = vmatmul.bf16.vlgmr.msrb.gmra.mxu3 %v9038_v49  ;;  %v8202_v3 = vld [vmem:[#allocation5 + $0x374] sm:$0xf0]  ;;  %v5429_v39 = vld [vmem:[#allocation5 + $0x28] sm:$0xf] }
 0x160   :  { %4582 = vmatpush.bf16.msra.mxu3 %v5910_v63  ;;  %4544 = vmatpush.bf16.msra.mxu0 %v5510_v5  ;;  %v5717_v63 = vld [vmem:[#allocation5 + $0x268] sm:$0xf]  ;;  %v4306_v4 = vadd.f32 %v4305_v59, %v4293_v58  ;;  %v5590_v5 = vor.u32 %v8138_v61, %v5589_v57  ;;  %v8102_v8 = vld [vmem:[#allocation5 + $0x54] sm:$0xf0]  ;;  %v4318_v10 = vpop.f32.mrf.mxu2 }
 0x161   :  { %4557 = vmatpush.bf16.msra.mxu1 %v5638_v6  ;;  %v5718_v6 = vor.u32 %v8170_v1, %v5717_v63  ;;  %v8134_v50 = vld [vmem:[#allocation5 + $0x154] sm:$0xf0]  ;;  %v5557_v40 = vld [vmem:[#allocation5 + $0x128] sm:$0xf] }
 0x162   :  { %4570 = vmatpush.bf16.msra.mxu2 %v5766_v7  ;;  %v5445_v7 = vld [vmem:[#allocation5 + $0x48] sm:$0xf]  ;;  %v8166_v13 = vld [vmem:[#allocation5 + $0x254] sm:$0xf0]  ;;  %v4319_v14 = vadd.f32 %v4318_v10, %v4306_v4  ;;  %v4331_v15 = vpop.f32.mrf.mxu3  ;;  %v4294_v32 = vpop.f32.mrf.mxu0  ;;  %v5574_v34 = vor.u32 %v8134_v50, %v5573_v9 }
 0x163   :  { %v8198_v17 = vld [vmem:[#allocation5 + $0x354] sm:$0xf0]  ;;  %v5702_v36 = vor.u32 %v8166_v13, %v5701_v12  ;;  %v4307_v26 = vpop.f32.mrf.mxu1  ;;  %v5685_v48 = vld [vmem:[#allocation5 + $0x228] sm:$0xf] }
 0x164   :  { %4583 = vmatpush.bf16.msra.mxu3 %v5894_v11  ;;  %4545 = vmatpush.bf16.msra.mxu0 %v5494_v16  ;;  %v5846_v11 = vor.u32 %v8202_v3, %v5845_v2  ;;  %v5829_v16 = vld [vmem:[#allocation5 + $0x348] sm:$0xf]  ;;  %v8130_v47 = vld [vmem:[#allocation5 + $0x134] sm:$0xf0] }
 0x165   :  { %4558 = vmatpush.bf16.msra.mxu1 %v5622_v21  ;;  %v5446_v21 = vor.u32 %v8102_v8, %v5445_v7  ;;  %v5830_v43 = vor.u32 %v8198_v17, %v5829_v16  ;;  %v5813_v52 = vld [vmem:[#allocation5 + $0x328] sm:$0xf]  ;;  %v8094_v56 = vld [vmem:[#allocation5 + $0x14] sm:$0xf0]  ;;  %v5558_v57 = vor.u32 %v8130_v47, %v5557_v40 }
 0x166   :  { %4571 = vmatpush.bf16.msra.mxu2 %v5750_v24  ;;  %v9078_v24 = vadd.f32 %v4331_v15, %v4319_v14  ;;  %v5413_v55 = vld [vmem:[#allocation5 + $0x8] sm:$0xf]  ;;  %v8158_v2 = vld [vmem:[#allocation5 + $0x214] sm:$0xf0] }
 0x167   :  { %v5541_v59 = vld [vmem:[#allocation5 + $0x108] sm:$0xf]  ;;  %v8190_v4 = vld [vmem:[#allocation5 + $0x314] sm:$0xf0]  ;;  %v5414_v8 = vor.u32 %v8094_v56, %v5413_v55 }
 0x168   :  { %4584 = vmatpush.bf16.msra.mxu3 %v5878_v27  ;;  %4546 = vmatpush.bf16.msra.mxu0 %v5478_v51  ;;  %v8098_v27 = vld [vmem:[#allocation5 + $0x34] sm:$0xf0]  ;;  %v5669_v61 = vld [vmem:[#allocation5 + $0x208] sm:$0xf]  ;;  %v4320_v63 = vpop.f32.mrf.mxu2 }
 0x169   :  { %4559 = vmatpush.bf16.msra.mxu1 %v5606_v53  ;;  %v8162_v51 = vld [vmem:[#allocation5 + $0x234] sm:$0xf0]  ;;  %v5797_v3 = vld [vmem:[#allocation5 + $0x308] sm:$0xf]  ;;  %v5670_v12 = vor.u32 %v8158_v2, %v5669_v61 }
 0x16a   :  { %4572 = vmatpush.bf16.msra.mxu2 %v5734_v54  ;;  %v8194_v53 = vld [vmem:[#allocation5 + $0x334] sm:$0xf0]  ;;  %v5430_v54 = vor.u32 %v8098_v27, %v5429_v39  ;;  %v5686_v58 = vor.u32 %v8162_v51, %v5685_v48  ;;  %v6165_v7 = vld [vmem:[#allocation5 + $0x5e8] sm:$0xf]  ;;  %v5798_v15 = vor.u32 %v8190_v4, %v5797_v3 }
 0x16b   :  { %v5814_v1 = vor.u32 %v8194_v53, %v5813_v52  ;;  %v8282_v9 = vld [vmem:[#allocation5 + $0x5f4] sm:$0xf0]  ;;  %v6293_v10 = vld [vmem:[#allocation5 + $0x6e8] sm:$0xf] }
 0x16c   :  { %4585 = vmatpush.bf16.msra.mxu3 %v5862_v60  ;;  %4547 = vmatpush.bf16.msra.mxu0 %v5462_v0  ;;  %v8126_v60 = vld [vmem:[#allocation5 + $0x114] sm:$0xf0]  ;;  %v4333_v0 = vpop.f32.mrf.mxu3  ;;  %v6421_v13 = vld [vmem:[#allocation5 + $0x7e8] sm:$0xf]  ;;  %v6166_v17 = vor.u32 %v8282_v9, %v6165_v7 }
 0x16d   :  { %4560 = vmatpush.bf16.msra.mxu1 %v5590_v5  ;;  %v6037_v5 = vld [vmem:[#allocation5 + $0x4e8] sm:$0xf]  ;;  %v5542_v50 = vor.u32 %v8126_v60, %v5541_v59  ;;  %v8346_v14 = vld [vmem:[#allocation5 + $0x7f4] sm:$0xf0] }
 0x16e   :  { %4573 = vmatpush.bf16.msra.mxu2 %v5718_v6  ;;  %v8250_v6 = vld [vmem:[#allocation5 + $0x4f4] sm:$0xf0]  ;;  %v6021_v32 = vld [vmem:[#allocation5 + $0x4c8] sm:$0xf]  ;;  %v6422_v39 = vor.u32 %v8346_v14, %v6421_v13 }
 0x16f   :  { %v6038_v16 = vor.u32 %v8250_v6, %v6037_v5  ;;  %v8278_v27 = vld [vmem:[#allocation5 + $0x5d4] sm:$0xf0]  ;;  %v6277_v40 = vld [vmem:[#allocation5 + $0x6c8] sm:$0xf] }
 0x170   :  { %4586 = vmatpush.bf16.msra.mxu3 %v5846_v11  ;;  %4548 = vmatpush.bf16.msra.mxu0 %v5446_v21  ;;  %v8314_v11 = vld [vmem:[#allocation5 + $0x6f4] sm:$0xf0]  ;;  %v6005_v53 = vld [vmem:[#allocation5 + $0x4a8] sm:$0xf] }
 0x171   :  { %4561 = vmatpush.bf16.msra.mxu1 %v5574_v34  ;;  %v6294_v21 = vor.u32 %v8314_v11, %v6293_v10  ;;  %v8246_v34 = vld [vmem:[#allocation5 + $0x4d4] sm:$0xf0]  ;;  %v6133_v55 = vld [vmem:[#allocation5 + $0x5a8] sm:$0xf] }
 0x172   :  { %4574 = vmatpush.bf16.msra.mxu2 %v5702_v36  ;;  %v6149_v36 = vld [vmem:[#allocation5 + $0x5c8] sm:$0xf]  ;;  %v8310_v26 = vld [vmem:[#allocation5 + $0x6d4] sm:$0xf0]  ;;  %v6022_v48 = vor.u32 %v8246_v34, %v6021_v32 }
 0x173   :  { %v8342_v47 = vld [vmem:[#allocation5 + $0x7d4] sm:$0xf0]  ;;  %v6150_v51 = vor.u32 %v8278_v27, %v6149_v36  ;;  %v6278_v52 = vor.u32 %v8310_v26, %v6277_v40  ;;  %v6389_v60 = vld [vmem:[#allocation5 + $0x7a8] sm:$0xf] }
 0x174   :  { %4587 = vmatpush.bf16.msra.mxu3 %v5830_v43  ;;  %4549 = vmatpush.bf16.msra.mxu0 %v5430_v54  ;;  %v6405_v43 = vld [vmem:[#allocation5 + $0x7c8] sm:$0xf]  ;;  %v8242_v54 = vld [vmem:[#allocation5 + $0x4b4] sm:$0xf0] }
 0x175   :  { %4562 = vmatpush.bf16.msra.mxu1 %v5558_v57  ;;  %v6406_v56 = vor.u32 %v8342_v47, %v6405_v43  ;;  %v8274_v57 = vld [vmem:[#allocation5 + $0x5b4] sm:$0xf0]  ;;  %v6006_v63 = vor.u32 %v8242_v54, %v6005_v53  ;;  %v5989_v3 = vld [vmem:[#allocation5 + $0x488] sm:$0xf] }
 0x176   :  { %4575 = vmatpush.bf16.msra.mxu2 %v5686_v58  ;;  %v6261_v58 = vld [vmem:[#allocation5 + $0x6a8] sm:$0xf]  ;;  %v8306_v59 = vld [vmem:[#allocation5 + $0x6b4] sm:$0xf0] }
 0x177   :  { %v8338_v61 = vld [vmem:[#allocation5 + $0x7b4] sm:$0xf0]  ;;  %v6262_v2 = vor.u32 %v8306_v59, %v6261_v58  ;;  %v6117_v0 = vld [vmem:[#allocation5 + $0x588] sm:$0xf] }
 0x178   :  { %4588 = vmatpush.bf16.msra.mxu3 %v5814_v1  ;;  %4550 = vmatpush.bf16.msra.mxu0 %v5414_v8  ;;  %v6134_v1 = vor.u32 %v8274_v57, %v6133_v55  ;;  %v8238_v4 = vld [vmem:[#allocation5 + $0x494] sm:$0xf0]  ;;  %v6390_v5 = vor.u32 %v8338_v61, %v6389_v60  ;;  %v6245_v7 = vld [vmem:[#allocation5 + $0x688] sm:$0xf] }
 0x179   :  { %4563 = vmatpush.bf16.msra.mxu1 %v5542_v50  ;;  %v8270_v6 = vld [vmem:[#allocation5 + $0x594] sm:$0xf0]  ;;  %v6373_v9 = vld [vmem:[#allocation5 + $0x788] sm:$0xf]  ;;  %v5990_v11 = vor.u32 %v8238_v4, %v5989_v3  ;;  %v4344_v50 = vpop.f32.mrf.mxu0 }
 0x17a   :  { %4576 = vmatpush.bf16.msra.mxu2 %v5670_v12  ;;  %v8302_v8 = vld [vmem:[#allocation5 + $0x694] sm:$0xf0]  ;;  %v6118_v12 = vor.u32 %v8270_v6, %v6117_v0  ;;  %v5973_v14 = vld [vmem:[#allocation5 + $0x468] sm:$0xf] }
 0x17b   :  { %4551 = vmatmul.bf16.vlgmr.msra.gmra.mxu0 %v8986_v19  ;;  %v8334_v10 = vld [vmem:[#allocation5 + $0x794] sm:$0xf0]  ;;  %v6246_v13 = vor.u32 %v8302_v8, %v6245_v7  ;;  %v6229_v36 = vld [vmem:[#allocation5 + $0x668] sm:$0xf] }
 0x17c   :  { %4589 = vmatpush.bf16.msra.mxu3 %v5798_v15  ;;  %4595 = vmatpush.bf16.msrb.mxu0 %v6038_v16  ;;  %v8234_v15 = vld [vmem:[#allocation5 + $0x474] sm:$0xf0]  ;;  %v6101_v16 = vld [vmem:[#allocation5 + $0x568] sm:$0xf]  ;;  %v6374_v32 = vor.u32 %v8334_v10, %v6373_v9 }
 0x17d   :  { %4608 = vmatpush.bf16.msrb.mxu1 %v6166_v17  ;;  %4577 = vmatmul.bf16.vlgmr.msra.gmra.mxu2 %v8984_v18  ;;  %v4345_v17 = vadd.f32 %v4344_v50, %v9078_v24  ;;  %v8266_v34 = vld [vmem:[#allocation5 + $0x574] sm:$0xf0]  ;;  %v6357_v27 = vld [vmem:[#allocation5 + $0x768] sm:$0xf]  ;;  %v5974_v43 = vor.u32 %v8234_v15, %v5973_v14 }
 0x17e   :  { %4621 = vmatpush.bf16.msrb.mxu2 %v6294_v21  ;;  %4564 = vmatmul.bf16.vlgmr.msra.gmra.mxu1 %v8990_v22  ;;  %v4357_v21 = vpop.f32.mrf.mxu1  ;;  %v8330_v40 = vld [vmem:[#allocation5 + $0x774] sm:$0xf0]  ;;  %v6102_v47 = vor.u32 %v8266_v34, %v6101_v16  ;;  %v6085_v53 = vld [vmem:[#allocation5 + $0x548] sm:$0xf] }
 0x17f   :  { %4590 = vmatmul.bf16.vlgmr.msra.gmra.mxu3 %v8988_v20  ;;  %v4358_v26 = vadd.f32 %v4357_v21, %v4345_v17  ;;  %v6358_v24 = vor.u32 %v8330_v40, %v6357_v27  ;;  %v8262_v55 = vld [vmem:[#allocation5 + $0x554] sm:$0xf0]  ;;  %v6341_v60 = vld [vmem:[#allocation5 + $0x748] sm:$0xf] }
 0x180   :  { %4634 = vmatpush.bf16.msrb.mxu3 %v6422_v39  ;;  %4596 = vmatpush.bf16.msrb.mxu0 %v6022_v48  ;;  %v8298_v39 = vld [vmem:[#allocation5 + $0x674] sm:$0xf0]  ;;  %v4370_v54 = vpop.f32.mrf.mxu2  ;;  %v6086_v3 = vor.u32 %v8262_v55, %v6085_v53  ;;  %v5941_v0 = vld [vmem:[#allocation5 + $0x428] sm:$0xf] }
 0x181   :  { %4609 = vmatpush.bf16.msrb.mxu1 %v6150_v51  ;;  %v6230_v48 = vor.u32 %v8298_v39, %v6229_v36  ;;  %v5957_v51 = vld [vmem:[#allocation5 + $0x448] sm:$0xf]  ;;  %v8294_v57 = vld [vmem:[#allocation5 + $0x654] sm:$0xf0]  ;;  %v4371_v58 = vadd.f32 %v4370_v54, %v4358_v26 }
 0x182   :  { %4622 = vmatpush.bf16.msrb.mxu2 %v6278_v52  ;;  %v8230_v52 = vld [vmem:[#allocation5 + $0x454] sm:$0xf0]  ;;  %v4383_v59 = vpop.f32.mrf.mxu3  ;;  %v6069_v6 = vld [vmem:[#allocation5 + $0x528] sm:$0xf] }
 0x183   :  { %v8326_v61 = vld [vmem:[#allocation5 + $0x754] sm:$0xf0]  ;;  %v6197_v10 = vld [vmem:[#allocation5 + $0x628] sm:$0xf] }
 0x184   :  { %4635 = vmatpush.bf16.msrb.mxu3 %v6406_v56  ;;  %4597 = vmatpush.bf16.msrb.mxu0 %v6006_v63  ;;  %v6213_v56 = vld [vmem:[#allocation5 + $0x648] sm:$0xf]  ;;  %v5958_v63 = vor.u32 %v8230_v52, %v5957_v51  ;;  %v6342_v8 = vor.u32 %v8326_v61, %v6341_v60  ;;  %v8258_v9 = vld [vmem:[#allocation5 + $0x534] sm:$0xf0] }
 0x185   :  { %4610 = vmatpush.bf16.msrb.mxu1 %v6134_v1  ;;  %v9085_v1 = vadd.f32 %v4383_v59, %v4371_v58  ;;  %v6214_v4 = vor.u32 %v8294_v57, %v6213_v56  ;;  %v6325_v50 = vld [vmem:[#allocation5 + $0x728] sm:$0xf]  ;;  %v8222_v15 = vld [vmem:[#allocation5 + $0x414] sm:$0xf0]  ;;  %v6070_v16 = vor.u32 %v8258_v9, %v6069_v6 }
 0x186   :  { %4623 = vmatpush.bf16.msrb.mxu2 %v6262_v2  ;;  %v4346_v2 = vpop.f32.mrf.mxu0  ;;  %v4359_v7 = vpop.f32.mrf.mxu1  ;;  %v5925_v14 = vld [vmem:[#allocation5 + $0x408] sm:$0xf]  ;;  %v8286_v27 = vld [vmem:[#allocation5 + $0x614] sm:$0xf0] }
 0x187   :  { %v6053_v21 = vld [vmem:[#allocation5 + $0x508] sm:$0xf]  ;;  %v8318_v26 = vld [vmem:[#allocation5 + $0x714] sm:$0xf0]  ;;  %v5926_v52 = vor.u32 %v8222_v15, %v5925_v14 }
 0x188   :  { %4636 = vmatpush.bf16.msrb.mxu3 %v6390_v5  ;;  %4598 = vmatpush.bf16.msrb.mxu0 %v5990_v11  ;;  %v8226_v5 = vld [vmem:[#allocation5 + $0x434] sm:$0xf0]  ;;  %v6181_v34 = vld [vmem:[#allocation5 + $0x608] sm:$0xf]  ;;  %v4372_v36 = vpop.f32.mrf.mxu2 }
 0x189   :  { %4611 = vmatpush.bf16.msrb.mxu1 %v6118_v12  ;;  %v8290_v11 = vld [vmem:[#allocation5 + $0x634] sm:$0xf0]  ;;  %v6309_v40 = vld [vmem:[#allocation5 + $0x708] sm:$0xf]  ;;  %v6182_v56 = vor.u32 %v8286_v27, %v6181_v34 }
 0x18a   :  { %4624 = vmatpush.bf16.msrb.mxu2 %v6246_v13  ;;  %v8322_v12 = vld [vmem:[#allocation5 + $0x734] sm:$0xf0]  ;;  %v5942_v13 = vor.u32 %v8226_v5, %v5941_v0  ;;  %v6198_v17 = vor.u32 %v8290_v11, %v6197_v10  ;;  %v6677_v51 = vld [vmem:[#allocation5 + $0x9e8] sm:$0xf]  ;;  %v6310_v59 = vor.u32 %v8318_v26, %v6309_v40 }
 0x18b   :  { %v6326_v39 = vor.u32 %v8322_v12, %v6325_v50  ;;  %v8410_v53 = vld [vmem:[#allocation5 + $0x9f4] sm:$0xf0]  ;;  %v6805_v54 = vld [vmem:[#allocation5 + $0xae8] sm:$0xf] }
 0x18c   :  { %4637 = vmatpush.bf16.msrb.mxu3 %v6374_v32  ;;  %4599 = vmatpush.bf16.msrb.mxu0 %v5974_v43  ;;  %v8254_v32 = vld [vmem:[#allocation5 + $0x514] sm:$0xf0]  ;;  %v4385_v43 = vpop.f32.mrf.mxu3  ;;  %v6933_v57 = vld [vmem:[#allocation5 + $0xbe8] sm:$0xf]  ;;  %v6678_v61 = vor.u32 %v8410_v53, %v6677_v51 }
 0x18d   :  { %4612 = vmatpush.bf16.msrb.mxu1 %v6102_v47  ;;  %v6549_v47 = vld [vmem:[#allocation5 + $0x8e8] sm:$0xf]  ;;  %v6054_v55 = vor.u32 %v8254_v32, %v6053_v21  ;;  %v8474_v58 = vld [vmem:[#allocation5 + $0xbf4] sm:$0xf0] }
 0x18e   :  { %4625 = vmatpush.bf16.msrb.mxu2 %v6230_v48  ;;  %v8378_v48 = vld [vmem:[#allocation5 + $0x8f4] sm:$0xf0]  ;;  %v6533_v2 = vld [vmem:[#allocation5 + $0x8c8] sm:$0xf]  ;;  %v6934_v0 = vor.u32 %v8474_v58, %v6933_v57 }
 0x18f   :  { %v6550_v60 = vor.u32 %v8378_v48, %v6549_v47  ;;  %v8406_v5 = vld [vmem:[#allocation5 + $0x9d4] sm:$0xf0]  ;;  %v6789_v6 = vld [vmem:[#allocation5 + $0xac8] sm:$0xf] }
 0x190   :  { %4638 = vmatpush.bf16.msrb.mxu3 %v6358_v24  ;;  %4600 = vmatpush.bf16.msrb.mxu0 %v5958_v63  ;;  %v8442_v24 = vld [vmem:[#allocation5 + $0xaf4] sm:$0xf0]  ;;  %v6517_v12 = vld [vmem:[#allocation5 + $0x8a8] sm:$0xf] }
 0x191   :  { %4613 = vmatpush.bf16.msrb.mxu1 %v6086_v3  ;;  %v6806_v63 = vor.u32 %v8442_v24, %v6805_v54  ;;  %v8374_v3 = vld [vmem:[#allocation5 + $0x8d4] sm:$0xf0]  ;;  %v6645_v14 = vld [vmem:[#allocation5 + $0x9a8] sm:$0xf] }
 0x192   :  { %4626 = vmatpush.bf16.msrb.mxu2 %v6214_v4  ;;  %v6661_v4 = vld [vmem:[#allocation5 + $0x9c8] sm:$0xf]  ;;  %v8438_v7 = vld [vmem:[#allocation5 + $0xad4] sm:$0xf0]  ;;  %v6534_v10 = vor.u32 %v8374_v3, %v6533_v2 }
 0x193   :  { %v8470_v9 = vld [vmem:[#allocation5 + $0xbd4] sm:$0xf0]  ;;  %v6662_v11 = vor.u32 %v8406_v5, %v6661_v4  ;;  %v6790_v50 = vor.u32 %v8438_v7, %v6789_v6  ;;  %v6901_v32 = vld [vmem:[#allocation5 + $0xba8] sm:$0xf] }
 0x194   :  { %4639 = vmatpush.bf16.msrb.mxu3 %v6342_v8  ;;  %4601 = vmatpush.bf16.msrb.mxu0 %v5942_v13  ;;  %v6917_v8 = vld [vmem:[#allocation5 + $0xbc8] sm:$0xf]  ;;  %v8370_v13 = vld [vmem:[#allocation5 + $0x8b4] sm:$0xf0] }
 0x195   :  { %4614 = vmatpush.bf16.msrb.mxu1 %v6070_v16  ;;  %v6918_v15 = vor.u32 %v8470_v9, %v6917_v8  ;;  %v8402_v16 = vld [vmem:[#allocation5 + $0x9b4] sm:$0xf0]  ;;  %v6518_v36 = vor.u32 %v8370_v13, %v6517_v12  ;;  %v6501_v40 = vld [vmem:[#allocation5 + $0x888] sm:$0xf] }
 0x196   :  { %4627 = vmatpush.bf16.msrb.mxu2 %v6198_v17  ;;  %v6773_v17 = vld [vmem:[#allocation5 + $0xaa8] sm:$0xf]  ;;  %v8434_v21 = vld [vmem:[#allocation5 + $0xab4] sm:$0xf0] }
 0x197   :  { %v8466_v34 = vld [vmem:[#allocation5 + $0xbb4] sm:$0xf0]  ;;  %v6774_v27 = vor.u32 %v8434_v21, %v6773_v17  ;;  %v6629_v43 = vld [vmem:[#allocation5 + $0x988] sm:$0xf] }
 0x198   :  { %4640 = vmatpush.bf16.msrb.mxu3 %v6326_v39  ;;  %4602 = vmatpush.bf16.msrb.mxu0 %v5926_v52  ;;  %v6646_v39 = vor.u32 %v8402_v16, %v6645_v14  ;;  %v8366_v26 = vld [vmem:[#allocation5 + $0x894] sm:$0xf0]  ;;  %v6902_v47 = vor.u32 %v8466_v34, %v6901_v32  ;;  %v6757_v51 = vld [vmem:[#allocation5 + $0xa88] sm:$0xf]  ;;  %v4396_v53 = vpop.f32.mrf.mxu0 }
 0x199   :  { %4615 = vmatpush.bf16.msrb.mxu1 %v6054_v55  ;;  %v8398_v48 = vld [vmem:[#allocation5 + $0x994] sm:$0xf0]  ;;  %v6885_v54 = vld [vmem:[#allocation5 + $0xb88] sm:$0xf]  ;;  %v4397_v55 = vadd.f32 %v4396_v53, %v9085_v1 }
 0x19a   :  { %4628 = vmatpush.bf16.msrb.mxu2 %v6182_v56  ;;  %v8430_v52 = vld [vmem:[#allocation5 + $0xa94] sm:$0xf0]  ;;  %v6502_v56 = vor.u32 %v8366_v26, %v6501_v40  ;;  %v6630_v58 = vor.u32 %v8398_v48, %v6629_v43  ;;  %v6869_v6 = vld [vmem:[#allocation5 + $0xb68] sm:$0xf] }
 0x19b   :  { %4603 = vmatmul.bf16.vlgmr.msrb.gmra.mxu0 %v8998_v41  ;;  %v8462_v24 = vld [vmem:[#allocation5 + $0xb94] sm:$0xf0]  ;;  %v4409_v57 = vpop.f32.mrf.mxu1  ;;  %v6853_v32 = vld [vmem:[#allocation5 + $0xb48] sm:$0xf] }
 0x19c   :  { %4641 = vmatpush.bf16.msrb.mxu3 %v6310_v59  ;;  %4647 = vmatpush.bf16.msra.mxu0 %v6550_v60  ;;  %v6758_v59 = vor.u32 %v8430_v52, %v6757_v51  ;;  %v6485_v60 = vld [vmem:[#allocation5 + $0x868] sm:$0xf]  ;;  %v6886_v2 = vor.u32 %v8462_v24, %v6885_v54  ;;  %v4410_v3 = vadd.f32 %v4409_v57, %v4397_v55  ;;  %v8394_v4 = vld [vmem:[#allocation5 + $0x974] sm:$0xf0] }
 0x19d   :  { %4660 = vmatpush.bf16.msra.mxu1 %v6678_v61  ;;  %4629 = vmatmul.bf16.vlgmr.msrb.gmra.mxu2 %v8996_v38  ;;  %v8362_v61 = vld [vmem:[#allocation5 + $0x874] sm:$0xf0]  ;;  %v6581_v51 = vld [vmem:[#allocation5 + $0x928] sm:$0xf] }
 0x19e   :  { %4673 = vmatpush.bf16.msra.mxu2 %v6806_v63  ;;  %4616 = vmatmul.bf16.vlgmr.msrb.gmra.mxu1 %v9002_v44  ;;  %v6613_v63 = vld [vmem:[#allocation5 + $0x968] sm:$0xf]  ;;  %v8426_v5 = vld [vmem:[#allocation5 + $0xa74] sm:$0xf0]  ;;  %v6486_v8 = vor.u32 %v8362_v61, %v6485_v60 }
 0x19f   :  { %4642 = vmatmul.bf16.vlgmr.msrb.gmra.mxu3 %v9000_v42  ;;  %v8458_v7 = vld [vmem:[#allocation5 + $0xb74] sm:$0xf0]  ;;  %v6614_v1 = vor.u32 %v8394_v4, %v6613_v63  ;;  %v6709_v54 = vld [vmem:[#allocation5 + $0xa28] sm:$0xf] }
 0x1a0   :  { %4686 = vmatpush.bf16.msra.mxu3 %v6934_v0  ;;  %4648 = vmatpush.bf16.msra.mxu0 %v6534_v10  ;;  %v6741_v0 = vld [vmem:[#allocation5 + $0xa68] sm:$0xf]  ;;  %v6870_v12 = vor.u32 %v8458_v7, %v6869_v6  ;;  %v4422_v13 = vpop.f32.mrf.mxu2  ;;  %v8390_v14 = vld [vmem:[#allocation5 + $0x954] sm:$0xf0] }
 0x1a1   :  { %4661 = vmatpush.bf16.msra.mxu1 %v6662_v11  ;;  %v6742_v9 = vor.u32 %v8426_v5, %v6741_v0  ;;  %v6469_v10 = vld [vmem:[#allocation5 + $0x848] sm:$0xf]  ;;  %v8358_v11 = vld [vmem:[#allocation5 + $0x854] sm:$0xf0]  ;;  %v4423_v17 = vadd.f32 %v4422_v13, %v4410_v3 }
 0x1a2   :  { %4674 = vmatpush.bf16.msra.mxu2 %v6790_v50  ;;  %v6597_v50 = vld [vmem:[#allocation5 + $0x948] sm:$0xf]  ;;  %v8422_v16 = vld [vmem:[#allocation5 + $0xa54] sm:$0xf0]  ;;  %v4435_v21 = vpop.f32.mrf.mxu3 }
 0x1a3   :  { %v8454_v34 = vld [vmem:[#allocation5 + $0xb54] sm:$0xf0]  ;;  %v9092_v40 = vadd.f32 %v4435_v21, %v4423_v17  ;;  %v6598_v26 = vor.u32 %v8390_v14, %v6597_v50  ;;  %v6837_v55 = vld [vmem:[#allocation5 + $0xb28] sm:$0xf] }
 0x1a4   :  { %4687 = vmatpush.bf16.msra.mxu3 %v6918_v15  ;;  %4649 = vmatpush.bf16.msra.mxu0 %v6518_v36  ;;  %v6725_v15 = vld [vmem:[#allocation5 + $0xa48] sm:$0xf]  ;;  %v4398_v36 = vpop.f32.mrf.mxu0  ;;  %v8354_v48 = vld [vmem:[#allocation5 + $0x834] sm:$0xf0]  ;;  %v6854_v52 = vor.u32 %v8454_v34, %v6853_v32 }
 0x1a5   :  { %4662 = vmatpush.bf16.msra.mxu1 %v6646_v39  ;;  %v6470_v39 = vor.u32 %v8358_v11, %v6469_v10  ;;  %v6726_v43 = vor.u32 %v8422_v16, %v6725_v15  ;;  %v8386_v53 = vld [vmem:[#allocation5 + $0x934] sm:$0xf0]  ;;  %v6565_v63 = vld [vmem:[#allocation5 + $0x908] sm:$0xf] }
 0x1a6   :  { %4675 = vmatpush.bf16.msra.mxu2 %v6774_v27  ;;  %v4411_v27 = vpop.f32.mrf.mxu1  ;;  %v8418_v24 = vld [vmem:[#allocation5 + $0xa34] sm:$0xf0]  ;;  %v6582_v60 = vor.u32 %v8386_v53, %v6581_v51  ;;  %v6693_v3 = vld [vmem:[#allocation5 + $0xa08] sm:$0xf] }
 0x1a7   :  { %v6710_v61 = vor.u32 %v8418_v24, %v6709_v54  ;;  %v8414_v0 = vld [vmem:[#allocation5 + $0xa14] sm:$0xf0]  ;;  %v6821_v5 = vld [vmem:[#allocation5 + $0xb08] sm:$0xf] }
 0x1a8   :  { %4688 = vmatpush.bf16.msra.mxu3 %v6902_v47  ;;  %4650 = vmatpush.bf16.msra.mxu0 %v6502_v56  ;;  %v6453_v47 = vld [vmem:[#allocation5 + $0x828] sm:$0xf]  ;;  %v8450_v56 = vld [vmem:[#allocation5 + $0xb34] sm:$0xf0]  ;;  %v4424_v7 = vpop.f32.mrf.mxu2  ;;  %v6694_v15 = vor.u32 %v8414_v0, %v6693_v3 }
 0x1a9   :  { %4663 = vmatpush.bf16.msra.mxu1 %v6630_v58  ;;  %v6454_v57 = vor.u32 %v8354_v48, %v6453_v47  ;;  %v6437_v58 = vld [vmem:[#allocation5 + $0x808] sm:$0xf]  ;;  %v6838_v4 = vor.u32 %v8450_v56, %v6837_v55  ;;  %v8446_v6 = vld [vmem:[#allocation5 + $0xb14] sm:$0xf0] }
 0x1aa   :  { %4676 = vmatpush.bf16.msra.mxu2 %v6758_v59  ;;  %v8350_v59 = vld [vmem:[#allocation5 + $0x814] sm:$0xf0]  ;;  %v4437_v10 = vpop.f32.mrf.mxu3  ;;  %v7445_v16 = vld [vmem:[#allocation5 + $0xfe8] sm:$0xf]  ;;  %v6822_v21 = vor.u32 %v8446_v6, %v6821_v5 }
 0x1ab   :  { %v6438_v11 = vor.u32 %v8350_v59, %v6437_v58  ;;  %v8538_v50 = vld [vmem:[#allocation5 + $0xdf4] sm:$0xf0]  ;;  %v7301_v48 = vld [vmem:[#allocation5 + $0xec8] sm:$0xf] }
 0x1ac   :  { %4689 = vmatpush.bf16.msra.mxu3 %v6886_v2  ;;  %4651 = vmatpush.bf16.msra.mxu0 %v6486_v8  ;;  %v8382_v2 = vld [vmem:[#allocation5 + $0x914] sm:$0xf0]  ;;  %v7061_v8 = vld [vmem:[#allocation5 + $0xce8] sm:$0xf] }
 0x1ad   :  { %4664 = vmatpush.bf16.msra.mxu1 %v6614_v1  ;;  %v8506_v1 = vld [vmem:[#allocation5 + $0xcf4] sm:$0xf0]  ;;  %v6566_v14 = vor.u32 %v8382_v2, %v6565_v63  ;;  %v7029_v56 = vld [vmem:[#allocation5 + $0xca8] sm:$0xf] }
 0x1ae   :  { %4677 = vmatpush.bf16.msra.mxu2 %v6742_v9  ;;  %v7189_v9 = vld [vmem:[#allocation5 + $0xde8] sm:$0xf]  ;;  %v8570_v13 = vld [vmem:[#allocation5 + $0xef4] sm:$0xf0]  ;;  %v7062_v32 = vor.u32 %v8506_v1, %v7061_v8 }
 0x1af   :  { %v8602_v17 = vld [vmem:[#allocation5 + $0xff4] sm:$0xf0]  ;;  %v7190_v34 = vor.u32 %v8538_v50, %v7189_v9  ;;  %v7157_v58 = vld [vmem:[#allocation5 + $0xda8] sm:$0xf] }
 0x1b0   :  { %4690 = vmatpush.bf16.msra.mxu3 %v6870_v12  ;;  %4652 = vmatpush.bf16.msra.mxu0 %v6470_v39  ;;  %v7317_v12 = vld [vmem:[#allocation5 + $0xee8] sm:$0xf]  ;;  %v8502_v27 = vld [vmem:[#allocation5 + $0xcd4] sm:$0xf0] }
 0x1b1   :  { %4665 = vmatpush.bf16.msra.mxu1 %v6598_v26  ;;  %v7318_v36 = vor.u32 %v8570_v13, %v7317_v12  ;;  %v7045_v39 = vld [vmem:[#allocation5 + $0xcc8] sm:$0xf]  ;;  %v8534_v47 = vld [vmem:[#allocation5 + $0xdd4] sm:$0xf0] }
 0x1b2   :  { %4678 = vmatpush.bf16.msra.mxu2 %v6726_v43  ;;  %v7173_v26 = vld [vmem:[#allocation5 + $0xdc8] sm:$0xf]  ;;  %v7446_v43 = vor.u32 %v8602_v17, %v7445_v16  ;;  %v8566_v51 = vld [vmem:[#allocation5 + $0xed4] sm:$0xf0]  ;;  %v7046_v54 = vor.u32 %v8502_v27, %v7045_v39 }
 0x1b3   :  { %v8598_v53 = vld [vmem:[#allocation5 + $0xfd4] sm:$0xf0]  ;;  %v7174_v24 = vor.u32 %v8534_v47, %v7173_v26  ;;  %v7302_v55 = vor.u32 %v8566_v51, %v7301_v48  ;;  %v7413_v2 = vld [vmem:[#allocation5 + $0xfa8] sm:$0xf] }
 0x1b4   :  { %4691 = vmatpush.bf16.msra.mxu3 %v6854_v52  ;;  %4653 = vmatpush.bf16.msra.mxu0 %v6454_v57  ;;  %v7429_v52 = vld [vmem:[#allocation5 + $0xfc8] sm:$0xf]  ;;  %v8498_v57 = vld [vmem:[#allocation5 + $0xcb4] sm:$0xf0] }
 0x1b5   :  { %4666 = vmatpush.bf16.msra.mxu1 %v6582_v60  ;;  %v7430_v59 = vor.u32 %v8598_v53, %v7429_v52  ;;  %v8530_v60 = vld [vmem:[#allocation5 + $0xdb4] sm:$0xf0]  ;;  %v7013_v6 = vld [vmem:[#allocation5 + $0xc88] sm:$0xf] }
 0x1b6   :  { %4679 = vmatpush.bf16.msra.mxu2 %v6710_v61  ;;  %v7285_v61 = vld [vmem:[#allocation5 + $0xea8] sm:$0xf]  ;;  %v8562_v63 = vld [vmem:[#allocation5 + $0xeb4] sm:$0xf0]  ;;  %v7158_v0 = vor.u32 %v8530_v60, %v7157_v58 }
 0x1b7   :  { %v8594_v3 = vld [vmem:[#allocation5 + $0xfb4] sm:$0xf0]  ;;  %v7286_v5 = vor.u32 %v8562_v63, %v7285_v61  ;;  %v7141_v8 = vld [vmem:[#allocation5 + $0xd88] sm:$0xf] }
 0x1b8   :  { %4692 = vmatpush.bf16.msra.mxu3 %v6838_v4  ;;  %4654 = vmatpush.bf16.msra.mxu0 %v6438_v11  ;;  %v7030_v4 = vor.u32 %v8498_v57, %v7029_v56  ;;  %v8494_v7 = vld [vmem:[#allocation5 + $0xc94] sm:$0xf0]  ;;  %v7414_v1 = vor.u32 %v8594_v3, %v7413_v2  ;;  %v7269_v10 = vld [vmem:[#allocation5 + $0xe88] sm:$0xf]  ;;  %v4448_v50 = vpop.f32.mrf.mxu0 }
 0x1b9   :  { %4667 = vmatpush.bf16.msra.mxu1 %v6566_v14  ;;  %v8526_v9 = vld [vmem:[#allocation5 + $0xd94] sm:$0xf0]  ;;  %v7397_v12 = vld [vmem:[#allocation5 + $0xf88] sm:$0xf]  ;;  %v4449_v14 = vadd.f32 %v4448_v50, %v9092_v40 }
 0x1ba   :  { %4680 = vmatpush.bf16.msra.mxu2 %v6694_v15  ;;  %v8558_v11 = vld [vmem:[#allocation5 + $0xe94] sm:$0xf0]  ;;  %v7014_v15 = vor.u32 %v8494_v7, %v7013_v6  ;;  %v7142_v17 = vor.u32 %v8526_v9, %v7141_v8  ;;  %v7381_v48 = vld [vmem:[#allocation5 + $0xf68] sm:$0xf] }
 0x1bb   :  { %4655 = vmatmul.bf16.vlgmr.msra.gmra.mxu0 %v9008_v25  ;;  %v8590_v13 = vld [vmem:[#allocation5 + $0xf94] sm:$0xf0]  ;;  %v4461_v16 = vpop.f32.mrf.mxu1  ;;  %v7365_v2 = vld [vmem:[#allocation5 + $0xf48] sm:$0xf] }
 0x1bc   :  { %4693 = vmatpush.bf16.msra.mxu3 %v6822_v21  ;;  %4699 = vmatpush.bf16.msrb.mxu0 %v7062_v32  ;;  %v7270_v21 = vor.u32 %v8558_v11, %v7269_v10  ;;  %v6997_v32 = vld [vmem:[#allocation5 + $0xc68] sm:$0xf]  ;;  %v7398_v39 = vor.u32 %v8590_v13, %v7397_v12  ;;  %v4462_v27 = vadd.f32 %v4461_v16, %v4449_v14  ;;  %v8522_v26 = vld [vmem:[#allocation5 + $0xd74] sm:$0xf0] }
 0x1bd   :  { %4712 = vmatpush.bf16.msrb.mxu1 %v7190_v34  ;;  %4681 = vmatmul.bf16.vlgmr.msra.gmra.mxu2 %v9010_v29  ;;  %v8490_v34 = vld [vmem:[#allocation5 + $0xc74] sm:$0xf0]  ;;  %v7093_v10 = vld [vmem:[#allocation5 + $0xd28] sm:$0xf] }
 0x1be   :  { %4725 = vmatpush.bf16.msrb.mxu2 %v7318_v36  ;;  %4668 = vmatmul.bf16.vlgmr.msra.gmra.mxu1 %v9012_v30  ;;  %v7125_v36 = vld [vmem:[#allocation5 + $0xd68] sm:$0xf]  ;;  %v8554_v47 = vld [vmem:[#allocation5 + $0xe74] sm:$0xf0]  ;;  %v6998_v52 = vor.u32 %v8490_v34, %v6997_v32 }
 0x1bf   :  { %4694 = vmatmul.bf16.vlgmr.msra.gmra.mxu3 %v9014_v33  ;;  %v8586_v51 = vld [vmem:[#allocation5 + $0xf74] sm:$0xf0]  ;;  %v7126_v40 = vor.u32 %v8522_v26, %v7125_v36  ;;  %v7221_v12 = vld [vmem:[#allocation5 + $0xe28] sm:$0xf] }
 0x1c0   :  { %4738 = vmatpush.bf16.msrb.mxu3 %v7446_v43  ;;  %4700 = vmatpush.bf16.msrb.mxu0 %v7046_v54  ;;  %v7253_v43 = vld [vmem:[#allocation5 + $0xe68] sm:$0xf]  ;;  %v7382_v56 = vor.u32 %v8586_v51, %v7381_v48  ;;  %v4474_v57 = vpop.f32.mrf.mxu2  ;;  %v8518_v58 = vld [vmem:[#allocation5 + $0xd54] sm:$0xf0] }
 0x1c1   :  { %4713 = vmatpush.bf16.msrb.mxu1 %v7174_v24  ;;  %v7254_v53 = vor.u32 %v8554_v47, %v7253_v43  ;;  %v6981_v54 = vld [vmem:[#allocation5 + $0xc48] sm:$0xf]  ;;  %v8486_v24 = vld [vmem:[#allocation5 + $0xc54] sm:$0xf0]  ;;  %v4475_v61 = vadd.f32 %v4474_v57, %v4462_v27 }
 0x1c2   :  { %4726 = vmatpush.bf16.msrb.mxu2 %v7302_v55  ;;  %v7109_v55 = vld [vmem:[#allocation5 + $0xd48] sm:$0xf]  ;;  %v8550_v60 = vld [vmem:[#allocation5 + $0xe54] sm:$0xf0]  ;;  %v4487_v63 = vpop.f32.mrf.mxu3 }
 0x1c3   :  { %v8582_v3 = vld [vmem:[#allocation5 + $0xf54] sm:$0xf0]  ;;  %v9099_v6 = vadd.f32 %v4487_v63, %v4475_v61  ;;  %v7110_v7 = vor.u32 %v8518_v58, %v7109_v55  ;;  %v7349_v14 = vld [vmem:[#allocation5 + $0xf28] sm:$0xf] }
 0x1c4   :  { %4739 = vmatpush.bf16.msrb.mxu3 %v7430_v59  ;;  %4701 = vmatpush.bf16.msrb.mxu0 %v7030_v4  ;;  %v7237_v59 = vld [vmem:[#allocation5 + $0xe48] sm:$0xf]  ;;  %v4450_v4 = vpop.f32.mrf.mxu0  ;;  %v8482_v9 = vld [vmem:[#allocation5 + $0xc34] sm:$0xf0]  ;;  %v7366_v11 = vor.u32 %v8582_v3, %v7365_v2 }
 0x1c5   :  { %4714 = vmatpush.bf16.msrb.mxu1 %v7158_v0  ;;  %v6982_v0 = vor.u32 %v8486_v24, %v6981_v54  ;;  %v7238_v8 = vor.u32 %v8550_v60, %v7237_v59  ;;  %v8514_v50 = vld [vmem:[#allocation5 + $0xd34] sm:$0xf0]  ;;  %v7077_v36 = vld [vmem:[#allocation5 + $0xd08] sm:$0xf] }
 0x1c6   :  { %4727 = vmatpush.bf16.msrb.mxu2 %v7286_v5  ;;  %v4463_v5 = vpop.f32.mrf.mxu1  ;;  %v8546_v13 = vld [vmem:[#allocation5 + $0xe34] sm:$0xf0]  ;;  %v7094_v32 = vor.u32 %v8514_v50, %v7093_v10  ;;  %v7205_v27 = vld [vmem:[#allocation5 + $0xe08] sm:$0xf] }
 0x1c7   :  { %v7222_v34 = vor.u32 %v8546_v13, %v7221_v12  ;;  %v8542_v43 = vld [vmem:[#allocation5 + $0xe14] sm:$0xf0]  ;;  %v7333_v47 = vld [vmem:[#allocation5 + $0xf08] sm:$0xf] }
 0x1c8   :  { %4740 = vmatpush.bf16.msrb.mxu3 %v7414_v1  ;;  %4702 = vmatpush.bf16.msrb.mxu0 %v7014_v15  ;;  %v6965_v1 = vld [vmem:[#allocation5 + $0xc28] sm:$0xf]  ;;  %v8578_v15 = vld [vmem:[#allocation5 + $0xf34] sm:$0xf0]  ;;  %v4476_v51 = vpop.f32.mrf.mxu2  ;;  %v7206_v59 = vor.u32 %v8542_v43, %v7205_v27 }
 0x1c9   :  { %4715 = vmatpush.bf16.msrb.mxu1 %v7142_v17  ;;  %v6966_v16 = vor.u32 %v8482_v9, %v6965_v1  ;;  %v6949_v17 = vld [vmem:[#allocation5 + $0xc08] sm:$0xf]  ;;  %v7350_v26 = vor.u32 %v8578_v15, %v7349_v14  ;;  %v8574_v48 = vld [vmem:[#allocation5 + $0xf14] sm:$0xf0] }
 0x1ca   :  { %4728 = vmatpush.bf16.msrb.mxu2 %v7270_v21  ;;  %v8478_v21 = vld [vmem:[#allocation5 + $0xc14] sm:$0xf0]  ;;  %v4489_v54 = vpop.f32.mrf.mxu3  ;;  %v7957_v60 = vld [vmem:[#allocation5 + $0x13e8] sm:$0xf]  ;;  %v7334_v63 = vor.u32 %v8574_v48, %v7333_v47 }
 0x1cb   :  { %v6950_v24 = vor.u32 %v8478_v21, %v6949_v17  ;;  %v8666_v55 = vld [vmem:[#allocation5 + $0x11f4] sm:$0xf0]  ;;  %v7813_v9 = vld [vmem:[#allocation5 + $0x12c8] sm:$0xf] }
 0x1cc   :  { %4741 = vmatpush.bf16.msrb.mxu3 %v7398_v39  ;;  %4703 = vmatpush.bf16.msrb.mxu0 %v6998_v52  ;;  %v8510_v39 = vld [vmem:[#allocation5 + $0xd14] sm:$0xf0]  ;;  %v7573_v52 = vld [vmem:[#allocation5 + $0x10e8] sm:$0xf] }
 0x1cd   :  { %4716 = vmatpush.bf16.msrb.mxu1 %v7126_v40  ;;  %v8634_v40 = vld [vmem:[#allocation5 + $0x10f4] sm:$0xf0]  ;;  %v7078_v58 = vor.u32 %v8510_v39, %v7077_v36  ;;  %v7541_v15 = vld [vmem:[#allocation5 + $0x10a8] sm:$0xf] }
 0x1ce   :  { %4729 = vmatpush.bf16.msrb.mxu2 %v7254_v53  ;;  %v7701_v53 = vld [vmem:[#allocation5 + $0x11e8] sm:$0xf]  ;;  %v8698_v57 = vld [vmem:[#allocation5 + $0x12f4] sm:$0xf0]  ;;  %v7574_v2 = vor.u32 %v8634_v40, %v7573_v52 }
 0x1cf   :  { %v8730_v61 = vld [vmem:[#allocation5 + $0x13f4] sm:$0xf0]  ;;  %v7702_v3 = vor.u32 %v8666_v55, %v7701_v53  ;;  %v7669_v17 = vld [vmem:[#allocation5 + $0x11a8] sm:$0xf] }
 0x1d0   :  { %4742 = vmatpush.bf16.msrb.mxu3 %v7382_v56  ;;  %4704 = vmatpush.bf16.msrb.mxu0 %v6982_v0  ;;  %v7829_v56 = vld [vmem:[#allocation5 + $0x12e8] sm:$0xf]  ;;  %v8630_v5 = vld [vmem:[#allocation5 + $0x10d4] sm:$0xf0] }
 0x1d1   :  { %4717 = vmatpush.bf16.msrb.mxu1 %v7110_v7  ;;  %v7830_v4 = vor.u32 %v8698_v57, %v7829_v56  ;;  %v7557_v0 = vld [vmem:[#allocation5 + $0x10c8] sm:$0xf]  ;;  %v8662_v1 = vld [vmem:[#allocation5 + $0x11d4] sm:$0xf0] }
 0x1d2   :  { %4730 = vmatpush.bf16.msrb.mxu2 %v7238_v8  ;;  %v7685_v7 = vld [vmem:[#allocation5 + $0x11c8] sm:$0xf]  ;;  %v7958_v8 = vor.u32 %v8730_v61, %v7957_v60  ;;  %v8694_v10 = vld [vmem:[#allocation5 + $0x12d4] sm:$0xf0]  ;;  %v7558_v12 = vor.u32 %v8630_v5, %v7557_v0 }
 0x1d3   :  { %v8726_v50 = vld [vmem:[#allocation5 + $0x13d4] sm:$0xf0]  ;;  %v7686_v13 = vor.u32 %v8662_v1, %v7685_v7  ;;  %v7814_v14 = vor.u32 %v8694_v10, %v7813_v9  ;;  %v7925_v39 = vld [vmem:[#allocation5 + $0x13a8] sm:$0xf] }
 0x1d4   :  { %4743 = vmatpush.bf16.msrb.mxu3 %v7366_v11  ;;  %4705 = vmatpush.bf16.msrb.mxu0 %v6966_v16  ;;  %v7941_v11 = vld [vmem:[#allocation5 + $0x13c8] sm:$0xf]  ;;  %v8626_v16 = vld [vmem:[#allocation5 + $0x10b4] sm:$0xf0] }
 0x1d5   :  { %4718 = vmatpush.bf16.msrb.mxu1 %v7094_v32  ;;  %v7942_v21 = vor.u32 %v8726_v50, %v7941_v11  ;;  %v8658_v32 = vld [vmem:[#allocation5 + $0x11b4] sm:$0xf0]  ;;  %v7525_v48 = vld [vmem:[#allocation5 + $0x1088] sm:$0xf] }
 0x1d6   :  { %4731 = vmatpush.bf16.msrb.mxu2 %v7222_v34  ;;  %v7797_v34 = vld [vmem:[#allocation5 + $0x12a8] sm:$0xf]  ;;  %v8690_v36 = vld [vmem:[#allocation5 + $0x12b4] sm:$0xf0]  ;;  %v7670_v43 = vor.u32 %v8658_v32, %v7669_v17 }
 0x1d7   :  { %v8722_v27 = vld [vmem:[#allocation5 + $0x13b4] sm:$0xf0]  ;;  %v7798_v47 = vor.u32 %v8690_v36, %v7797_v34  ;;  %v7653_v52 = vld [vmem:[#allocation5 + $0x1188] sm:$0xf] }
 0x1d8   :  { %4744 = vmatpush.bf16.msrb.mxu3 %v7350_v26  ;;  %4706 = vmatpush.bf16.msrb.mxu0 %v6950_v24  ;;  %v7542_v26 = vor.u32 %v8626_v16, %v7541_v15  ;;  %v8622_v51 = vld [vmem:[#allocation5 + $0x1094] sm:$0xf0]  ;;  %v7926_v40 = vor.u32 %v8722_v27, %v7925_v39  ;;  %v7781_v54 = vld [vmem:[#allocation5 + $0x1288] sm:$0xf]  ;;  %v4500_v55 = vpop.f32.mrf.mxu0 }
 0x1d9   :  { %4719 = vmatpush.bf16.msrb.mxu1 %v7078_v58  ;;  %v8654_v53 = vld [vmem:[#allocation5 + $0x1194] sm:$0xf0]  ;;  %v7909_v56 = vld [vmem:[#allocation5 + $0x1388] sm:$0xf]  ;;  %v4501_v58 = vadd.f32 %v4500_v55, %v9099_v6 }
 0x1da   :  { %4732 = vmatpush.bf16.msrb.mxu2 %v7206_v59  ;;  %v8686_v24 = vld [vmem:[#allocation5 + $0x1294] sm:$0xf0]  ;;  %v7526_v59 = vor.u32 %v8622_v51, %v7525_v48  ;;  %v7654_v61 = vor.u32 %v8654_v53, %v7653_v52  ;;  %v7893_v9 = vld [vmem:[#allocation5 + $0x1368] sm:$0xf] }
 0x1db   :  { %4707 = vmatmul.bf16.vlgmr.msrb.gmra.mxu0 %v9020_v23  ;;  %v8718_v57 = vld [vmem:[#allocation5 + $0x1394] sm:$0xf0]  ;;  %v4513_v60 = vpop.f32.mrf.mxu1  ;;  %v7877_v39 = vld [vmem:[#allocation5 + $0x1348] sm:$0xf] }
 0x1dc   :  { %4745 = vmatpush.bf16.msrb.mxu3 %v7334_v63  ;;  %4751 = vmatpush.bf16.msra.mxu0 %v7574_v2  ;;  %v7782_v63 = vor.u32 %v8686_v24, %v7781_v54  ;;  %v7509_v2 = vld [vmem:[#allocation5 + $0x1068] sm:$0xf]  ;;  %v7910_v0 = vor.u32 %v8718_v57, %v7909_v56  ;;  %v4514_v5 = vadd.f32 %v4513_v60, %v4501_v58  ;;  %v8650_v7 = vld [vmem:[#allocation5 + $0x1174] sm:$0xf0] }
 0x1dd   :  { %4764 = vmatpush.bf16.msra.mxu1 %v7702_v3  ;;  %4733 = vmatmul.bf16.vlgmr.msrb.gmra.mxu2 %v9022_v28  ;;  %v8618_v3 = vld [vmem:[#allocation5 + $0x1074] sm:$0xf0]  ;;  %v7605_v54 = vld [vmem:[#allocation5 + $0x1128] sm:$0xf] }
 0x1de   :  { %4777 = vmatpush.bf16.msra.mxu2 %v7830_v4  ;;  %4720 = vmatmul.bf16.vlgmr.msrb.gmra.mxu1 %v9024_v31  ;;  %v7637_v4 = vld [vmem:[#allocation5 + $0x1168] sm:$0xf]  ;;  %v8682_v1 = vld [vmem:[#allocation5 + $0x1274] sm:$0xf0]  ;;  %v7510_v11 = vor.u32 %v8618_v3, %v7509_v2 }
 0x1df   :  { %4746 = vmatmul.bf16.vlgmr.msrb.gmra.mxu3 %v9026_v35  ;;  %v8714_v10 = vld [vmem:[#allocation5 + $0x1374] sm:$0xf0]  ;;  %v7638_v6 = vor.u32 %v8650_v7, %v7637_v4  ;;  %v7733_v56 = vld [vmem:[#allocation5 + $0x1228] sm:$0xf] }
 0x1e0   :  { %4790 = vmatpush.bf16.msra.mxu3 %v7958_v8  ;;  %4752 = vmatpush.bf16.msra.mxu0 %v7558_v12  ;;  %v7765_v8 = vld [vmem:[#allocation5 + $0x1268] sm:$0xf]  ;;  %v7894_v15 = vor.u32 %v8714_v10, %v7893_v9  ;;  %v4526_v16 = vpop.f32.mrf.mxu2  ;;  %v8646_v17 = vld [vmem:[#allocation5 + $0x1154] sm:$0xf0] }
 0x1e1   :  { %4765 = vmatpush.bf16.msra.mxu1 %v7686_v13  ;;  %v7766_v50 = vor.u32 %v8682_v1, %v7765_v8  ;;  %v7493_v12 = vld [vmem:[#allocation5 + $0x1048] sm:$0xf]  ;;  %v8614_v13 = vld [vmem:[#allocation5 + $0x1054] sm:$0xf0]  ;;  %v4527_v34 = vadd.f32 %v4526_v16, %v4514_v5  ;;  %v5783_v16 = vld [vmem:[#allocation5 + $0x2f8] sm:$0xf0] }
 0x1e2   :  { %4778 = vmatpush.bf16.msra.mxu2 %v7814_v14  ;;  %v7621_v14 = vld [vmem:[#allocation5 + $0x1148] sm:$0xf]  ;;  %v8678_v32 = vld [vmem:[#allocation5 + $0x1254] sm:$0xf0]  ;;  %v4539_v36 = vpop.f32.mrf.mxu3 }
 0x1e3   :  { %v8710_v27 = vld [vmem:[#allocation5 + $0x1354] sm:$0xf0]  ;;  %v9106_v48 = vadd.f32 %v4539_v36, %v4527_v34  ;;  %v7622_v51 = vor.u32 %v8646_v17, %v7621_v14  ;;  %v7861_v58 = vld [vmem:[#allocation5 + $0x1328] sm:$0xf]  ;;  %v5655_v14 = vld [vmem:[#allocation5 + $0x1f8] sm:$0xf0] }
 0x1e4   :  { %4791 = vmatpush.bf16.msra.mxu3 %v7942_v21  ;;  %4753 = vmatpush.bf16.msra.mxu0 %v7542_v26  ;;  %v7749_v21 = vld [vmem:[#allocation5 + $0x1248] sm:$0xf]  ;;  %v4502_v26 = vpop.f32.mrf.mxu0  ;;  %v8610_v53 = vld [vmem:[#allocation5 + $0x1034] sm:$0xf0]  ;;  %v7878_v24 = vor.u32 %v8710_v27, %v7877_v39  ;;  %v5911_v34 = vld [vmem:[#allocation5 + $0x3f8] sm:$0xf0] }
 0x1e5   :  { %4766 = vmatpush.bf16.msra.mxu1 %v7670_v43  ;;  %v7494_v43 = vor.u32 %v8614_v13, %v7493_v12  ;;  %v7750_v52 = vor.u32 %v8678_v32, %v7749_v21  ;;  %v8642_v55 = vld [vmem:[#allocation5 + $0x1134] sm:$0xf0]  ;;  %v7589_v4 = vld [vmem:[#allocation5 + $0x1108] sm:$0xf]  ;;  %v8216_v32 = vld [vmem:[#allocation5 + $0x3ec] sm:$0xf] }
 0x1e6   :  { %4779 = vmatpush.bf16.msra.mxu2 %v7798_v47  ;;  %v4515_v47 = vpop.f32.mrf.mxu1  ;;  %v8674_v57 = vld [vmem:[#allocation5 + $0x1234] sm:$0xf0]  ;;  %v7606_v2 = vor.u32 %v8642_v55, %v7605_v54  ;;  %v7717_v5 = vld [vmem:[#allocation5 + $0x1208] sm:$0xf]  ;;  %v5767_v54 = vld [vmem:[#allocation5 + $0x2d8] sm:$0xf0] }
 0x1e7   :  { %v7734_v3 = vor.u32 %v8674_v57, %v7733_v56  ;;  %v8670_v8 = vld [vmem:[#allocation5 + $0x1214] sm:$0xf0]  ;;  %v7845_v1 = vld [vmem:[#allocation5 + $0x1308] sm:$0xf]  ;;  %v5511_v47 = vld [vmem:[#allocation5 + $0xd8] sm:$0xf0] }
 0x1e8   :  { %4792 = vmatpush.bf16.msra.mxu3 %v7926_v40  ;;  %4754 = vmatpush.bf16.msra.mxu0 %v7526_v59  ;;  %v7477_v40 = vld [vmem:[#allocation5 + $0x1028] sm:$0xf]  ;;  %v8706_v59 = vld [vmem:[#allocation5 + $0x1334] sm:$0xf0]  ;;  %v4528_v10 = vpop.f32.mrf.mxu2  ;;  %v7718_v21 = vor.u32 %v8670_v8, %v7717_v5  ;;  %v5895_v55 = vld [vmem:[#allocation5 + $0x3d8] sm:$0xf0] }
 0x1e9   :  { %4767 = vmatpush.bf16.msra.mxu1 %v7654_v61  ;;  %v7478_v60 = vor.u32 %v8610_v53, %v7477_v40  ;;  %v7461_v61 = vld [vmem:[#allocation5 + $0x1008] sm:$0xf]  ;;  %v7862_v7 = vor.u32 %v8706_v59, %v7861_v58  ;;  %v8702_v9 = vld [vmem:[#allocation5 + $0x1314] sm:$0xf0]  ;;  %v5639_v40 = vld [vmem:[#allocation5 + $0x1d8] sm:$0xf0] }
 0x1ea   :  { %4780 = vmatpush.bf16.msra.mxu2 %v7782_v63  ;;  %v8606_v63 = vld [vmem:[#allocation5 + $0x1014] sm:$0xf0]  ;;  %v4541_v12 = vpop.f32.mrf.mxu3  ;;  %v7846_v36 = vor.u32 %v8702_v9, %v7845_v1  ;;  %v8180_v53 = vld [vmem:[#allocation5 + $0x2cc] sm:$0xf]  ;;  %v5879_v5 = vld [vmem:[#allocation5 + $0x3b8] sm:$0xf0] }
 0x1eb   :  { %v7462_v13 = vor.u32 %v8606_v63, %v7461_v61  ;;  %v5770_v58 = vor.u32 %v8180_v53, %v5767_v54  ;;  %v8112_v59 = vld [vmem:[#allocation5 + $0xac] sm:$0xf]  ;;  %v5479_v10 = vld [vmem:[#allocation5 + $0x98] sm:$0xf0] }
 0x1ec   :  { %4793 = vmatpush.bf16.msra.mxu3 %v7910_v0  ;;  %4755 = vmatpush.bf16.msra.mxu0 %v7510_v11  ;;  %v8638_v0 = vld [vmem:[#allocation5 + $0x1114] sm:$0xf0]  ;;  %v8120_v11 = vld [vmem:[#allocation5 + $0xec] sm:$0xf]  ;;  %v5719_v53 = vld [vmem:[#allocation5 + $0x278] sm:$0xf0] }
 0x1ed   :  { %4768 = vmatpush.bf16.msra.mxu1 %v7638_v6  ;;  %v5527_v6 = vld [vmem:[#allocation5 + $0xf8] sm:$0xf0]  ;;  %v7590_v17 = vor.u32 %v8638_v0, %v7589_v4  ;;  %v8144_v61 = vld [vmem:[#allocation5 + $0x1ac] sm:$0xf] }
 0x1ee   :  { %4781 = vmatpush.bf16.msra.mxu2 %v7766_v50  ;;  %v8152_v50 = vld [vmem:[#allocation5 + $0x1ec] sm:$0xf]  ;;  %v5530_v39 = vor.u32 %v8120_v11, %v5527_v6  ;;  %v5751_v4 = vld [vmem:[#allocation5 + $0x2b8] sm:$0xf0]  ;;  %v8775_v6 = vld [vmem:[#allocation7] sm:$0xf] }
 0x1ef   :  { %v5658_v27 = vor.u32 %v8152_v50, %v5655_v14  ;;  %v8208_v0 = vld [vmem:[#allocation5 + $0x3ac] sm:$0xf]  ;;  %v747_v50 = vperm.slane %v8775_v6, 2 }
 0x1f0   :  { %4794 = vmatpush.bf16.msra.mxu3 %v7894_v15  ;;  %4756 = vmatpush.bf16.msra.mxu0 %v7494_v43  ;;  %v8184_v15 = vld [vmem:[#allocation5 + $0x2ec] sm:$0xf]  ;;  %v5882_v12 = vor.u32 %v8208_v0, %v5879_v5  ;;  %v5703_v0 = vld [vmem:[#allocation5 + $0x258] sm:$0xf0] }
 0x1f1   :  { %4769 = vmatpush.bf16.msra.mxu1 %v7622_v51  ;;  %v5786_v26 = vor.u32 %v8184_v15, %v5783_v16  ;;  %v8116_v43 = vld [vmem:[#allocation5 + $0xcc] sm:$0xf]  ;;  %v5735_v15 = vld [vmem:[#allocation5 + $0x298] sm:$0xf0] }
 0x1f2   :  { %4782 = vmatpush.bf16.msra.mxu2 %v7750_v52  ;;  %v8148_v51 = vld [vmem:[#allocation5 + $0x1cc] sm:$0xf]  ;;  %v5914_v52 = vor.u32 %v8216_v32, %v5911_v34  ;;  %v5514_v56 = vor.u32 %v8116_v43, %v5511_v47 }
 0x1f3   :  { %v5642_v57 = vor.u32 %v8148_v51, %v5639_v40  ;;  %v8108_v8 = vld [vmem:[#allocation5 + $0x8c] sm:$0xf] }
 0x1f4   :  { %4795 = vmatpush.bf16.msra.mxu3 %v7878_v24  ;;  %4757 = vmatpush.bf16.msra.mxu0 %v7478_v60  ;;  %v8212_v24 = vld [vmem:[#allocation5 + $0x3cc] sm:$0xf]  ;;  %v5495_v60 = vld [vmem:[#allocation5 + $0xb8] sm:$0xf0] }
 0x1f5   :  { %4770 = vmatpush.bf16.msra.mxu1 %v7606_v2  ;;  %v5898_v63 = vor.u32 %v8212_v24, %v5895_v55  ;;  %v5623_v2 = vld [vmem:[#allocation5 + $0x1b8] sm:$0xf0]  ;;  %v8140_v11 = vld [vmem:[#allocation5 + $0x18c] sm:$0xf] }
 0x1f6   :  { %4783 = vmatpush.bf16.msra.mxu2 %v7734_v3  ;;  %v8176_v3 = vld [vmem:[#allocation5 + $0x2ac] sm:$0xf]  ;;  %v5626_v1 = vor.u32 %v8144_v61, %v5623_v2  ;;  %v5847_v24 = vld [vmem:[#allocation5 + $0x378] sm:$0xf0] }
 0x1f7   :  { %v5754_v9 = vor.u32 %v8176_v3, %v5751_v4  ;;  %v8172_v14 = vld [vmem:[#allocation5 + $0x28c] sm:$0xf]  ;;  %v5575_v3 = vld [vmem:[#allocation5 + $0x158] sm:$0xf0] }
 0x1f8   :  { %4796 = vmatpush.bf16.msra.mxu3 %v7862_v7  ;;  %4758 = vmatpush.bf16.msra.mxu0 %v7462_v13  ;;  %v5498_v7 = vor.u32 %v8112_v59, %v5495_v60  ;;  %v5607_v13 = vld [vmem:[#allocation5 + $0x198] sm:$0xf0]  ;;  %v8204_v16 = vld [vmem:[#allocation5 + $0x38c] sm:$0xf]  ;;  %v4552_v32 = vpop.f32.mrf.mxu0 }
 0x1f9   :  { %4771 = vmatpush.bf16.msra.mxu1 %v7590_v17  ;;  %v5863_v17 = vld [vmem:[#allocation5 + $0x398] sm:$0xf0]  ;;  %v5610_v34 = vor.u32 %v8140_v11, %v5607_v13  ;;  %v4553_v43 = vadd.f32 %v4552_v32, %v747_v50  ;;  %v8168_v40 = vld [vmem:[#allocation5 + $0x26c] sm:$0xf] }
 0x1fa   :  { %4784 = vmatpush.bf16.msra.mxu2 %v7718_v21  ;;  %v5482_v21 = vor.u32 %v8108_v8, %v5479_v10  ;;  %v5866_v51 = vor.u32 %v8204_v16, %v5863_v17  ;;  %v8200_v54 = vld [vmem:[#allocation5 + $0x36c] sm:$0xf]  ;;  %v5447_v60 = vld [vmem:[#allocation5 + $0x58] sm:$0xf0] }
 0x1fb   :  { %4759 = vmatmul.bf16.vlgmr.msra.gmra.mxu0 %v9032_v37  ;;  %v4565_v47 = vpop.f32.mrf.mxu1  ;;  %v8100_v59 = vld [vmem:[#allocation5 + $0x4c] sm:$0xf]  ;;  %v5850_v2 = vor.u32 %v8200_v54, %v5847_v24  ;;  %v5431_v13 = vld [vmem:[#allocation5 + $0x38] sm:$0xf0] }
 0x1fc   :  { %4797 = vmatpush.bf16.msra.mxu3 %v7846_v36  ;;  %4803 = vmatpush.bf16.msrb.mxu0 %v5530_v39  ;;  %v5738_v36 = vor.u32 %v8172_v14, %v5735_v15  ;;  %v8104_v39 = vld [vmem:[#allocation5 + $0x6c] sm:$0xf]  ;;  %v4566_v55 = vadd.f32 %v4565_v47, %v4553_v43  ;;  %v5559_v17 = vld [vmem:[#allocation5 + $0x138] sm:$0xf0] }
 0x1fd   :  { %4816 = vmatpush.bf16.msrb.mxu1 %v5658_v27  ;;  %4785 = vmatmul.bf16.vlgmr.msra.gmra.mxu2 %v9034_v45  ;;  %v5463_v27 = vld [vmem:[#allocation5 + $0x78] sm:$0xf0]  ;;  %v8132_v61 = vld [vmem:[#allocation5 + $0x14c] sm:$0xf] }
 0x1fe   :  { %4829 = vmatpush.bf16.msrb.mxu2 %v5786_v26  ;;  %4772 = vmatmul.bf16.vlgmr.msra.gmra.mxu1 %v9036_v46  ;;  %v8136_v26 = vld [vmem:[#allocation5 + $0x16c] sm:$0xf]  ;;  %v5578_v6 = vor.u32 %v8132_v61, %v5575_v3  ;;  %v5687_v32 = vld [vmem:[#allocation5 + $0x238] sm:$0xf0] }
 0x1ff   :  { %4798 = vmatmul.bf16.vlgmr.msra.gmra.mxu3 %v9038_v49  ;;  %v8164_v4 = vld [vmem:[#allocation5 + $0x24c] sm:$0xf]  ;;  %v5671_v24 = vld [vmem:[#allocation5 + $0x218] sm:$0xf0] }
 0x200   :  { %4842 = vmatpush.bf16.msrb.mxu3 %v5914_v52  ;;  %4804 = vmatpush.bf16.msrb.mxu0 %v5514_v56  ;;  %v5591_v52 = vld [vmem:[#allocation5 + $0x178] sm:$0xf0]  ;;  %v5466_v56 = vor.u32 %v8104_v39, %v5463_v27  ;;  %v8196_v8 = vld [vmem:[#allocation5 + $0x34c] sm:$0xf]  ;;  %v4554_v11 = vpop.f32.mrf.mxu0  ;;  %v5706_v50 = vor.u32 %v8164_v4, %v5703_v0 }
 0x201   :  { %4817 = vmatpush.bf16.msrb.mxu1 %v5642_v57  ;;  %v5594_v57 = vor.u32 %v8136_v26, %v5591_v52  ;;  %v8128_v14 = vld [vmem:[#allocation5 + $0x12c] sm:$0xf]  ;;  %v5415_v26 = vld [vmem:[#allocation5 + $0x18] sm:$0xf0] }
 0x202   :  { %4830 = vmatpush.bf16.msrb.mxu2 %v5770_v58  ;;  %v5722_v58 = vor.u32 %v8168_v40, %v5719_v53  ;;  %v8092_v27 = vld [vmem:[#allocation5 + $0xc] sm:$0xf]  ;;  %v5562_v43 = vor.u32 %v8128_v14, %v5559_v17  ;;  %v5543_v52 = vld [vmem:[#allocation5 + $0x118] sm:$0xf0] }
 0x203   :  { %v4567_v15 = vpop.f32.mrf.mxu1  ;;  %v8156_v40 = vld [vmem:[#allocation5 + $0x20c] sm:$0xf]  ;;  %v5418_v61 = vor.u32 %v8092_v27, %v5415_v26  ;;  %v6295_v3 = vld [vmem:[#allocation5 + $0x6f8] sm:$0xf0] }
 0x204   :  { %4843 = vmatpush.bf16.msrb.mxu3 %v5898_v63  ;;  %4805 = vmatpush.bf16.msrb.mxu0 %v5498_v7  ;;  %v4578_v63 = vpop.f32.mrf.mxu2  ;;  %v4591_v7 = vpop.f32.mrf.mxu3  ;;  %v5674_v0 = vor.u32 %v8156_v40, %v5671_v24  ;;  %v6151_v14 = vld [vmem:[#allocation5 + $0x5d8] sm:$0xf0]  ;;  %v8308_v15 = vld [vmem:[#allocation5 + $0x6cc] sm:$0xf] }
 0x205   :  { %4818 = vmatpush.bf16.msrb.mxu1 %v5626_v1  ;;  %v4579_v5 = vadd.f32 %v4578_v63, %v4566_v55  ;;  %v5831_v1 = vld [vmem:[#allocation5 + $0x358] sm:$0xf0]  ;;  %v8188_v55 = vld [vmem:[#allocation5 + $0x30c] sm:$0xf] }
 0x206   :  { %4831 = vmatpush.bf16.msrb.mxu2 %v5754_v9  ;;  %v5450_v9 = vor.u32 %v8100_v59, %v5447_v60  ;;  %v5834_v16 = vor.u32 %v8196_v8, %v5831_v1  ;;  %v6039_v59 = vld [vmem:[#allocation5 + $0x4f8] sm:$0xf0]  ;;  %v8280_v60 = vld [vmem:[#allocation5 + $0x5ec] sm:$0xf] }
 0x207   :  { %v9112_v10 = vadd.f32 %v4591_v7, %v4579_v5  ;;  %v6167_v63 = vld [vmem:[#allocation5 + $0x5f8] sm:$0xf0]  ;;  %v8344_v5 = vld [vmem:[#allocation5 + $0x7ec] sm:$0xf] }
 0x208   :  { %4844 = vmatpush.bf16.msrb.mxu3 %v5882_v12  ;;  %4806 = vmatpush.bf16.msrb.mxu0 %v5482_v21  ;;  %v8096_v12 = vld [vmem:[#allocation5 + $0x2c] sm:$0xf]  ;;  %v6423_v7 = vld [vmem:[#allocation5 + $0x7f8] sm:$0xf0] }
 0x209   :  { %4819 = vmatpush.bf16.msrb.mxu1 %v5610_v34  ;;  %v8160_v21 = vld [vmem:[#allocation5 + $0x22c] sm:$0xf]  ;;  %v5434_v39 = vor.u32 %v8096_v12, %v5431_v13  ;;  %v6426_v13 = vor.u32 %v8344_v5, %v6423_v7  ;;  %v6007_v27 = vld [vmem:[#allocation5 + $0x4b8] sm:$0xf0] }
 0x20a   :  { %4832 = vmatpush.bf16.msrb.mxu2 %v5738_v36  ;;  %v8192_v34 = vld [vmem:[#allocation5 + $0x32c] sm:$0xf]  ;;  %v5815_v36 = vld [vmem:[#allocation5 + $0x338] sm:$0xf0]  ;;  %v5690_v47 = vor.u32 %v8160_v21, %v5687_v32 }
 0x20b   :  { %v5818_v54 = vor.u32 %v8192_v34, %v5815_v36  ;;  %v8276_v12 = vld [vmem:[#allocation5 + $0x5cc] sm:$0xf]  ;;  %v6407_v21 = vld [vmem:[#allocation5 + $0x7d8] sm:$0xf0] }
 0x20c   :  { %4845 = vmatpush.bf16.msrb.mxu3 %v5866_v51  ;;  %4807 = vmatpush.bf16.msrb.mxu0 %v5466_v56  ;;  %v8124_v51 = vld [vmem:[#allocation5 + $0x10c] sm:$0xf]  ;;  %v4580_v53 = vpop.f32.mrf.mxu2  ;;  %v5799_v56 = vld [vmem:[#allocation5 + $0x318] sm:$0xf0]  ;;  %v6154_v34 = vor.u32 %v8276_v12, %v6151_v14 }
 0x20d   :  { %4820 = vmatpush.bf16.msrb.mxu1 %v5594_v57  ;;  %v4593_v57 = vpop.f32.mrf.mxu3  ;;  %v5546_v4 = vor.u32 %v8124_v51, %v5543_v52  ;;  %v5802_v8 = vor.u32 %v8188_v55, %v5799_v56  ;;  %v8340_v17 = vld [vmem:[#allocation5 + $0x7cc] sm:$0xf]  ;;  %v6263_v52 = vld [vmem:[#allocation5 + $0x6b8] sm:$0xf0] }
 0x20e   :  { %4833 = vmatpush.bf16.msrb.mxu2 %v5722_v58  ;;  %v8248_v58 = vld [vmem:[#allocation5 + $0x4ec] sm:$0xf]  ;;  %v6391_v53 = vld [vmem:[#allocation5 + $0x7b8] sm:$0xf0] }
 0x20f   :  { %v6042_v1 = vor.u32 %v8248_v58, %v6039_v59  ;;  %v8272_v26 = vld [vmem:[#allocation5 + $0x5ac] sm:$0xf]  ;;  %v5991_v57 = vld [vmem:[#allocation5 + $0x498] sm:$0xf0] }
 0x210   :  { %4846 = vmatpush.bf16.msrb.mxu3 %v5850_v2  ;;  %4808 = vmatpush.bf16.msrb.mxu0 %v5450_v9  ;;  %v8312_v2 = vld [vmem:[#allocation5 + $0x6ec] sm:$0xf]  ;;  %v6170_v9 = vor.u32 %v8280_v60, %v6167_v63  ;;  %v6359_v12 = vld [vmem:[#allocation5 + $0x778] sm:$0xf0] }
 0x211   :  { %4821 = vmatpush.bf16.msrb.mxu1 %v5578_v6  ;;  %v6298_v11 = vor.u32 %v8312_v2, %v6295_v3  ;;  %v8244_v6 = vld [vmem:[#allocation5 + $0x4cc] sm:$0xf] }
 0x212   :  { %4834 = vmatpush.bf16.msrb.mxu2 %v5706_v50  ;;  %v6023_v50 = vld [vmem:[#allocation5 + $0x4d8] sm:$0xf0]  ;;  %v8304_v51 = vld [vmem:[#allocation5 + $0x6ac] sm:$0xf] }
 0x213   :  { %v6026_v32 = vor.u32 %v8244_v6, %v6023_v50  ;;  %v8336_v40 = vld [vmem:[#allocation5 + $0x7ac] sm:$0xf]  ;;  %v6266_v55 = vor.u32 %v8304_v51, %v6263_v52  ;;  %v6231_v6 = vld [vmem:[#allocation5 + $0x678] sm:$0xf0] }
 0x214   :  { %4847 = vmatpush.bf16.msrb.mxu3 %v5834_v16  ;;  %4809 = vmatpush.bf16.msrb.mxu0 %v5434_v39  ;;  %v6279_v16 = vld [vmem:[#allocation5 + $0x6d8] sm:$0xf0]  ;;  %v8240_v39 = vld [vmem:[#allocation5 + $0x4ac] sm:$0xf]  ;;  %v6394_v59 = vor.u32 %v8336_v40, %v6391_v53 }
 0x215   :  { %4822 = vmatpush.bf16.msrb.mxu1 %v5562_v43  ;;  %v6282_v36 = vor.u32 %v8308_v15, %v6279_v16  ;;  %v6410_v43 = vor.u32 %v8340_v17, %v6407_v21  ;;  %v8236_v56 = vld [vmem:[#allocation5 + $0x48c] sm:$0xf]  ;;  %v5959_v21 = vld [vmem:[#allocation5 + $0x458] sm:$0xf0] }
 0x216   :  { %4835 = vmatpush.bf16.msrb.mxu2 %v5690_v47  ;;  %v6135_v47 = vld [vmem:[#allocation5 + $0x5b8] sm:$0xf0]  ;;  %v8268_v58 = vld [vmem:[#allocation5 + $0x58c] sm:$0xf] }
 0x217   :  { %v6138_v24 = vor.u32 %v8272_v26, %v6135_v47  ;;  %v8300_v60 = vld [vmem:[#allocation5 + $0x68c] sm:$0xf]  ;;  %v6343_v51 = vld [vmem:[#allocation5 + $0x758] sm:$0xf0] }
 0x218   :  { %4848 = vmatpush.bf16.msrb.mxu3 %v5818_v54  ;;  %4810 = vmatpush.bf16.msrb.mxu0 %v5418_v61  ;;  %v6010_v54 = vor.u32 %v8240_v39, %v6007_v27  ;;  %v6247_v61 = vld [vmem:[#allocation5 + $0x698] sm:$0xf0]  ;;  %v8332_v63 = vld [vmem:[#allocation5 + $0x78c] sm:$0xf]  ;;  %v4604_v2 = vpop.f32.mrf.mxu0 }
 0x219   :  { %4823 = vmatpush.bf16.msrb.mxu1 %v5546_v4  ;;  %v6250_v3 = vor.u32 %v8300_v60, %v6247_v61  ;;  %v8232_v4 = vld [vmem:[#allocation5 + $0x46c] sm:$0xf]  ;;  %v4605_v7 = vadd.f32 %v4604_v2, %v9112_v10  ;;  %v6215_v27 = vld [vmem:[#allocation5 + $0x658] sm:$0xf0] }
 0x21a   :  { %4836 = vmatpush.bf16.msrb.mxu2 %v5674_v0  ;;  %v5975_v0 = vld [vmem:[#allocation5 + $0x478] sm:$0xf0]  ;;  %v8264_v5 = vld [vmem:[#allocation5 + $0x56c] sm:$0xf] }
 0x21b   :  { %4811 = vmatmul.bf16.vlgmr.msrb.gmra.mxu0 %v8986_v19  ;;  %v6375_v19 = vld [vmem:[#allocation5 + $0x798] sm:$0xf0]  ;;  %v8328_v50 = vld [vmem:[#allocation5 + $0x76c] sm:$0xf]  ;;  %v5978_v14 = vor.u32 %v8232_v4, %v5975_v0 }
 0x21c   :  { %4849 = vmatpush.bf16.msrb.mxu3 %v5802_v8  ;;  %4855 = vmatpush.bf16.msra.mxu0 %v6042_v1  ;;  %v4617_v8 = vpop.f32.mrf.mxu1  ;;  %v6378_v1 = vor.u32 %v8332_v63, %v6375_v19  ;;  %v8228_v17 = vld [vmem:[#allocation5 + $0x44c] sm:$0xf]  ;;  %v6362_v10 = vor.u32 %v8328_v50, %v6359_v12  ;;  %v6199_v61 = vld [vmem:[#allocation5 + $0x638] sm:$0xf0] }
 0x21d   :  { %4868 = vmatpush.bf16.msra.mxu1 %v6170_v9  ;;  %4837 = vmatmul.bf16.vlgmr.msrb.gmra.mxu2 %v8984_v18  ;;  %v6119_v18 = vld [vmem:[#allocation5 + $0x598] sm:$0xf0]  ;;  %v8292_v39 = vld [vmem:[#allocation5 + $0x64c] sm:$0xf]  ;;  %v5962_v52 = vor.u32 %v8228_v17, %v5959_v21 }
 0x21e   :  { %4881 = vmatpush.bf16.msra.mxu2 %v6298_v11  ;;  %4824 = vmatmul.bf16.vlgmr.msrb.gmra.mxu1 %v8990_v22  ;;  %v6122_v22 = vor.u32 %v8268_v58, %v6119_v18  ;;  %v6103_v9 = vld [vmem:[#allocation5 + $0x578] sm:$0xf0]  ;;  %v8296_v11 = vld [vmem:[#allocation5 + $0x66c] sm:$0xf] }
 0x21f   :  { %4850 = vmatmul.bf16.vlgmr.msrb.gmra.mxu3 %v8988_v20  ;;  %v5994_v20 = vor.u32 %v8236_v56, %v5991_v57  ;;  %v6106_v15 = vor.u32 %v8264_v5, %v6103_v9  ;;  %v6234_v16 = vor.u32 %v8296_v11, %v6231_v6  ;;  %v8324_v47 = vld [vmem:[#allocation5 + $0x74c] sm:$0xf]  ;;  %v5943_v56 = vld [vmem:[#allocation5 + $0x438] sm:$0xf0] }
 0x220   :  { %4894 = vmatpush.bf16.msra.mxu3 %v6426_v13  ;;  %4856 = vmatpush.bf16.msra.mxu0 %v6026_v32  ;;  %v4618_v13 = vadd.f32 %v4617_v8, %v4605_v7  ;;  %v8260_v32 = vld [vmem:[#allocation5 + $0x54c] sm:$0xf]  ;;  %v4606_v53 = vpop.f32.mrf.mxu0  ;;  %v6071_v18 = vld [vmem:[#allocation5 + $0x538] sm:$0xf0] }
 0x221   :  { %4869 = vmatpush.bf16.msra.mxu1 %v6154_v34  ;;  %v4630_v34 = vpop.f32.mrf.mxu2  ;;  %v8256_v57 = vld [vmem:[#allocation5 + $0x52c] sm:$0xf]  ;;  %v6327_v19 = vld [vmem:[#allocation5 + $0x738] sm:$0xf0] }
 0x222   :  { %4882 = vmatpush.bf16.msra.mxu2 %v6282_v36  ;;  %v6087_v36 = vld [vmem:[#allocation5 + $0x558] sm:$0xf0]  ;;  %v4631_v26 = vadd.f32 %v4630_v34, %v4618_v13  ;;  %v8288_v60 = vld [vmem:[#allocation5 + $0x62c] sm:$0xf] }
 0x223   :  { %v8320_v63 = vld [vmem:[#allocation5 + $0x72c] sm:$0xf]  ;;  %v6202_v4 = vor.u32 %v8288_v60, %v6199_v61  ;;  %v6055_v5 = vld [vmem:[#allocation5 + $0x518] sm:$0xf0] }
 0x224   :  { %4895 = vmatpush.bf16.msra.mxu3 %v6410_v43  ;;  %4857 = vmatpush.bf16.msra.mxu0 %v6010_v54  ;;  %v4643_v43 = vpop.f32.mrf.mxu3  ;;  %v6090_v54 = vor.u32 %v8260_v32, %v6087_v36  ;;  %v4619_v58 = vpop.f32.mrf.mxu1  ;;  %v8220_v2 = vld [vmem:[#allocation5 + $0x40c] sm:$0xf]  ;;  %v6183_v9 = vld [vmem:[#allocation5 + $0x618] sm:$0xf0] }
 0x225   :  { %4870 = vmatpush.bf16.msra.mxu1 %v6138_v24  ;;  %v9119_v40 = vadd.f32 %v4643_v43, %v4631_v26  ;;  %v6218_v24 = vor.u32 %v8292_v39, %v6215_v27  ;;  %v8252_v0 = vld [vmem:[#allocation5 + $0x50c] sm:$0xf]  ;;  %v6311_v6 = vld [vmem:[#allocation5 + $0x718] sm:$0xf0] }
 0x226   :  { %4883 = vmatpush.bf16.msra.mxu2 %v6266_v55  ;;  %v8224_v55 = vld [vmem:[#allocation5 + $0x42c] sm:$0xf]  ;;  %v6551_v13 = vld [vmem:[#allocation5 + $0x8f8] sm:$0xf0]  ;;  %v6058_v32 = vor.u32 %v8252_v0, %v6055_v5 }
 0x227   :  { %v8284_v7 = vld [vmem:[#allocation5 + $0x60c] sm:$0xf]  ;;  %v6807_v21 = vld [vmem:[#allocation5 + $0xaf8] sm:$0xf0] }
 0x228   :  { %4896 = vmatpush.bf16.msra.mxu3 %v6394_v59  ;;  %4858 = vmatpush.bf16.msra.mxu0 %v5994_v20  ;;  %v6346_v59 = vor.u32 %v8324_v47, %v6343_v51  ;;  %v5946_v20 = vor.u32 %v8224_v55, %v5943_v56  ;;  %v8316_v11 = vld [vmem:[#allocation5 + $0x70c] sm:$0xf]  ;;  %v6186_v34 = vor.u32 %v8284_v7, %v6183_v9  ;;  %v6935_v36 = vld [vmem:[#allocation5 + $0xbf8] sm:$0xf0] }
 0x229   :  { %4871 = vmatpush.bf16.msra.mxu1 %v6122_v22  ;;  %v5927_v22 = vld [vmem:[#allocation5 + $0x418] sm:$0xf0]  ;;  %v4632_v8 = vpop.f32.mrf.mxu2  ;;  %v8376_v12 = vld [vmem:[#allocation5 + $0x8ec] sm:$0xf]  ;;  %v6314_v39 = vor.u32 %v8316_v11, %v6311_v6 }
 0x22a   :  { %4884 = vmatpush.bf16.msra.mxu2 %v6250_v3  ;;  %v6074_v3 = vor.u32 %v8256_v57, %v6071_v18  ;;  %v8440_v17 = vld [vmem:[#allocation5 + $0xaec] sm:$0xf]  ;;  %v6554_v27 = vor.u32 %v8376_v12, %v6551_v13  ;;  %v6535_v51 = vld [vmem:[#allocation5 + $0x8d8] sm:$0xf0] }
 0x22b   :  { %v6810_v43 = vor.u32 %v8440_v17, %v6807_v21  ;;  %v8372_v47 = vld [vmem:[#allocation5 + $0x8cc] sm:$0xf]  ;;  %v6791_v55 = vld [vmem:[#allocation5 + $0xad8] sm:$0xf0] }
 0x22c   :  { %4897 = vmatpush.bf16.msra.mxu3 %v6378_v1  ;;  %4859 = vmatpush.bf16.msra.mxu0 %v5978_v14  ;;  %v6330_v1 = vor.u32 %v8320_v63, %v6327_v19  ;;  %v4645_v50 = vpop.f32.mrf.mxu3  ;;  %v8408_v14 = vld [vmem:[#allocation5 + $0x9ec] sm:$0xf]  ;;  %v6919_v57 = vld [vmem:[#allocation5 + $0xbd8] sm:$0xf0]  ;;  %v6538_v58 = vor.u32 %v8372_v47, %v6535_v51 }
 0x22d   :  { %4872 = vmatpush.bf16.msra.mxu1 %v6106_v15  ;;  %v5930_v15 = vor.u32 %v8220_v2, %v5927_v22  ;;  %v8468_v56 = vld [vmem:[#allocation5 + $0xbcc] sm:$0xf]  ;;  %v6519_v61 = vld [vmem:[#allocation5 + $0x8b8] sm:$0xf0] }
 0x22e   :  { %4885 = vmatpush.bf16.msra.mxu2 %v6234_v16  ;;  %v6679_v16 = vld [vmem:[#allocation5 + $0x9f8] sm:$0xf0]  ;;  %v8368_v60 = vld [vmem:[#allocation5 + $0x8ac] sm:$0xf]  ;;  %v6922_v19 = vor.u32 %v8468_v56, %v6919_v57 }
 0x22f   :  { %v6682_v26 = vor.u32 %v8408_v14, %v6679_v16  ;;  %v8400_v63 = vld [vmem:[#allocation5 + $0x9ac] sm:$0xf]  ;;  %v6775_v22 = vld [vmem:[#allocation5 + $0xab8] sm:$0xf0]  ;;  %v6522_v0 = vor.u32 %v8368_v60, %v6519_v61 }
 0x230   :  { %4898 = vmatpush.bf16.msra.mxu3 %v6362_v10  ;;  %4860 = vmatpush.bf16.msra.mxu0 %v5962_v52  ;;  %v8472_v10 = vld [vmem:[#allocation5 + $0xbec] sm:$0xf]  ;;  %v6631_v11 = vld [vmem:[#allocation5 + $0x998] sm:$0xf0] }
 0x231   :  { %4873 = vmatpush.bf16.msra.mxu1 %v6090_v54  ;;  %v8404_v52 = vld [vmem:[#allocation5 + $0x9cc] sm:$0xf]  ;;  %v6938_v53 = vor.u32 %v8472_v10, %v6935_v36  ;;  %v6663_v54 = vld [vmem:[#allocation5 + $0x9d8] sm:$0xf0] }
 0x232   :  { %4886 = vmatpush.bf16.msra.mxu2 %v6218_v24  ;;  %v8436_v24 = vld [vmem:[#allocation5 + $0xacc] sm:$0xf]  ;;  %v6759_v50 = vld [vmem:[#allocation5 + $0xa98] sm:$0xf0] }
 0x233   :  { %v6794_v18 = vor.u32 %v8436_v24, %v6791_v55  ;;  %v8432_v2 = vld [vmem:[#allocation5 + $0xaac] sm:$0xf]  ;;  %v6887_v13 = vld [vmem:[#allocation5 + $0xb98] sm:$0xf0] }
 0x234   :  { %4899 = vmatpush.bf16.msra.mxu3 %v6346_v59  ;;  %4861 = vmatpush.bf16.msra.mxu0 %v5946_v20  ;;  %v6666_v59 = vor.u32 %v8404_v52, %v6663_v54  ;;  %v6647_v20 = vld [vmem:[#allocation5 + $0x9b8] sm:$0xf0]  ;;  %v6778_v7 = vor.u32 %v8432_v2, %v6775_v22  ;;  %v8364_v8 = vld [vmem:[#allocation5 + $0x88c] sm:$0xf] }
 0x235   :  { %4874 = vmatpush.bf16.msra.mxu1 %v6074_v3  ;;  %v8464_v3 = vld [vmem:[#allocation5 + $0xbac] sm:$0xf]  ;;  %v6650_v5 = vor.u32 %v8400_v63, %v6647_v20  ;;  %v6487_v21 = vld [vmem:[#allocation5 + $0x878] sm:$0xf0] }
 0x236   :  { %4887 = vmatpush.bf16.msra.mxu2 %v6202_v4  ;;  %v6903_v4 = vld [vmem:[#allocation5 + $0xbb8] sm:$0xf0]  ;;  %v8428_v6 = vld [vmem:[#allocation5 + $0xa8c] sm:$0xf] }
 0x237   :  { %v6906_v9 = vor.u32 %v8464_v3, %v6903_v4  ;;  %v6762_v16 = vor.u32 %v8428_v6, %v6759_v50  ;;  %v8360_v17 = vld [vmem:[#allocation5 + $0x86c] sm:$0xf]  ;;  %v6615_v36 = vld [vmem:[#allocation5 + $0x978] sm:$0xf0] }
 0x238   :  { %4900 = vmatpush.bf16.msra.mxu3 %v6330_v1  ;;  %4862 = vmatpush.bf16.msra.mxu0 %v5930_v15  ;;  %v6503_v1 = vld [vmem:[#allocation5 + $0x898] sm:$0xf0]  ;;  %v4656_v12 = vpop.f32.mrf.mxu0  ;;  %v6490_v47 = vor.u32 %v8360_v17, %v6487_v21  ;;  %v8356_v52 = vld [vmem:[#allocation5 + $0x84c] sm:$0xf] }
 0x239   :  { %4875 = vmatpush.bf16.msra.mxu1 %v6058_v32  ;;  %v6506_v14 = vor.u32 %v8364_v8, %v6503_v1  ;;  %v8392_v32 = vld [vmem:[#allocation5 + $0x96c] sm:$0xf]  ;;  %v6599_v56 = vld [vmem:[#allocation5 + $0x958] sm:$0xf0] }
 0x23a   :  { %4888 = vmatpush.bf16.msra.mxu2 %v6186_v34  ;;  %v8388_v54 = vld [vmem:[#allocation5 + $0x94c] sm:$0xf]  ;;  %v6855_v61 = vld [vmem:[#allocation5 + $0xb58] sm:$0xf0] }
 0x23b   :  { %4863 = vmatmul.bf16.vlgmr.msra.gmra.mxu0 %v8998_v41  ;;  %v8460_v41 = vld [vmem:[#allocation5 + $0xb8c] sm:$0xf]  ;;  %v6602_v22 = vor.u32 %v8388_v54, %v6599_v56  ;;  %v6583_v8 = vld [vmem:[#allocation5 + $0x938] sm:$0xf0] }
 0x23c   :  { %4901 = vmatpush.bf16.msra.mxu3 %v6314_v39  ;;  %4907 = vmatpush.bf16.msrb.mxu0 %v6554_v27  ;;  %v6890_v34 = vor.u32 %v8460_v41, %v6887_v13  ;;  %v8424_v39 = vld [vmem:[#allocation5 + $0xa6c] sm:$0xf]  ;;  %v6743_v27 = vld [vmem:[#allocation5 + $0xa78] sm:$0xf0] }
 0x23d   :  { %4920 = vmatpush.bf16.msrb.mxu1 %v6682_v26  ;;  %4889 = vmatmul.bf16.vlgmr.msra.gmra.mxu2 %v8996_v38  ;;  %v8396_v38 = vld [vmem:[#allocation5 + $0x98c] sm:$0xf]  ;;  %v6746_v51 = vor.u32 %v8424_v39, %v6743_v27  ;;  %v6823_v21 = vld [vmem:[#allocation5 + $0xb18] sm:$0xf0] }
 0x23e   :  { %4933 = vmatpush.bf16.msrb.mxu2 %v6810_v43  ;;  %4876 = vmatmul.bf16.vlgmr.msra.gmra.mxu1 %v9002_v44  ;;  %v4669_v44 = vpop.f32.mrf.mxu1  ;;  %v6634_v15 = vor.u32 %v8396_v38, %v6631_v11  ;;  %v8456_v26 = vld [vmem:[#allocation5 + $0xb6c] sm:$0xf]  ;;  %v6871_v43 = vld [vmem:[#allocation5 + $0xb78] sm:$0xf0] }
 0x23f   :  { %4902 = vmatmul.bf16.vlgmr.msra.gmra.mxu3 %v9000_v42  ;;  %v4657_v42 = vadd.f32 %v4656_v12, %v9119_v40  ;;  %v6618_v40 = vor.u32 %v8392_v32, %v6615_v36  ;;  %v6874_v24 = vor.u32 %v8456_v26, %v6871_v43  ;;  %v8420_v57 = vld [vmem:[#allocation5 + $0xa4c] sm:$0xf]  ;;  %v6711_v38 = vld [vmem:[#allocation5 + $0xa38] sm:$0xf0] }
 0x240   :  { %4946 = vmatpush.bf16.msrb.mxu3 %v6938_v53  ;;  %4908 = vmatpush.bf16.msrb.mxu0 %v6538_v58  ;;  %v6471_v53 = vld [vmem:[#allocation5 + $0x858] sm:$0xf0]  ;;  %v4682_v55 = vpop.f32.mrf.mxu2  ;;  %v8452_v60 = vld [vmem:[#allocation5 + $0xb4c] sm:$0xf]  ;;  %v4658_v63 = vpop.f32.mrf.mxu0 }
 0x241   :  { %4921 = vmatpush.bf16.msrb.mxu1 %v6666_v59  ;;  %v4670_v10 = vadd.f32 %v4669_v44, %v4657_v42  ;;  %v6727_v58 = vld [vmem:[#allocation5 + $0xa58] sm:$0xf0]  ;;  %v8352_v4 = vld [vmem:[#allocation5 + $0x82c] sm:$0xf] }
 0x242   :  { %4934 = vmatpush.bf16.msrb.mxu2 %v6794_v18  ;;  %v4695_v18 = vpop.f32.mrf.mxu3  ;;  %v6730_v3 = vor.u32 %v8420_v57, %v6727_v58  ;;  %v8416_v1 = vld [vmem:[#allocation5 + $0xa2c] sm:$0xf]  ;;  %v6839_v11 = vld [vmem:[#allocation5 + $0xb38] sm:$0xf0] }
 0x243   :  { %v4683_v59 = vadd.f32 %v4682_v55, %v4670_v10  ;;  %v8348_v50 = vld [vmem:[#allocation5 + $0x80c] sm:$0xf]  ;;  %v6439_v12 = vld [vmem:[#allocation5 + $0x818] sm:$0xf0]  ;;  %v6714_v13 = vor.u32 %v8416_v1, %v6711_v38 }
 0x244   :  { %4947 = vmatpush.bf16.msrb.mxu3 %v6922_v19  ;;  %4909 = vmatpush.bf16.msrb.mxu0 %v6522_v0  ;;  %v6474_v19 = vor.u32 %v8356_v52, %v6471_v53  ;;  %v6455_v0 = vld [vmem:[#allocation5 + $0x838] sm:$0xf0]  ;;  %v8380_v42 = vld [vmem:[#allocation5 + $0x90c] sm:$0xf]  ;;  %v6442_v27 = vor.u32 %v8348_v50, %v6439_v12 }
 0x245   :  { %4922 = vmatpush.bf16.msrb.mxu1 %v6650_v5  ;;  %v9126_v2 = vadd.f32 %v4695_v18, %v4683_v59  ;;  %v8384_v5 = vld [vmem:[#allocation5 + $0x92c] sm:$0xf]  ;;  %v6458_v6 = vor.u32 %v8352_v4, %v6455_v0  ;;  %v7063_v10 = vld [vmem:[#allocation5 + $0xcf8] sm:$0xf0] }
 0x246   :  { %4935 = vmatpush.bf16.msrb.mxu2 %v6778_v7  ;;  %v4671_v20 = vpop.f32.mrf.mxu1  ;;  %v6858_v7 = vor.u32 %v8452_v60, %v6855_v61  ;;  %v6586_v41 = vor.u32 %v8384_v5, %v6583_v8  ;;  %v8412_v44 = vld [vmem:[#allocation5 + $0xa0c] sm:$0xf]  ;;  %v7191_v26 = vld [vmem:[#allocation5 + $0xdf8] sm:$0xf0] }
 0x247   :  { %v8444_v17 = vld [vmem:[#allocation5 + $0xb0c] sm:$0xf]  ;;  %v7447_v53 = vld [vmem:[#allocation5 + $0xff8] sm:$0xf0] }
 0x248   :  { %4948 = vmatpush.bf16.msrb.mxu3 %v6906_v9  ;;  %4910 = vmatpush.bf16.msrb.mxu0 %v6506_v14  ;;  %v8448_v9 = vld [vmem:[#allocation5 + $0xb2c] sm:$0xf]  ;;  %v6567_v14 = vld [vmem:[#allocation5 + $0x918] sm:$0xf0]  ;;  %v4684_v32 = vpop.f32.mrf.mxu2  ;;  %v6826_v54 = vor.u32 %v8444_v17, %v6823_v21 }
 0x249   :  { %4923 = vmatpush.bf16.msrb.mxu1 %v6634_v15  ;;  %v6842_v15 = vor.u32 %v8448_v9, %v6839_v11  ;;  %v8536_v36 = vld [vmem:[#allocation5 + $0xdec] sm:$0xf]  ;;  %v7047_v58 = vld [vmem:[#allocation5 + $0xcd8] sm:$0xf0] }
 0x24a   :  { %4936 = vmatpush.bf16.msrb.mxu2 %v6762_v16  ;;  %v6695_v16 = vld [vmem:[#allocation5 + $0xa18] sm:$0xf0]  ;;  %v4697_v39 = vpop.f32.mrf.mxu3  ;;  %v8568_v43 = vld [vmem:[#allocation5 + $0xeec] sm:$0xf]  ;;  %v7194_v55 = vor.u32 %v8536_v36, %v7191_v26 }
 0x24b   :  { %v8600_v52 = vld [vmem:[#allocation5 + $0xfec] sm:$0xf]  ;;  %v7175_v60 = vld [vmem:[#allocation5 + $0xdd8] sm:$0xf0] }
 0x24c   :  { %4949 = vmatpush.bf16.msrb.mxu3 %v6890_v34  ;;  %4911 = vmatpush.bf16.msrb.mxu0 %v6490_v47  ;;  %v8504_v34 = vld [vmem:[#allocation5 + $0xcec] sm:$0xf]  ;;  %v7319_v47 = vld [vmem:[#allocation5 + $0xef8] sm:$0xf0]  ;;  %v7450_v18 = vor.u32 %v8600_v52, %v7447_v53 }
 0x24d   :  { %4924 = vmatpush.bf16.msrb.mxu1 %v6618_v40  ;;  %v6570_v40 = vor.u32 %v8380_v42, %v6567_v14  ;;  %v7322_v56 = vor.u32 %v8568_v43, %v7319_v47  ;;  %v8500_v57 = vld [vmem:[#allocation5 + $0xccc] sm:$0xf]  ;;  %v7303_v63 = vld [vmem:[#allocation5 + $0xed8] sm:$0xf0] }
 0x24e   :  { %4937 = vmatpush.bf16.msrb.mxu2 %v6746_v51  ;;  %v6698_v51 = vor.u32 %v8412_v44, %v6695_v16  ;;  %v8532_v59 = vld [vmem:[#allocation5 + $0xdcc] sm:$0xf]  ;;  %v7431_v20 = vld [vmem:[#allocation5 + $0xfd8] sm:$0xf0] }
 0x24f   :  { %v8564_v61 = vld [vmem:[#allocation5 + $0xecc] sm:$0xf]  ;;  %v7031_v5 = vld [vmem:[#allocation5 + $0xcb8] sm:$0xf0] }
 0x250   :  { %4950 = vmatpush.bf16.msrb.mxu3 %v6874_v24  ;;  %4912 = vmatpush.bf16.msrb.mxu0 %v6474_v19  ;;  %v7066_v24 = vor.u32 %v8504_v34, %v7063_v10  ;;  %v8596_v19 = vld [vmem:[#allocation5 + $0xfcc] sm:$0xf]  ;;  %v7306_v4 = vor.u32 %v8564_v61, %v7303_v63  ;;  %v7159_v1 = vld [vmem:[#allocation5 + $0xdb8] sm:$0xf0] }
 0x251   :  { %4925 = vmatpush.bf16.msrb.mxu1 %v6602_v22  ;;  %v7050_v22 = vor.u32 %v8500_v57, %v7047_v58  ;;  %v8496_v0 = vld [vmem:[#allocation5 + $0xcac] sm:$0xf]  ;;  %v7434_v8 = vor.u32 %v8596_v19, %v7431_v20  ;;  %v7287_v9 = vld [vmem:[#allocation5 + $0xeb8] sm:$0xf0] }
 0x252   :  { %4938 = vmatpush.bf16.msrb.mxu2 %v6730_v3  ;;  %v7178_v3 = vor.u32 %v8532_v59, %v7175_v60  ;;  %v8560_v38 = vld [vmem:[#allocation5 + $0xeac] sm:$0xf]  ;;  %v7034_v50 = vor.u32 %v8496_v0, %v7031_v5  ;;  %v7143_v44 = vld [vmem:[#allocation5 + $0xd98] sm:$0xf0] }
 0x253   :  { %v8592_v11 = vld [vmem:[#allocation5 + $0xfac] sm:$0xf]  ;;  %v7399_v17 = vld [vmem:[#allocation5 + $0xf98] sm:$0xf0] }
 0x254   :  { %4951 = vmatpush.bf16.msrb.mxu3 %v6858_v7  ;;  %4913 = vmatpush.bf16.msrb.mxu0 %v6458_v6  ;;  %v8528_v7 = vld [vmem:[#allocation5 + $0xdac] sm:$0xf]  ;;  %v7415_v6 = vld [vmem:[#allocation5 + $0xfb8] sm:$0xf0] }
 0x255   :  { %4926 = vmatpush.bf16.msrb.mxu1 %v6586_v41  ;;  %v7162_v12 = vor.u32 %v8528_v7, %v7159_v1  ;;  %v7290_v41 = vor.u32 %v8560_v38, %v7287_v9  ;;  %v8524_v42 = vld [vmem:[#allocation5 + $0xd8c] sm:$0xf]  ;;  %v7418_v14 = vor.u32 %v8592_v11, %v7415_v6  ;;  %v6999_v39 = vld [vmem:[#allocation5 + $0xc78] sm:$0xf0] }
 0x256   :  { %4939 = vmatpush.bf16.msrb.mxu2 %v6714_v13  ;;  %v8492_v13 = vld [vmem:[#allocation5 + $0xc8c] sm:$0xf]  ;;  %v7146_v34 = vor.u32 %v8524_v42, %v7143_v44  ;;  %v7127_v47 = vld [vmem:[#allocation5 + $0xd78] sm:$0xf0] }
 0x257   :  { %v8488_v36 = vld [vmem:[#allocation5 + $0xc6c] sm:$0xf]  ;;  %v7383_v53 = vld [vmem:[#allocation5 + $0xf78] sm:$0xf0] }
 0x258   :  { %4952 = vmatpush.bf16.msrb.mxu3 %v6842_v15  ;;  %4914 = vmatpush.bf16.msrb.mxu0 %v6442_v27  ;;  %v8556_v15 = vld [vmem:[#allocation5 + $0xe8c] sm:$0xf]  ;;  %v4708_v16 = vpop.f32.mrf.mxu0  ;;  %v7239_v61 = vld [vmem:[#allocation5 + $0xe58] sm:$0xf0] }
 0x259   :  { %4927 = vmatpush.bf16.msrb.mxu1 %v6570_v40  ;;  %v8520_v27 = vld [vmem:[#allocation5 + $0xd6c] sm:$0xf]  ;;  %v7367_v20 = vld [vmem:[#allocation5 + $0xf58] sm:$0xf0] }
 0x25a   :  { %4940 = vmatpush.bf16.msrb.mxu2 %v6698_v51  ;;  %v8552_v40 = vld [vmem:[#allocation5 + $0xe6c] sm:$0xf]  ;;  %v7255_v51 = vld [vmem:[#allocation5 + $0xe78] sm:$0xf0] }
 0x25b   :  { %4915 = vmatmul.bf16.vlgmr.msrb.gmra.mxu0 %v9008_v25  ;;  %v7015_v25 = vld [vmem:[#allocation5 + $0xc98] sm:$0xf0]  ;;  %v4721_v32 = vpop.f32.mrf.mxu1  ;;  %v8584_v52 = vld [vmem:[#allocation5 + $0xf6c] sm:$0xf] }
 0x25c   :  { %4953 = vmatpush.bf16.msrb.mxu3 %v6826_v54  ;;  %4959 = vmatpush.bf16.msra.mxu0 %v7066_v24  ;;  %v7018_v21 = vor.u32 %v8492_v13, %v7015_v25  ;;  %v7130_v54 = vor.u32 %v8520_v27, %v7127_v47  ;;  %v7258_v24 = vor.u32 %v8552_v40, %v7255_v51  ;;  %v8516_v57 = vld [vmem:[#allocation5 + $0xd4c] sm:$0xf]  ;;  %v7095_v9 = vld [vmem:[#allocation5 + $0xd38] sm:$0xf0] }
 0x25d   :  { %4972 = vmatpush.bf16.msra.mxu1 %v7194_v55  ;;  %4941 = vmatmul.bf16.vlgmr.msrb.gmra.mxu2 %v9010_v29  ;;  %v7271_v29 = vld [vmem:[#allocation5 + $0xe98] sm:$0xf0]  ;;  %v8484_v55 = vld [vmem:[#allocation5 + $0xc4c] sm:$0xf]  ;;  %v7386_v58 = vor.u32 %v8584_v52, %v7383_v53 }
 0x25e   :  { %4985 = vmatpush.bf16.msra.mxu2 %v7322_v56  ;;  %4928 = vmatmul.bf16.vlgmr.msrb.gmra.mxu1 %v9012_v30  ;;  %v8588_v30 = vld [vmem:[#allocation5 + $0xf8c] sm:$0xf]  ;;  %v7274_v10 = vor.u32 %v8556_v15, %v7271_v29  ;;  %v6983_v56 = vld [vmem:[#allocation5 + $0xc58] sm:$0xf0] }
 0x25f   :  { %4954 = vmatmul.bf16.vlgmr.msrb.gmra.mxu3 %v9014_v33  ;;  %v4709_v33 = vadd.f32 %v4708_v16, %v9126_v2  ;;  %v7402_v26 = vor.u32 %v8588_v30, %v7399_v17  ;;  %v7002_v2 = vor.u32 %v8488_v36, %v6999_v39  ;;  %v8548_v60 = vld [vmem:[#allocation5 + $0xe4c] sm:$0xf]  ;;  %v7223_v6 = vld [vmem:[#allocation5 + $0xe38] sm:$0xf0] }
 0x260   :  { %4998 = vmatpush.bf16.msra.mxu3 %v7450_v18  ;;  %4960 = vmatpush.bf16.msra.mxu0 %v7050_v22  ;;  %v9135_v59 = vpop.f32.mrf.mxu2  ;;  %v7111_v18 = vld [vmem:[#allocation5 + $0xd58] sm:$0xf0]  ;;  %v8580_v19 = vld [vmem:[#allocation5 + $0xf4c] sm:$0xf]  ;;  %v4710_v22 = vpop.f32.mrf.mxu0  ;;  %v7242_v5 = vor.u32 %v8548_v60, %v7239_v61 }
 0x261   :  { %4973 = vmatpush.bf16.msra.mxu1 %v7178_v3  ;;  %v9133_v43 = vadd.f32 %v4721_v32, %v4709_v33  ;;  %v6986_v3 = vor.u32 %v8484_v55, %v6983_v56  ;;  %v7114_v0 = vor.u32 %v8516_v57, %v7111_v18  ;;  %v8480_v7 = vld [vmem:[#allocation5 + $0xc2c] sm:$0xf]  ;;  %v7370_v38 = vor.u32 %v8580_v19, %v7367_v20  ;;  %v6951_v25 = vld [vmem:[#allocation5 + $0xc18] sm:$0xf0] }
 0x262   :  { %4986 = vmatpush.bf16.msra.mxu2 %v7306_v4  ;;  %v9137_v63 = vpop.f32.mrf.mxu3  ;;  %v8512_v1 = vld [vmem:[#allocation5 + $0xd2c] sm:$0xf]  ;;  %v7079_v15 = vld [vmem:[#allocation5 + $0xd18] sm:$0xf0] }
 0x263   :  { %v4723_v4 = vpop.f32.mrf.mxu1  ;;  %v8544_v11 = vld [vmem:[#allocation5 + $0xe2c] sm:$0xf]  ;;  %v7098_v42 = vor.u32 %v8512_v1, %v7095_v9  ;;  %v7207_v30 = vld [vmem:[#allocation5 + $0xe18] sm:$0xf0] }
 0x264   :  { %4999 = vmatpush.bf16.msra.mxu3 %v7434_v8  ;;  %4961 = vmatpush.bf16.msra.mxu0 %v7034_v50  ;;  %v6967_v8 = vld [vmem:[#allocation5 + $0xc38] sm:$0xf0]  ;;  %v8576_v50 = vld [vmem:[#allocation5 + $0xf2c] sm:$0xf] }
 0x265   :  { %4974 = vmatpush.bf16.msra.mxu1 %v7162_v12  ;;  %v7351_v12 = vld [vmem:[#allocation5 + $0xf38] sm:$0xf0]  ;;  %v8476_v13 = vld [vmem:[#allocation5 + $0xc0c] sm:$0xf] }
 0x266   :  { %4987 = vmatpush.bf16.msra.mxu2 %v7290_v41  ;;  %v6970_v41 = vor.u32 %v8480_v7, %v6967_v8  ;;  %v8508_v44 = vld [vmem:[#allocation5 + $0xd0c] sm:$0xf]  ;;  %v7354_v16 = vor.u32 %v8576_v50, %v7351_v12  ;;  %v7335_v33 = vld [vmem:[#allocation5 + $0xf18] sm:$0xf0]  ;;  %v6954_v39 = vor.u32 %v8476_v13, %v6951_v25 }
 0x267   :  { %v8540_v29 = vld [vmem:[#allocation5 + $0xe0c] sm:$0xf]  ;;  %v7703_v27 = vld [vmem:[#allocation5 + $0x11f8] sm:$0xf0]  ;;  %v7082_v40 = vor.u32 %v8508_v44, %v7079_v15 }
 0x268   :  { %5000 = vmatpush.bf16.msra.mxu3 %v7418_v14  ;;  %4962 = vmatpush.bf16.msra.mxu0 %v7018_v21  ;;  %v7226_v14 = vor.u32 %v8544_v11, %v7223_v6  ;;  %v8572_v17 = vld [vmem:[#allocation5 + $0xf0c] sm:$0xf]  ;;  %v4736_v21 = vpop.f32.mrf.mxu2  ;;  %v7831_v47 = vld [vmem:[#allocation5 + $0x12f8] sm:$0xf0]  ;;  %v7210_v51 = vor.u32 %v8540_v29, %v7207_v30 }
 0x269   :  { %4975 = vmatpush.bf16.msra.mxu1 %v7146_v34  ;;  %v8632_v32 = vld [vmem:[#allocation5 + $0x10ec] sm:$0xf]  ;;  %v7575_v34 = vld [vmem:[#allocation5 + $0x10f8] sm:$0xf0] }
 0x26a   :  { %4988 = vmatpush.bf16.msra.mxu2 %v7274_v10  ;;  %v8664_v10 = vld [vmem:[#allocation5 + $0x11ec] sm:$0xf]  ;;  %v4749_v36 = vpop.f32.mrf.mxu3  ;;  %v7959_v53 = vld [vmem:[#allocation5 + $0x13f8] sm:$0xf0] }
 0x26b   :  { %v8728_v52 = vld [vmem:[#allocation5 + $0x13ec] sm:$0xf]  ;;  %v7559_v57 = vld [vmem:[#allocation5 + $0x10d8] sm:$0xf0] }
 0x26c   :  { %5001 = vmatpush.bf16.msra.mxu3 %v7402_v26  ;;  %4963 = vmatpush.bf16.msra.mxu0 %v7002_v2  ;;  %v8696_v26 = vld [vmem:[#allocation5 + $0x12ec] sm:$0xf]  ;;  %v7338_v2 = vor.u32 %v8572_v17, %v7335_v33  ;;  %v7962_v18 = vor.u32 %v8728_v52, %v7959_v53  ;;  %v7687_v60 = vld [vmem:[#allocation5 + $0x11d8] sm:$0xf0] }
 0x26d   :  { %4976 = vmatpush.bf16.msra.mxu1 %v7130_v54  ;;  %v7578_v54 = vor.u32 %v8632_v32, %v7575_v34  ;;  %v7834_v55 = vor.u32 %v8696_v26, %v7831_v47  ;;  %v8628_v56 = vld [vmem:[#allocation5 + $0x10cc] sm:$0xf]  ;;  %v7815_v19 = vld [vmem:[#allocation5 + $0x12d8] sm:$0xf0] }
 0x26e   :  { %4989 = vmatpush.bf16.msra.mxu2 %v7258_v24  ;;  %v7706_v24 = vor.u32 %v8664_v10, %v7703_v27  ;;  %v8692_v61 = vld [vmem:[#allocation5 + $0x12cc] sm:$0xf]  ;;  %v7943_v22 = vld [vmem:[#allocation5 + $0x13d8] sm:$0xf0] }
 0x26f   :  { %v8724_v20 = vld [vmem:[#allocation5 + $0x13cc] sm:$0xf]  ;;  %v7543_v7 = vld [vmem:[#allocation5 + $0x10b8] sm:$0xf0] }
 0x270   :  { %5002 = vmatpush.bf16.msra.mxu3 %v7386_v58  ;;  %4964 = vmatpush.bf16.msra.mxu0 %v6986_v3  ;;  %v8660_v58 = vld [vmem:[#allocation5 + $0x11cc] sm:$0xf]  ;;  %v7562_v3 = vor.u32 %v8628_v56, %v7559_v57  ;;  %v7946_v1 = vor.u32 %v8724_v20, %v7943_v22  ;;  %v7799_v11 = vld [vmem:[#allocation5 + $0x12b8] sm:$0xf0] }
 0x271   :  { %4977 = vmatpush.bf16.msra.mxu1 %v7114_v0  ;;  %v7690_v4 = vor.u32 %v8660_v58, %v7687_v60  ;;  %v7818_v0 = vor.u32 %v8692_v61, %v7815_v19  ;;  %v8656_v8 = vld [vmem:[#allocation5 + $0x11ac] sm:$0xf]  ;;  %v7927_v50 = vld [vmem:[#allocation5 + $0x13b8] sm:$0xf0] }
 0x272   :  { %4990 = vmatpush.bf16.msra.mxu2 %v7242_v5  ;;  %v8624_v5 = vld [vmem:[#allocation5 + $0x10ac] sm:$0xf]  ;;  %v7655_v44 = vld [vmem:[#allocation5 + $0x1198] sm:$0xf0] }
 0x273   :  { %v8688_v9 = vld [vmem:[#allocation5 + $0x12ac] sm:$0xf]  ;;  %v7546_v12 = vor.u32 %v8624_v5, %v7543_v7  ;;  %v7511_v32 = vld [vmem:[#allocation5 + $0x1078] sm:$0xf0] }
 0x274   :  { %5003 = vmatpush.bf16.msra.mxu3 %v7370_v38  ;;  %4965 = vmatpush.bf16.msra.mxu0 %v6970_v41  ;;  %v7671_v38 = vld [vmem:[#allocation5 + $0x11b8] sm:$0xf0]  ;;  %v8720_v6 = vld [vmem:[#allocation5 + $0x13ac] sm:$0xf]  ;;  %v7802_v13 = vor.u32 %v8688_v9, %v7799_v11 }
 0x275   :  { %4978 = vmatpush.bf16.msra.mxu1 %v7098_v42  ;;  %v7674_v41 = vor.u32 %v8656_v8, %v7671_v38  ;;  %v8620_v25 = vld [vmem:[#allocation5 + $0x108c] sm:$0xf]  ;;  %v7639_v36 = vld [vmem:[#allocation5 + $0x1178] sm:$0xf0] }
 0x276   :  { %4991 = vmatpush.bf16.msra.mxu2 %v7226_v14  ;;  %v8652_v42 = vld [vmem:[#allocation5 + $0x118c] sm:$0xf]  ;;  %v7930_v14 = vor.u32 %v8720_v6, %v7927_v50  ;;  %v7767_v27 = vld [vmem:[#allocation5 + $0x1278] sm:$0xf0] }
 0x277   :  { %v8684_v15 = vld [vmem:[#allocation5 + $0x128c] sm:$0xf]  ;;  %v7658_v17 = vor.u32 %v8652_v42, %v7655_v44  ;;  %v7895_v47 = vld [vmem:[#allocation5 + $0x1378] sm:$0xf0] }
 0x278   :  { %5004 = vmatpush.bf16.msra.mxu3 %v7354_v16  ;;  %4966 = vmatpush.bf16.msra.mxu0 %v6954_v39  ;;  %v9143_v29 = vpop.f32.mrf.mxu0  ;;  %v7911_v16 = vld [vmem:[#allocation5 + $0x1398] sm:$0xf0]  ;;  %v8616_v21 = vld [vmem:[#allocation5 + $0x106c] sm:$0xf] }
 0x279   :  { %4979 = vmatpush.bf16.msra.mxu1 %v7082_v40  ;;  %v8648_v34 = vld [vmem:[#allocation5 + $0x116c] sm:$0xf]  ;;  %v7514_v40 = vor.u32 %v8616_v21, %v7511_v32  ;;  %v7623_v56 = vld [vmem:[#allocation5 + $0x1158] sm:$0xf0] }
 0x27a   :  { %4992 = vmatpush.bf16.msra.mxu2 %v7210_v51  ;;  %v8680_v39 = vld [vmem:[#allocation5 + $0x126c] sm:$0xf]  ;;  %v7642_v51 = vor.u32 %v8648_v34, %v7639_v36  ;;  %v7751_v58 = vld [vmem:[#allocation5 + $0x1258] sm:$0xf0] }
 0x27b   :  { %4967 = vmatmul.bf16.vlgmr.msra.gmra.mxu0 %v9020_v23  ;;  %v7527_v23 = vld [vmem:[#allocation5 + $0x1098] sm:$0xf0]  ;;  %v9145_v30 = vpop.f32.mrf.mxu1  ;;  %v8712_v26 = vld [vmem:[#allocation5 + $0x136c] sm:$0xf]  ;;  %v7770_v52 = vor.u32 %v8680_v39, %v7767_v27  ;;  %v8737_v39 = vld [vmem:[#allocation8 + $0x30] sm:$0xff] }
 0x27c   :  { %5005 = vmatpush.bf16.msra.mxu3 %v7338_v2  ;;  %5011 = vmatpush.bf16.msrb.mxu0 %v7578_v54  ;;  %v8612_v53 = vld [vmem:[#allocation5 + $0x104c] sm:$0xf]  ;;  %v7495_v2 = vld [vmem:[#allocation5 + $0x1058] sm:$0xf0]  ;;  %v8745_v27 = vld [vmem:[#allocation8 + $0x70] sm:$0xff] }
 0x27d   :  { %5024 = vmatpush.bf16.msrb.mxu1 %v7706_v24  ;;  %4993 = vmatmul.bf16.vlgmr.msra.gmra.mxu2 %v9022_v28  ;;  %v7783_v28 = vld [vmem:[#allocation5 + $0x1298] sm:$0xf0]  ;;  %v8644_v54 = vld [vmem:[#allocation5 + $0x114c] sm:$0xf]  ;;  %v7898_v24 = vor.u32 %v8712_v26, %v7895_v47  ;;  %v7498_v20 = vor.u32 %v8612_v53, %v7495_v2  ;;  %v8753_v26 = vld [vmem:[#allocation8 + $0xb0] sm:$0xff]  ;;  %v4735_v2 = vadd.f32 %v9135_v59, %v9133_v43 }
 0x27e   :  { %5037 = vmatpush.bf16.msrb.mxu2 %v7834_v55  ;;  %4980 = vmatmul.bf16.vlgmr.msra.gmra.mxu1 %v9024_v31  ;;  %v8716_v31 = vld [vmem:[#allocation5 + $0x138c] sm:$0xf]  ;;  %v7786_v33 = vor.u32 %v8684_v15, %v7783_v28  ;;  %v7879_v61 = vld [vmem:[#allocation5 + $0x1358] sm:$0xf0] }
 0x27f   :  { %5006 = vmatmul.bf16.vlgmr.msra.gmra.mxu3 %v9026_v35  ;;  %v7530_v35 = vor.u32 %v8620_v25, %v7527_v23  ;;  %v7914_v10 = vor.u32 %v8716_v31, %v7911_v16  ;;  %v8676_v57 = vld [vmem:[#allocation5 + $0x124c] sm:$0xf]  ;;  %v7479_v5 = vld [vmem:[#allocation5 + $0x1038] sm:$0xf0] }
 0x280   :  { %5050 = vmatpush.bf16.msrb.mxu3 %v7962_v18  ;;  %5012 = vmatpush.bf16.msrb.mxu0 %v7562_v3  ;;  %v9147_v55 = vpop.f32.mrf.mxu2  ;;  %v8708_v60 = vld [vmem:[#allocation5 + $0x134c] sm:$0xf]  ;;  %v4762_v19 = vpop.f32.mrf.mxu0  ;;  %v7626_v3 = vor.u32 %v8644_v54, %v7623_v56  ;;  %v7735_v9 = vld [vmem:[#allocation5 + $0x1238] sm:$0xf0]  ;;  %v8735_v54 = vld [vmem:[#allocation8 + $0x20] sm:$0xff]  ;;  %v4748_v56 = vadd.f32 %v9137_v63, %v4735_v2 }
 0x281   :  { %5025 = vmatpush.bf16.msrb.mxu1 %v7690_v4  ;;  %v7754_v4 = vor.u32 %v8676_v57, %v7751_v58  ;;  %v8640_v7 = vld [vmem:[#allocation5 + $0x112c] sm:$0xf]  ;;  %v7882_v8 = vor.u32 %v8708_v60, %v7879_v61  ;;  %v7863_v6 = vld [vmem:[#allocation5 + $0x1338] sm:$0xf0]  ;;  %v8741_v63 = vld [vmem:[#allocation8 + $0x50] sm:$0xff] }
 0x282   :  { %5038 = vmatpush.bf16.msrb.mxu2 %v7818_v0  ;;  %v9149_v18 = vpop.f32.mrf.mxu3  ;;  %v8608_v0 = vld [vmem:[#allocation5 + $0x102c] sm:$0xf]  ;;  %v7463_v25 = vld [vmem:[#allocation5 + $0x1018] sm:$0xf0]  ;;  %v4761_v58 = vadd.f32 %v9143_v29, %v4748_v56 }
 0x283   :  { %v4775_v22 = vpop.f32.mrf.mxu1  ;;  %v8672_v38 = vld [vmem:[#allocation5 + $0x122c] sm:$0xf]  ;;  %v7482_v50 = vor.u32 %v8608_v0, %v7479_v5  ;;  %v7719_v15 = vld [vmem:[#allocation5 + $0x1218] sm:$0xf0]  ;;  %v8749_v5 = vld [vmem:[#allocation8 + $0x90] sm:$0xff] }
 0x284   :  { %5051 = vmatpush.bf16.msrb.mxu3 %v7946_v1  ;;  %5013 = vmatpush.bf16.msrb.mxu0 %v7546_v12  ;;  %v7607_v1 = vld [vmem:[#allocation5 + $0x1138] sm:$0xf0]  ;;  %v8704_v11 = vld [vmem:[#allocation5 + $0x132c] sm:$0xf]  ;;  %v4774_v22 = vadd.f32 %v9145_v30, %v4761_v58  ;;  %v8755_v58 = vld [vmem:[#allocation8 + $0xc0] sm:$0xff] }
 0x285   :  { %5026 = vmatpush.bf16.msrb.mxu1 %v7674_v41  ;;  %v7610_v12 = vor.u32 %v8640_v7, %v7607_v1  ;;  %v7738_v41 = vor.u32 %v8672_v38, %v7735_v9  ;;  %v8636_v23 = vld [vmem:[#allocation5 + $0x110c] sm:$0xf]  ;;  %v7866_v42 = vor.u32 %v8704_v11, %v7863_v6  ;;  %v7847_v16 = vld [vmem:[#allocation5 + $0x1318] sm:$0xf0]  ;;  %v8731_v6 = vld [vmem:[#allocation8] sm:$0xff] }
 0x286   :  { %5039 = vmatpush.bf16.msrb.mxu2 %v7802_v13  ;;  %v8604_v13 = vld [vmem:[#allocation5 + $0x100c] sm:$0xf]  ;;  %v8738_v34 = vld [vmem:[#allocation8 + $0x38] sm:$0xff]  ;;  %v4787_v7 = vadd.f32 %v9147_v55, %v4774_v22  ;;  %v5064_v55 = vmax.f32 %v9106_v48, 0.0 }
 0x287   :  { %v8668_v44 = vld [vmem:[#allocation5 + $0x120c] sm:$0xf]  ;;  %v8754_v36 = vld [vmem:[#allocation8 + $0xb8] sm:$0xff] }
 0x288   :  { %5052 = vmatpush.bf16.msrb.mxu3 %v7930_v14  ;;  %5014 = vmatpush.bf16.msrb.mxu0 %v7530_v35  ;;  %v7591_v14 = vld [vmem:[#allocation5 + $0x1118] sm:$0xf0]  ;;  %v4788_v28 = vpop.f32.mrf.mxu2  ;;  %v8700_v31 = vld [vmem:[#allocation5 + $0x130c] sm:$0xf]  ;;  %v7722_v21 = vor.u32 %v8668_v44, %v7719_v15  ;;  %v4800_v30 = vadd.f32 %v9149_v18, %v4787_v7 }
 0x289   :  { %5027 = vmatpush.bf16.msrb.mxu1 %v7658_v17  ;;  %v7466_v17 = vor.u32 %v8604_v13, %v7463_v25  ;;  %v7850_v32 = vor.u32 %v8700_v31, %v7847_v16  ;;  %v8736_v47 = vld [vmem:[#allocation8 + $0x28] sm:$0xff]  ;;  %v8734_v60 = vld [vmem:[#allocation8 + $0x18] sm:$0xff] }
 0x28a   :  { %5040 = vmatpush.bf16.msrb.mxu2 %v7786_v33  ;;  %v4801_v35 = vpop.f32.mrf.mxu3  ;;  %v7594_v33 = vor.u32 %v8636_v23, %v7591_v14  ;;  %v8742_v61 = vld [vmem:[#allocation8 + $0x58] sm:$0xff]  ;;  %v8740_v1 = vld [vmem:[#allocation8 + $0x48] sm:$0xff]  ;;  %v5065_v13 = vmax.f32 %v4800_v30, 0.0  ;;  %v5068_v23 = vpack.c.bf16 %v5064_v55, %v5064_v55 }
 0x28b   :  { %v8750_v43 = vld [vmem:[#allocation8 + $0x98] sm:$0xff]  ;;  %v8748_v38 = vld [vmem:[#allocation8 + $0x88] sm:$0xff] }
 0x28c   :  { %5053 = vmatpush.bf16.msrb.mxu3 %v7914_v10  ;;  %5015 = vmatpush.bf16.msrb.mxu0 %v7514_v40  ;;  %v8746_v10 = vld [vmem:[#allocation8 + $0x78] sm:$0xff]  ;;  %v8744_v40 = vld [vmem:[#allocation8 + $0x68] sm:$0xff] }
 0x28d   :  { %5028 = vmatpush.bf16.msrb.mxu1 %v7642_v51  ;;  %v8752_v51 = vld [vmem:[#allocation8 + $0xa8] sm:$0xff] }
 0x28e   :  { %5041 = vmatpush.bf16.msrb.mxu2 %v7770_v52  ;;  %v8776_v52 = vld [vmem:[#allocation7] sm:$0xf] }
 0x28f   :  { %v748_v53 = vperm.slane %v8776_v52, 3  ;;  %v8759_v52 = vld [vmem:[#allocation8 + $0xe0] sm:$0xff] }
 0x290   :  { %5054 = vmatpush.bf16.msrb.mxu3 %v7898_v24  ;;  %5016 = vmatpush.bf16.msrb.mxu0 %v7498_v20 }
 0x291   :  { %5029 = vmatpush.bf16.msrb.mxu1 %v7626_v3  ;;  %v8733_v3 = vld [vmem:[#allocation8 + $0x10] sm:$0xff] }
 0x292   :  { %5042 = vmatpush.bf16.msrb.mxu2 %v7754_v4 }
 0x294   :  { %5055 = vmatpush.bf16.msrb.mxu3 %v7882_v8  ;;  %5017 = vmatpush.bf16.msrb.mxu0 %v7482_v50  ;;  %v8732_v8 = vld [vmem:[#allocation8 + $0x8] sm:$0xff]  ;;  %v5063_v50 = vmax.f32 %v9072_v62, 0.0 }
 0x295   :  { %5030 = vmatpush.bf16.msrb.mxu1 %v7610_v12  ;;  %v8739_v12 = vld [vmem:[#allocation8 + $0x40] sm:$0xff] }
 0x296   :  { %5043 = vmatpush.bf16.msrb.mxu2 %v7738_v41  ;;  %v8747_v41 = vld [vmem:[#allocation8 + $0x80] sm:$0xff]  ;;  %v5067_v25 = vpack.c.bf16 %v5063_v50, %v5063_v50 }
 0x298   :  { %5056 = vmatpush.bf16.msrb.mxu3 %v7866_v42  ;;  %5018 = vmatpush.bf16.msrb.mxu0 %v7466_v17  ;;  %v5069_v42 = vpack.c.bf16 %v5065_v13, %v5065_v13 }
 0x299   :  { %5031 = vmatpush.bf16.msrb.mxu1 %v7594_v33 }
 0x29a   :  { %5044 = vmatpush.bf16.msrb.mxu2 %v7722_v21 }
 0x29b   :  { %5019 = vmatmul.bf16.vlgmr.msrb.gmra.mxu0 %v9032_v37  ;;  %v4812_v37 = vpop.f32.mrf.mxu0 }
 0x29c   :  { %5057 = vmatpush.bf16.msrb.mxu3 %v7850_v32  ;;  %5331 = vmatpush.bf16.msra.mxu0 %v8738_v34  ;;  %v4813_v24 = vadd.f32 %v4812_v37, %v748_v53  ;;  %v8758_v53 = vld [vmem:[#allocation8 + $0xd8] sm:$0xff]  ;;  %v8757_v37 = vld [vmem:[#allocation8 + $0xd0] sm:$0xff] }
 0x29d   :  { %5344 = vmatpush.bf16.msra.mxu1 %v8746_v10  ;;  %5045 = vmatmul.bf16.vlgmr.msrb.gmra.mxu2 %v9034_v45  ;;  %v8751_v45 = vld [vmem:[#allocation8 + $0xa0] sm:$0xff] }
 0x29e   :  { %5357 = vmatpush.bf16.msra.mxu2 %v8754_v36  ;;  %5032 = vmatmul.bf16.vlgmr.msrb.gmra.mxu1 %v9036_v46  ;;  %v8743_v46 = vld [vmem:[#allocation8 + $0x60] sm:$0xff] }
 0x29f   :  { %5058 = vmatmul.bf16.vlgmr.msrb.gmra.mxu3 %v9038_v49  ;;  %v4825_v49 = vpop.f32.mrf.mxu1 }
 0x2a0   :  { %5332 = vmatpush.bf16.msra.mxu0 %v8737_v39  ;;  %v4826_v57 = vadd.f32 %v4825_v49, %v4813_v24  ;;  %v4838_v59 = vpop.f32.mrf.mxu2  ;;  %v8762_v39 = vld [vmem:[#allocation8 + $0xf8] sm:$0xff] }
 0x2a1   :  { %5345 = vmatpush.bf16.msra.mxu1 %v8745_v27  ;;  %5370 = vmatpush.bf16.msra.mxu3 %v8762_v39 }
 0x2a2   :  { %5358 = vmatpush.bf16.msra.mxu2 %v8753_v26  ;;  %v4839_v19 = vadd.f32 %v4838_v59, %v4826_v57  ;;  %v4851_v20 = vpop.f32.mrf.mxu3  ;;  %v8761_v26 = vld [vmem:[#allocation8 + $0xf0] sm:$0xff] }
 0x2a3   :  { %v4814_v0 = vpop.f32.mrf.mxu0 }
 0x2a4   :  { %5333 = vmatpush.bf16.msra.mxu0 %v8736_v47  ;;  %v4852_v4 = vadd.f32 %v4851_v20, %v4839_v19  ;;  %v8760_v47 = vld [vmem:[#allocation8 + $0xe8] sm:$0xff] }
 0x2a5   :  { %5346 = vmatpush.bf16.msra.mxu1 %v8744_v40  ;;  %5371 = vmatpush.bf16.msra.mxu3 %v8761_v26 }
 0x2a6   :  { %5359 = vmatpush.bf16.msra.mxu2 %v8752_v51 }
 0x2a7   :  { %v4827_v29 = vpop.f32.mrf.mxu1 }
 0x2a8   :  { %5334 = vmatpush.bf16.msra.mxu0 %v8735_v54  ;;  %v4840_v9 = vpop.f32.mrf.mxu2 }
 0x2a9   :  { %5347 = vmatpush.bf16.msra.mxu1 %v8743_v46  ;;  %5372 = vmatpush.bf16.msra.mxu3 %v8760_v47  ;;  %v8756_v46 = vld [vmem:[#allocation8 + $0xc8] sm:$0xff] }
 0x2aa   :  { %5360 = vmatpush.bf16.msra.mxu2 %v8751_v45  ;;  %v4853_v11 = vpop.f32.mrf.mxu3 }
 0x2ac   :  { %5335 = vmatpush.bf16.msra.mxu0 %v8734_v60 }
 0x2ad   :  { %5348 = vmatpush.bf16.msra.mxu1 %v8742_v61  ;;  %5373 = vmatpush.bf16.msra.mxu3 %v8759_v52 }
 0x2ae   :  { %5361 = vmatpush.bf16.msra.mxu2 %v8750_v43 }
 0x2b0   :  { %5336 = vmatpush.bf16.msra.mxu0 %v8733_v3 }
 0x2b1   :  { %5349 = vmatpush.bf16.msra.mxu1 %v8741_v63  ;;  %5374 = vmatpush.bf16.msra.mxu3 %v8758_v53 }
 0x2b2   :  { %5362 = vmatpush.bf16.msra.mxu2 %v8749_v5 }
 0x2b4   :  { %5337 = vmatpush.bf16.msra.mxu0 %v8732_v8 }
 0x2b5   :  { %5350 = vmatpush.bf16.msra.mxu1 %v8740_v1  ;;  %5375 = vmatpush.bf16.msra.mxu3 %v8757_v37 }
 0x2b6   :  { %5363 = vmatpush.bf16.msra.mxu2 %v8748_v38 }
 0x2b8   :  { %5338 = vmatpush.bf16.msra.mxu0 %v8731_v6  ;;  %v4864_v18 = vpop.f32.mrf.mxu0 }
 0x2b9   :  { %5351 = vmatpush.bf16.msra.mxu1 %v8739_v12  ;;  %v4865_v14 = vadd.f32 %v4864_v18, %v4852_v4  ;;  %5376 = vmatpush.bf16.msra.mxu3 %v8756_v46 }
 0x2ba   :  { %5364 = vmatpush.bf16.msra.mxu2 %v8747_v41  ;;  %v8773_v41 = vld [vmem:[#allocation10] ss:$0 sm:$0xff] }
 0x2bb   :  { %5339 = vmatmul.bf16.vlgmr.msra.gmra.mxu0 %v5067_v25  ;;  %v4877_v44 = vpop.f32.mrf.mxu1 }
 0x2bc   :  { %5352 = vmatmul.bf16.vlgmr.msra.gmra.mxu1 %v5068_v23  ;;  %v4878_v62 = vadd.f32 %v4877_v44, %v4865_v14 }
 0x2bd   :  { %5365 = vmatmul.bf16.vlgmr.msra.gmra.mxu2 %v5069_v42  ;;  %5377 = vmatpush.bf16.msra.mxu3 %v8755_v58 }
 0x2c0   :  { %v4890_v15 = vpop.f32.mrf.mxu2  ;;  %v4866_v35 = vpop.f32.mrf.mxu0 }
 0x2c1   :  { %v4891_v28 = vadd.f32 %v4890_v15, %v4878_v62 }
 0x2c2   :  { %v4903_v31 = vpop.f32.mrf.mxu3 }
 0x2c3   :  { %v4904_v16 = vadd.f32 %v4903_v31, %v4891_v28  ;;  %v4879_v48 = vpop.f32.mrf.mxu1 }
 0x2c8   :  { %v4892_v17 = vpop.f32.mrf.mxu2 }
 0x2ca   :  { %v4905_v33 = vpop.f32.mrf.mxu3 }
 0x2d8   :  { %v4916_v21 = vpop.f32.mrf.mxu0 }
 0x2d9   :  { %v4917_v24 = vadd.f32 %v4916_v21, %v4904_v16 }
 0x2db   :  { %v4929_v32 = vpop.f32.mrf.mxu1 }
 0x2dc   :  { %v4930_v60 = vadd.f32 %v4929_v32, %v4917_v24 }
 0x2e0   :  { %v4942_v34 = vpop.f32.mrf.mxu2  ;;  %v4918_v36 = vpop.f32.mrf.mxu0 }
 0x2e1   :  { %v4943_v61 = vadd.f32 %v4942_v34, %v4930_v60 }
 0x2e2   :  { %v4955_v10 = vpop.f32.mrf.mxu3 }
 0x2e3   :  { %v4931_v27 = vpop.f32.mrf.mxu1  ;;  %v4956_v19 = vadd.f32 %v4955_v10, %v4943_v61 }
 0x2e8   :  { %v4944_v40 = vpop.f32.mrf.mxu2 }
 0x2ea   :  { %v4957_v51 = vpop.f32.mrf.mxu3 }
 0x2f8   :  { %v4968_v2 = vpop.f32.mrf.mxu0 }
 0x2f9   :  { %v4969_v20 = vadd.f32 %v4968_v2, %v4956_v19 }
 0x2fb   :  { %v4981_v54 = vpop.f32.mrf.mxu1 }
 0x2fc   :  { %v4982_v22 = vadd.f32 %v4981_v54, %v4969_v20 }
 0x300   :  { %v4994_v45 = vpop.f32.mrf.mxu2  ;;  %v4970_v56 = vpop.f32.mrf.mxu0 }
 0x301   :  { %v4995_v3 = vadd.f32 %v4994_v45, %v4982_v22 }
 0x302   :  { %v5007_v49 = vpop.f32.mrf.mxu3 }
 0x303   :  { %v4983_v57 = vpop.f32.mrf.mxu1  ;;  %v5008_v4 = vadd.f32 %v5007_v49, %v4995_v3 }
 0x308   :  { %v4996_v43 = vpop.f32.mrf.mxu2 }
 0x30a   :  { %v5009_v59 = vpop.f32.mrf.mxu3 }
 0x318   :  { %v5020_v0 = vpop.f32.mrf.mxu0 }
 0x319   :  { %v5021_v5 = vadd.f32 %v5020_v0, %v5008_v4 }
 0x31b   :  { %v5033_v63 = vpop.f32.mrf.mxu1 }
 0x31c   :  { %v5034_v29 = vadd.f32 %v5033_v63, %v5021_v5 }
 0x320   :  { %v5046_v7 = vpop.f32.mrf.mxu2  ;;  %v5022_v38 = vpop.f32.mrf.mxu0 }
 0x321   :  { %v5047_v1 = vadd.f32 %v5046_v7, %v5034_v29 }
 0x322   :  { %v5059_v8 = vpop.f32.mrf.mxu3 }
 0x323   :  { %v5035_v9 = vpop.f32.mrf.mxu1  ;;  %v5060_v30 = vadd.f32 %v5059_v8, %v5047_v1 }
 0x325   :  { %v5066_v11 = vmax.f32 %v5060_v30, 0.0 }
 0x327   :  { %v5070_v6 = vpack.c.bf16 %v5066_v11, %v5066_v11 }
 0x328   :  { %v5048_v50 = vpop.f32.mrf.mxu2 }
 0x329   :  { %5378 = vmatmul.bf16.vlgmr.msra.gmra.mxu3 %v5070_v6 }
 0x32a   :  { %v5061_v12 = vpop.f32.mrf.mxu3 }
 0x338   :  { %v5340_v55 = vpop.f32.mrf.mxu0 }
 0x339   :  { %v5341_v13 = vadd.f32 %v8773_v41, %v5340_v55  ;;  %v5353_v25 = vpop.f32.mrf.mxu1 }
 0x33b   :  { %v5354_v23 = vadd.f32 %v5353_v25, %v5341_v13 }
 0x340   :  { %v5366_v42 = vpop.f32.mrf.mxu2  ;;  %v5342_v14 = vpop.f32.mrf.mxu0 }
 0x341   :  { %v5367_v18 = vadd.f32 %v5366_v42, %v5354_v23  ;;  %v5355_v44 = vpop.f32.mrf.mxu1 }
 0x348   :  { %v5368_v62 = vpop.f32.mrf.mxu2 }
 0x3ac   :  { %v5379_v15 = vpop.f32.mrf.mxu3 }
 0x3ad   :  { %v5380_v28 = vadd.f32 %v5379_v15, %v5367_v18 }
 0x3af   :  { %5383 = vst [vmem:[#allocation11] sm:$0xff] %v5380_v28 }
 0x3b0   :  { %5394 = dma.vmem_to_hbm [thread:$0]  %s5390_s4, 128, %s5392_s21, [#allocation4]  }
 0x3b4   :  { %v5381_v31 = vpop.f32.mrf.mxu3 }
 0x3b5   :  { %8927 = dma.done.wait [#allocation4], 128  }
 0x3b6   :  { %8928 = vsyncadd [#allocation4], 4294967168 }
 0x3b7   :  { %5399 = vsyncpa [#allocation3], 1 }
 0x3b8   :  { %5400 = vsyncpa [#allocation6], 1 }
 0x3b9   :  { %5401 = vsyncpa [#allocation9], 1 }
 0x3ba   :  { %5402 = vsyncpa [#allocation4], 1 }

</bundles_post_ra>
